<compile_context>
chip_gen: v5e
topology: v5e:2x2
jax: 0.10.0
libtpu: 0.0.40
codegen_flags: <defaults>
</compile_context>

<pallas_src>
import jax
import jax.numpy as jnp
from jax.experimental import pallas as pl
from jax.experimental.pallas import tpu as pltpu

SEQ_LEN = 500            # input length implied by Linear(64*124, 128)
C1, C2 = 32, 64
L_POS = 125              # de-interleaved positions per sample (m = 0..124)
L_PAD = 128              # lane-padded positions per sample
L_OUT = 124              # valid conv2+pool positions per sample
NPH = 8                  # de-interleave phases per pooled position (8 rows, phases 0..5 used)
FLAT = C2 * L_OUT        # 7936 (PyTorch flatten size)
FLAT_PAD = C2 * L_PAD    # 8192 (lane-padded flatten size)
VMEM_LIMIT = 40 * 1024 * 1024


# ----------------------------- Kernel 1: conv encoder -----------------------------
def conv_encoder_kernel(xs_ref, w1_ref, b1_ref, w2_ref, b2_ref, out_ref):
    # xs_ref : (1, 8, BT*128) with xs[s, b*128 + m] = x_pad[sample b, 4m + s]
    # out_ref: (BT, 64, 128) bf16 — padded-flat conv feature map per sample
    bt = out_ref.shape[0]
    L = bt * L_PAD
    xs = xs_ref[0]                                                        # (8, L)

    # conv1 for the six needed phases in ONE MXU dot.  Row blocks of w1 are ordered
    # [phi0, phi2, phi4, phi1, phi3, phi5] so MaxPool1d(2) over conv1 is a single
    # max of the two 96-row halves -> (96, L) = [h_even; h_odd; h_even_next].
    c1 = jnp.dot(w1_ref[...], xs, preferred_element_type=jnp.float32)     # (192, L)
    h = jnp.maximum(jnp.maximum(c1[:96], c1[96:]) + b1_ref[...], 0.0)     # (96, L)

    # fused conv2 (k=2): rows 0..63 = even output positions, 64..127 = odd, then
    # MaxPool1d(2) is again one max of the two halves.  No concatenate needed.
    c2 = jnp.dot(w2_ref[...], h, preferred_element_type=jnp.float32)      # (128, L)
    p2 = jnp.maximum(jnp.maximum(c2[:C2], c2[C2:]) + b2_ref[...], 0.0)    # (64, L)

    # zero the per-sample pad lanes (t >= 124) so the padded-flat layout is exact
    lane = jax.lax.broadcasted_iota(jnp.int32, (C2, L), dimension=1)
    p2 = jnp.where((lane & (L_PAD - 1)) < L_OUT, p2, 0.0).astype(out_ref.dtype)

    for b in range(bt):                              # lane-aligned (64, 128) stores
        out_ref[b, :, :] = p2[:, b * L_PAD:(b + 1) * L_PAD]


# --------------------------- Kernel 2: MLP + sigm head ----------------------------
def mlp_head_kernel(x_ref, wl1_ref, bl1_ref, wf_ref, bf_ref, ws2_ref, bs2_ref, out_ref):
    # x (Bm, 8192) bf16 @ wl1 (8192, 128) bf16, f32 accumulation
    h = jnp.dot(x_ref[...], wl1_ref[...], preferred_element_type=jnp.float32) + bl1_ref[...]
    h = jnp.maximum(h, 0.0)                                               # (Bm, 128)
    # Linear(128->64) and Linear(64->8) folded (no nonlinearity between them)
    t = jnp.tanh(jnp.dot(h, wf_ref[...], preferred_element_type=jnp.float32) + bf_ref[...])
    z = jnp.dot(t, ws2_ref[...], preferred_element_type=jnp.float32) + bs2_ref[...]
    out_ref[...] = jax.nn.sigmoid(z)


# ------------------------------ parameter pre-packing ------------------------------
def prepack_params(params):
    """Build kernel-friendly weight layouts once (not per forward call)."""
    (w_c1, b_c1, w_c2, b_c2, w_l1, b_l1, w_l2, b_l2, w_s1, b_s1, w_s2, b_s2) = params
    hi = jax.lax.Precision.HIGHEST
    w1 = w_c1[:, 0, :]                                    # (32, 3)

    # conv1 as one dot: phase row blocks ordered [0, 2, 4, 1, 3, 5] so pooling is a
    # single max of the two halves (yields [h_e; h_o; h_e_next] with no copies).
    blocks = []
    for p in (0, 2, 4, 1, 3, 5):
        blocks.append(jnp.zeros((C1, NPH), jnp.float32).at[:, p:p + 3].set(w1))
    w1big = jnp.concatenate(blocks, axis=0)               # (192, 8)
    b1_3 = jnp.concatenate([b_c1, b_c1, b_c1])[:, None]   # (96, 1)

    # fused conv2 weight: rows 0..63 -> even output positions, 64..127 -> odd
    w20 = w_c2[:, :, 0]                                   # (64, 32) conv2 tap 0
    w21 = w_c2[:, :, 1]                                   # (64, 32) conv2 tap 1
    z = jnp.zeros_like(w20)
    w2big = jnp.concatenate([
        jnp.concatenate([w20, w21, z], axis=1),
        jnp.concatenate([z, w20, w21], axis=1)], axis=0)  # (128, 96)
    b2 = b_c2[:, None]                                    # (64, 1)

    # Linear(64*124 -> 128): zero-pad position axis 124 -> 128 (K = 8192), bf16
    wl1 = w_l1.reshape(128, C2, L_OUT)
    wl1 = jnp.pad(wl1, ((0, 0), (0, 0), (0, L_PAD - L_OUT)))
    wl1 = wl1.reshape(128, FLAT_PAD).T.astype(jnp.bfloat16)      # (8192, 128)

    # exact algebraic fold of Linear(128->64) and Linear(64->8)
    wfold = jnp.dot(w_l2.T, w_s1.T, precision=hi)                # (128, 8)
    bfold = (jnp.dot(b_l2, w_s1.T, precision=hi) + b_s1)[None, :]  # (1, 8)

    return dict(w1=w1big, b1=b1_3, w2=w2big, b2=b2,
                wl1=wl1, bl1=b_l1[None, :],
                wfold=wfold, bfold=bfold,
                ws2=w_s2.T, bs2=b_s2[None, :])


def _enc_batch_tile(B):
    # big tiles amortize per-grid-step overhead; keep >= 2 grid steps when possible (v7x)
    if B >= 64:
        return 32
    if B >= 32:
        return 16
    return 8


# --------------------------------- forward (wrapper) -------------------------------
@jax.jit
def model_ecg_forward_packed(x, pk):
    B, L = x.shape
    assert L == SEQ_LEN
    bt = _enc_batch_tile(B)
    Bpad = ((B + bt - 1) // bt) * bt
    G = Bpad // bt

    # conv1 padding=1 (+2 extra zeros so phases 6,7 exist at m=124), de-interleaved
    # with static strided slices (no gather):  xs[b, s, m] = x_pad[b, 4m + s]
    xq = jnp.pad(x, ((0, Bpad - B), (0, 0)))                          # (Bpad, 500)
    xp = jnp.pad(xq, ((0, 0), (1, 3)))                                # (Bpad, 504)
    xs = jnp.stack([xp[:, s:s + 4 * L_POS:4] for s in range(NPH)], axis=1)  # (Bpad, 8, 125)
    xs = jnp.pad(xs, ((0, 0), (0, 0), (0, L_PAD - L_POS)))            # (Bpad, 8, 128)
    # fold the batch tile onto the lane axis: (G, 8, bt*128)
    xs = xs.reshape(G, bt, NPH, L_PAD).transpose(0, 2, 1, 3).reshape(G, NPH, bt * L_PAD)

    conv_out = pl.pallas_call(
        conv_encoder_kernel,
        out_shape=jax.ShapeDtypeStruct((Bpad, C2, L_PAD), jnp.bfloat16),
        grid=(G,),
        in_specs=[
            pl.BlockSpec((1, NPH, bt * L_PAD), lambda g: (g, 0, 0)),
            pl.BlockSpec((6 * C1, NPH), lambda g: (0, 0)),
            pl.BlockSpec((3 * C1, 1), lambda g: (0, 0)),
            pl.BlockSpec((2 * C2, 3 * C1), lambda g: (0, 0)),
            pl.BlockSpec((C2, 1), lambda g: (0, 0)),
        ],
        out_specs=pl.BlockSpec((bt, C2, L_PAD), lambda g: (g, 0, 0)),
        compiler_params=pltpu.CompilerParams(
            dimension_semantics=("parallel",),
            vmem_limit_bytes=VMEM_LIMIT),
    )(xs, pk["w1"], pk["b1"], pk["w2"], pk["b2"])

    # lane-padded flatten: flat index = c*128 + t, matching the padded w_l1 rows (bf16)
    flat = conv_out.reshape(Bpad, FLAT_PAD)

    # head tiled over batch; w_l1 stays resident (constant index_map).  Bm multiples
    # of 16 (bf16 sublane packing); prefer >= 2 grid steps for v7x's two cores.
    Bm = next((c for c in (256, 128, 64, 32, 16)
               if Bpad % c == 0 and Bpad // c >= 2), Bpad)
    out = pl.pallas_call(
        mlp_head_kernel,
        out_shape=jax.ShapeDtypeStruct((Bpad, 1), jnp.float32),
        grid=(Bpad // Bm,),
        in_specs=[
            pl.BlockSpec((Bm, FLAT_PAD), lambda i: (i, 0)),
            pl.BlockSpec((FLAT_PAD, 128), lambda i: (0, 0)),
            pl.BlockSpec((1, 128), lambda i: (0, 0)),
            pl.BlockSpec((128, 8), lambda i: (0, 0)),
            pl.BlockSpec((1, 8), lambda i: (0, 0)),
            pl.BlockSpec((8, 1), lambda i: (0, 0)),
            pl.BlockSpec((1, 1), lambda i: (0, 0)),
        ],
        out_specs=pl.BlockSpec((Bm, 1), lambda i: (i, 0)),
        compiler_params=pltpu.CompilerParams(
            dimension_semantics=("parallel",),
            vmem_limit_bytes=VMEM_LIMIT),
    )(flat, pk["wl1"], pk["bl1"], pk["wfold"], pk["bfold"], pk["ws2"], pk["bs2"])
    return out[:B]


def model_ecg_forward(x, params):
    return model_ecg_forward_packed(x, prepack_params(params))


# ----------------------------- pure-JAX reference check ---------------------------
def reference_forward(x, params):
    (w_c1, b_c1, w_c2, b_c2, w_l1, b_l1, w_l2, b_l2, w_s1, b_s1, w_s2, b_s2) = params
    B = x.shape[0]
    hi = jax.lax.Precision.HIGHEST
    dn = ("NCH", "OIH", "NCH")
    x1 = x[:, None, :]
    c1 = jax.lax.conv_general_dilated(x1, w_c1, (1,), [(1, 1)],
                                      dimension_numbers=dn, precision=hi) + b_c1[None, :, None]
    p1 = jnp.maximum(c1, 0.0).reshape(B, C1, 250, 2).max(-1)
    c2 = jax.lax.conv_general_dilated(p1, w_c2, (1,), [(0, 0)],
                                      dimension_numbers=dn, precision=hi) + b_c2[None, :, None]
    r2 = jnp.maximum(c2, 0.0)                                # (B, 64, 249)
    p2 = r2[:, :, :248].reshape(B, C2, L_OUT, 2).max(-1)     # (B, 64, 124)
    flat = p2.reshape(B, FLAT)
    h = jnp.maximum(jnp.dot(flat, w_l1.T, precision=hi) + b_l1, 0.0)
    e = jnp.dot(h, w_l2.T, precision=hi) + b_l2
    t = jnp.tanh(jnp.dot(e, w_s1.T, precision=hi) + b_s1)
    return jax.nn.sigmoid(jnp.dot(t, w_s2.T, precision=hi) + b_s2)


def make_params(key):
    ks = jax.random.split(key, 12)
    n = lambda k, s, sc: sc * jax.random.normal(k, s, dtype=jnp.float32)
    w_c1 = n(ks[0], (C1, 1, 3), 0.05);      b_c1 = n(ks[1], (C1,), 0.01)
    w_c2 = n(ks[2], (C2, C1, 2), 0.05);     b_c2 = n(ks[3], (C2,), 0.01)
    w_l1 = n(ks[4], (128, FLAT), 0.05);     b_l1 = n(ks[5], (128,), 0.01)
    w_l2 = n(ks[6], (64, 128), 0.05);       b_l2 = n(ks[7], (64,), 0.01)
    w_s1 = n(ks[8], (8, 64), 0.05);         b_s1 = n(ks[9], (8,), 0.01)
    w_s2 = n(ks[10], (1, 8), 0.05);         b_s2 = n(ks[11], (1,), 0.01)
    # TODO(synk): decoder (ConvTranspose1d stack) is defined in __init__ but never used in forward(); omitted.
    return (w_c1, b_c1, w_c2, b_c2, w_l1, b_l1, w_l2, b_l2, w_s1, b_s1, w_s2, b_s2)


if __name__ == "__main__":
    key = jax.random.PRNGKey(0)
    k_params, k_x = jax.random.split(key)
    params = make_params(k_params)
    packed = prepack_params(params)

    B = 12   # not a multiple of the encoder batch tile: exercises padding + 2 grid steps
    x = jax.random.normal(k_x, (B, SEQ_LEN), dtype=jnp.float32)

    out = jax.block_until_ready(model_ecg_forward_packed(x, packed))
    assert out.shape == (B, 1), out.shape

    ref = jax.block_until_ready(reference_forward(x, params))
    max_diff = float(jnp.max(jnp.abs(out - ref)))
    assert max_diff < 5e-3, f"mismatch vs reference: {max_diff}"

    print("KERNEL_OK")
</pallas_src>

<mosaic_0001>
module attributes {stable_mosaic.version = 11 : i64} {
  func.func @conv_encoder_kernel(%arg0: i32, %arg1: memref<1x8x1024xf32, #tpu.memory_space<vmem>>, %arg2: memref<192x8xf32, #tpu.memory_space<vmem>>, %arg3: memref<96x1xf32, #tpu.memory_space<vmem>>, %arg4: memref<128x96xf32, #tpu.memory_space<vmem>>, %arg5: memref<64x1xf32, #tpu.memory_space<vmem>>, %arg6: memref<8x64x128xbf16, #tpu.memory_space<vmem>>) attributes {dimension_semantics = [#tpu.dimension_semantics<parallel>], iteration_bounds = array<i64: 2>, scalar_prefetch = 0 : i64, scratch_operands = 0 : i64, tpu.core_type = #tpu.core_type<tc>, window_params = [{transform_indices = @transform_0, window_bounds = array<i64: 1, 8, 1024>}, {pipeline_mode = #tpu.pipeline_mode<synchronous>, transform_indices = @transform_1, window_bounds = array<i64: 192, 8>}, {pipeline_mode = #tpu.pipeline_mode<synchronous>, transform_indices = @transform_2, window_bounds = array<i64: 96, 1>}, {pipeline_mode = #tpu.pipeline_mode<synchronous>, transform_indices = @transform_3, window_bounds = array<i64: 128, 96>}, {pipeline_mode = #tpu.pipeline_mode<synchronous>, transform_indices = @transform_4, window_bounds = array<i64: 64, 1>}, {transform_indices = @transform_5, window_bounds = array<i64: 8, 64, 128>}]} {
    %c0 = arith.constant 0 : index
    %c0_0 = arith.constant 0 : index
    %c0_1 = arith.constant 0 : index
    %0 = vector.load %arg1[%c0, %c0_0, %c0_1] : memref<1x8x1024xf32, #tpu.memory_space<vmem>>, vector<1x8x1024xf32>
    %1 = vector.shape_cast %0 : vector<1x8x1024xf32> to vector<8x1024xf32>
    %c0_2 = arith.constant 0 : index
    %c0_3 = arith.constant 0 : index
    %2 = vector.load %arg2[%c0_2, %c0_3] : memref<192x8xf32, #tpu.memory_space<vmem>>, vector<192x8xf32>
    %cst = arith.constant dense<0.000000e+00> : vector<192x1024xf32>
    %3 = tpu.matmul %2, %1, %cst {dimension_numbers = #tpu.dot_dimension_numbers<[1], [0], [0], [1], [0, 0, 1, 1], [], []>} : vector<192x8xf32>, vector<8x1024xf32>, vector<192x1024xf32> -> vector<192x1024xf32>
    %4 = vector.extract_strided_slice %3 {offsets = [0, 0], sizes = [96, 1024], strides = [1, 1]} : vector<192x1024xf32> to vector<96x1024xf32>
    %5 = vector.extract_strided_slice %3 {offsets = [96, 0], sizes = [96, 1024], strides = [1, 1]} : vector<192x1024xf32> to vector<96x1024xf32>
    %6 = arith.maximumf %4, %5 : vector<96x1024xf32>
    %c0_4 = arith.constant 0 : index
    %c0_5 = arith.constant 0 : index
    %7 = vector.load %arg3[%c0_4, %c0_5] : memref<96x1xf32, #tpu.memory_space<vmem>>, vector<96x1xf32>
    %8 = vector.broadcast %7 : vector<96x1xf32> to vector<96x1024xf32>
    %9 = arith.addf %6, %8 : vector<96x1024xf32>
    %cst_6 = arith.constant 0.000000e+00 : f32
    %10 = vector.broadcast %cst_6 : f32 to vector<96x1024xf32>
    %11 = arith.maximumf %9, %10 : vector<96x1024xf32>
    %c0_7 = arith.constant 0 : index
    %c0_8 = arith.constant 0 : index
    %12 = vector.load %arg4[%c0_7, %c0_8] : memref<128x96xf32, #tpu.memory_space<vmem>>, vector<128x96xf32>
    %cst_9 = arith.constant dense<0.000000e+00> : vector<128x1024xf32>
    %13 = tpu.matmul %12, %11, %cst_9 {dimension_numbers = #tpu.dot_dimension_numbers<[1], [0], [0], [1], [0, 0, 1, 1], [], []>} : vector<128x96xf32>, vector<96x1024xf32>, vector<128x1024xf32> -> vector<128x1024xf32>
    %14 = vector.extract_strided_slice %13 {offsets = [0, 0], sizes = [64, 1024], strides = [1, 1]} : vector<128x1024xf32> to vector<64x1024xf32>
    %15 = vector.extract_strided_slice %13 {offsets = [64, 0], sizes = [64, 1024], strides = [1, 1]} : vector<128x1024xf32> to vector<64x1024xf32>
    %16 = arith.maximumf %14, %15 : vector<64x1024xf32>
    %c0_10 = arith.constant 0 : index
    %c0_11 = arith.constant 0 : index
    %17 = vector.load %arg5[%c0_10, %c0_11] : memref<64x1xf32, #tpu.memory_space<vmem>>, vector<64x1xf32>
    %18 = vector.broadcast %17 : vector<64x1xf32> to vector<64x1024xf32>
    %19 = arith.addf %16, %18 : vector<64x1024xf32>
    %cst_12 = arith.constant 0.000000e+00 : f32
    %20 = vector.broadcast %cst_12 : f32 to vector<64x1024xf32>
    %21 = arith.maximumf %19, %20 : vector<64x1024xf32>
    %22 = tpu.iota {dimensions = array<i32: 1>} : vector<64x1024xi32>
    %c127_i32 = arith.constant 127 : i32
    %23 = vector.broadcast %c127_i32 : i32 to vector<64x1024xi32>
    %24 = arith.andi %22, %23 : vector<64x1024xi32>
    %c124_i32 = arith.constant 124 : i32
    %25 = vector.broadcast %c124_i32 : i32 to vector<64x1024xi32>
    %26 = arith.cmpi slt, %24, %25 : vector<64x1024xi32>
    %cst_13 = arith.constant 0.000000e+00 : f32
    %27 = vector.broadcast %cst_13 : f32 to vector<64x1024xf32>
    %28 = arith.select %26, %21, %27 : vector<64x1024xi1>, vector<64x1024xf32>
    %29 = arith.truncf %28 : vector<64x1024xf32> to vector<64x1024xbf16>
    %30 = vector.extract_strided_slice %29 {offsets = [0, 0], sizes = [64, 128], strides = [1, 1]} : vector<64x1024xbf16> to vector<64x128xbf16>
    %c0_14 = arith.constant 0 : index
    %c0_15 = arith.constant 0 : index
    %c0_16 = arith.constant 0 : index
    %31 = vector.load %arg6[%c0_14, %c0_15, %c0_16] : memref<8x64x128xbf16, #tpu.memory_space<vmem>>, vector<1x64x128xbf16>
    %32 = vector.shape_cast %31 : vector<1x64x128xbf16> to vector<64x128xbf16>
    %33 = vector.shape_cast %30 : vector<64x128xbf16> to vector<1x64x128xbf16>
    tpu.vector_store %arg6[%c0_14, %c0_15, %c0_16], %33 {strides = array<i32>} : memref<8x64x128xbf16, #tpu.memory_space<vmem>>, vector<1x64x128xbf16>,
    %34 = vector.extract_strided_slice %29 {offsets = [0, 128], sizes = [64, 128], strides = [1, 1]} : vector<64x1024xbf16> to vector<64x128xbf16>
    %c1 = arith.constant 1 : index
    %c0_17 = arith.constant 0 : index
    %c0_18 = arith.constant 0 : index
    %35 = vector.load %arg6[%c1, %c0_17, %c0_18] : memref<8x64x128xbf16, #tpu.memory_space<vmem>>, vector<1x64x128xbf16>
    %36 = vector.shape_cast %35 : vector<1x64x128xbf16> to vector<64x128xbf16>
    %37 = vector.shape_cast %34 : vector<64x128xbf16> to vector<1x64x128xbf16>
    tpu.vector_store %arg6[%c1, %c0_17, %c0_18], %37 {strides = array<i32>} : memref<8x64x128xbf16, #tpu.memory_space<vmem>>, vector<1x64x128xbf16>,
    %38 = vector.extract_strided_slice %29 {offsets = [0, 256], sizes = [64, 128], strides = [1, 1]} : vector<64x1024xbf16> to vector<64x128xbf16>
    %c2 = arith.constant 2 : index
    %c0_19 = arith.constant 0 : index
    %c0_20 = arith.constant 0 : index
    %39 = vector.load %arg6[%c2, %c0_19, %c0_20] : memref<8x64x128xbf16, #tpu.memory_space<vmem>>, vector<1x64x128xbf16>
    %40 = vector.shape_cast %39 : vector<1x64x128xbf16> to vector<64x128xbf16>
    %41 = vector.shape_cast %38 : vector<64x128xbf16> to vector<1x64x128xbf16>
    tpu.vector_store %arg6[%c2, %c0_19, %c0_20], %41 {strides = array<i32>} : memref<8x64x128xbf16, #tpu.memory_space<vmem>>, vector<1x64x128xbf16>,
    %42 = vector.extract_strided_slice %29 {offsets = [0, 384], sizes = [64, 128], strides = [1, 1]} : vector<64x1024xbf16> to vector<64x128xbf16>
    %c3 = arith.constant 3 : index
    %c0_21 = arith.constant 0 : index
    %c0_22 = arith.constant 0 : index
    %43 = vector.load %arg6[%c3, %c0_21, %c0_22] : memref<8x64x128xbf16, #tpu.memory_space<vmem>>, vector<1x64x128xbf16>
    %44 = vector.shape_cast %43 : vector<1x64x128xbf16> to vector<64x128xbf16>
    %45 = vector.shape_cast %42 : vector<64x128xbf16> to vector<1x64x128xbf16>
    tpu.vector_store %arg6[%c3, %c0_21, %c0_22], %45 {strides = array<i32>} : memref<8x64x128xbf16, #tpu.memory_space<vmem>>, vector<1x64x128xbf16>,
    %46 = vector.extract_strided_slice %29 {offsets = [0, 512], sizes = [64, 128], strides = [1, 1]} : vector<64x1024xbf16> to vector<64x128xbf16>
    %c4 = arith.constant 4 : index
    %c0_23 = arith.constant 0 : index
    %c0_24 = arith.constant 0 : index
    %47 = vector.load %arg6[%c4, %c0_23, %c0_24] : memref<8x64x128xbf16, #tpu.memory_space<vmem>>, vector<1x64x128xbf16>
    %48 = vector.shape_cast %47 : vector<1x64x128xbf16> to vector<64x128xbf16>
    %49 = vector.shape_cast %46 : vector<64x128xbf16> to vector<1x64x128xbf16>
    tpu.vector_store %arg6[%c4, %c0_23, %c0_24], %49 {strides = array<i32>} : memref<8x64x128xbf16, #tpu.memory_space<vmem>>, vector<1x64x128xbf16>,
    %50 = vector.extract_strided_slice %29 {offsets = [0, 640], sizes = [64, 128], strides = [1, 1]} : vector<64x1024xbf16> to vector<64x128xbf16>
    %c5 = arith.constant 5 : index
    %c0_25 = arith.constant 0 : index
    %c0_26 = arith.constant 0 : index
    %51 = vector.load %arg6[%c5, %c0_25, %c0_26] : memref<8x64x128xbf16, #tpu.memory_space<vmem>>, vector<1x64x128xbf16>
    %52 = vector.shape_cast %51 : vector<1x64x128xbf16> to vector<64x128xbf16>
    %53 = vector.shape_cast %50 : vector<64x128xbf16> to vector<1x64x128xbf16>
    tpu.vector_store %arg6[%c5, %c0_25, %c0_26], %53 {strides = array<i32>} : memref<8x64x128xbf16, #tpu.memory_space<vmem>>, vector<1x64x128xbf16>,
    %54 = vector.extract_strided_slice %29 {offsets = [0, 768], sizes = [64, 128], strides = [1, 1]} : vector<64x1024xbf16> to vector<64x128xbf16>
    %c6 = arith.constant 6 : index
    %c0_27 = arith.constant 0 : index
    %c0_28 = arith.constant 0 : index
    %55 = vector.load %arg6[%c6, %c0_27, %c0_28] : memref<8x64x128xbf16, #tpu.memory_space<vmem>>, vector<1x64x128xbf16>
    %56 = vector.shape_cast %55 : vector<1x64x128xbf16> to vector<64x128xbf16>
    %57 = vector.shape_cast %54 : vector<64x128xbf16> to vector<1x64x128xbf16>
    tpu.vector_store %arg6[%c6, %c0_27, %c0_28], %57 {strides = array<i32>} : memref<8x64x128xbf16, #tpu.memory_space<vmem>>, vector<1x64x128xbf16>,
    %58 = vector.extract_strided_slice %29 {offsets = [0, 896], sizes = [64, 128], strides = [1, 1]} : vector<64x1024xbf16> to vector<64x128xbf16>
    %c7 = arith.constant 7 : index
    %c0_29 = arith.constant 0 : index
    %c0_30 = arith.constant 0 : index
    %59 = vector.load %arg6[%c7, %c0_29, %c0_30] : memref<8x64x128xbf16, #tpu.memory_space<vmem>>, vector<1x64x128xbf16>
    %60 = vector.shape_cast %59 : vector<1x64x128xbf16> to vector<64x128xbf16>
    %61 = vector.shape_cast %58 : vector<64x128xbf16> to vector<1x64x128xbf16>
    tpu.vector_store %arg6[%c7, %c0_29, %c0_30], %61 {strides = array<i32>} : memref<8x64x128xbf16, #tpu.memory_space<vmem>>, vector<1x64x128xbf16>,
    return
  }
  func.func @transform_0(%arg0: i32) -> (i32, i32, i32) {
    %c0_i32 = arith.constant 0 : i32
    %c0_i32_0 = arith.constant 0 : i32
    %c0_i32_1 = arith.constant 0 : i32
    return %arg0, %c0_i32, %c0_i32_0 : i32, i32, i32
  }
  func.func @transform_1(%arg0: i32) -> (i32, i32) {
    %c0_i32 = arith.constant 0 : i32
    %c0_i32_0 = arith.constant 0 : i32
    %c0_i32_1 = arith.constant 0 : i32
    return %c0_i32, %c0_i32_0 : i32, i32
  }
  func.func @transform_2(%arg0: i32) -> (i32, i32) {
    %c0_i32 = arith.constant 0 : i32
    %c0_i32_0 = arith.constant 0 : i32
    %c0_i32_1 = arith.constant 0 : i32
    return %c0_i32, %c0_i32_0 : i32, i32
  }
  func.func @transform_3(%arg0: i32) -> (i32, i32) {
    %c0_i32 = arith.constant 0 : i32
    %c0_i32_0 = arith.constant 0 : i32
    %c0_i32_1 = arith.constant 0 : i32
    return %c0_i32, %c0_i32_0 : i32, i32
  }
  func.func @transform_4(%arg0: i32) -> (i32, i32) {
    %c0_i32 = arith.constant 0 : i32
    %c0_i32_0 = arith.constant 0 : i32
    %c0_i32_1 = arith.constant 0 : i32
    return %c0_i32, %c0_i32_0 : i32, i32
  }
  func.func @transform_5(%arg0: i32) -> (i32, i32, i32) {
    %c0_i32 = arith.constant 0 : i32
    %c0_i32_0 = arith.constant 0 : i32
    %c0_i32_1 = arith.constant 0 : i32
    return %arg0, %c0_i32, %c0_i32_0 : i32, i32, i32
  }
}

module attributes {stable_mosaic.version = 11 : i64} {
  func.func @mlp_head_kernel(%arg0: i32, %arg1: memref<16x8192xbf16, #tpu.memory_space<vmem>>, %arg2: memref<8192x128xbf16, #tpu.memory_space<vmem>>, %arg3: memref<1x128xf32, #tpu.memory_space<vmem>>, %arg4: memref<128x8xf32, #tpu.memory_space<vmem>>, %arg5: memref<1x8xf32, #tpu.memory_space<vmem>>, %arg6: memref<8x1xf32, #tpu.memory_space<vmem>>, %arg7: memref<1x1xf32, #tpu.memory_space<vmem>>, %arg8: memref<16x1xf32, #tpu.memory_space<vmem>>) attributes {dimension_semantics = [#tpu.dimension_semantics<parallel>], iteration_bounds = array<i64: 1>, scalar_prefetch = 0 : i64, scratch_operands = 0 : i64, tpu.core_type = #tpu.core_type<tc>, window_params = [{transform_indices = @transform_0, window_bounds = array<i64: 16, 8192>}, {pipeline_mode = #tpu.pipeline_mode<synchronous>, transform_indices = @transform_1, window_bounds = array<i64: 8192, 128>}, {pipeline_mode = #tpu.pipeline_mode<synchronous>, transform_indices = @transform_2, window_bounds = array<i64: 1, 128>}, {pipeline_mode = #tpu.pipeline_mode<synchronous>, transform_indices = @transform_3, window_bounds = array<i64: 128, 8>}, {pipeline_mode = #tpu.pipeline_mode<synchronous>, transform_indices = @transform_4, window_bounds = array<i64: 1, 8>}, {pipeline_mode = #tpu.pipeline_mode<synchronous>, transform_indices = @transform_5, window_bounds = array<i64: 8, 1>}, {pipeline_mode = #tpu.pipeline_mode<synchronous>, transform_indices = @transform_6, window_bounds = array<i64: 1, 1>}, {transform_indices = @transform_7, window_bounds = array<i64: 16, 1>}]} {
    %c0 = arith.constant 0 : index
    %c0_0 = arith.constant 0 : index
    %0 = vector.load %arg1[%c0, %c0_0] : memref<16x8192xbf16, #tpu.memory_space<vmem>>, vector<16x8192xbf16>
    %c0_1 = arith.constant 0 : index
    %c0_2 = arith.constant 0 : index
    %1 = vector.load %arg2[%c0_1, %c0_2] : memref<8192x128xbf16, #tpu.memory_space<vmem>>, vector<8192x128xbf16>
    %cst = arith.constant dense<0.000000e+00> : vector<16x128xf32>
    %2 = tpu.matmul %0, %1, %cst {dimension_numbers = #tpu.dot_dimension_numbers<[1], [0], [0], [1], [0, 0, 1, 1], [], []>} : vector<16x8192xbf16>, vector<8192x128xbf16>, vector<16x128xf32> -> vector<16x128xf32>
    %c0_3 = arith.constant 0 : index
    %c0_4 = arith.constant 0 : index
    %3 = vector.load %arg3[%c0_3, %c0_4] : memref<1x128xf32, #tpu.memory_space<vmem>>, vector<1x128xf32>
    %4 = vector.broadcast %3 : vector<1x128xf32> to vector<16x128xf32>
    %5 = arith.addf %2, %4 : vector<16x128xf32>
    %cst_5 = arith.constant 0.000000e+00 : f32
    %6 = vector.broadcast %cst_5 : f32 to vector<16x128xf32>
    %7 = arith.maximumf %5, %6 : vector<16x128xf32>
    %c0_6 = arith.constant 0 : index
    %c0_7 = arith.constant 0 : index
    %8 = vector.load %arg4[%c0_6, %c0_7] : memref<128x8xf32, #tpu.memory_space<vmem>>, vector<128x8xf32>
    %cst_8 = arith.constant dense<0.000000e+00> : vector<16x8xf32>
    %9 = tpu.matmul %7, %8, %cst_8 {dimension_numbers = #tpu.dot_dimension_numbers<[1], [0], [0], [1], [0, 0, 1, 1], [], []>} : vector<16x128xf32>, vector<128x8xf32>, vector<16x8xf32> -> vector<16x8xf32>
    %c0_9 = arith.constant 0 : index
    %c0_10 = arith.constant 0 : index
    %10 = vector.load %arg5[%c0_9, %c0_10] : memref<1x8xf32, #tpu.memory_space<vmem>>, vector<1x8xf32>
    %11 = vector.broadcast %10 : vector<1x8xf32> to vector<16x8xf32>
    %12 = arith.addf %9, %11 : vector<16x8xf32>
    %13 = math.tanh %12 : vector<16x8xf32>
    %c0_11 = arith.constant 0 : index
    %c0_12 = arith.constant 0 : index
    %14 = vector.load %arg6[%c0_11, %c0_12] : memref<8x1xf32, #tpu.memory_space<vmem>>, vector<8x1xf32>
    %cst_13 = arith.constant dense<0.000000e+00> : vector<16x1xf32>
    %15 = tpu.matmul %13, %14, %cst_13 {dimension_numbers = #tpu.dot_dimension_numbers<[1], [0], [0], [1], [0, 0, 1, 1], [], []>} : vector<16x8xf32>, vector<8x1xf32>, vector<16x1xf32> -> vector<16x1xf32>
    %c0_14 = arith.constant 0 : index
    %c0_15 = arith.constant 0 : index
    %16 = vector.load %arg7[%c0_14, %c0_15] : memref<1x1xf32, #tpu.memory_space<vmem>>, vector<1x1xf32>
    %17 = vector.broadcast %16 : vector<1x1xf32> to vector<16x1xf32>
    %18 = arith.addf %15, %17 : vector<16x1xf32>
    %19 = arith.negf %18 : vector<16x1xf32>
    %20 = math.exp %19 : vector<16x1xf32>
    %cst_16 = arith.constant 1.000000e+00 : f32
    %21 = vector.broadcast %cst_16 : f32 to vector<16x1xf32>
    %22 = arith.addf %21, %20 : vector<16x1xf32>
    %23 = arith.divf %21, %22 : vector<16x1xf32>
    %c0_17 = arith.constant 0 : index
    %c0_18 = arith.constant 0 : index
    %24 = vector.load %arg8[%c0_17, %c0_18] : memref<16x1xf32, #tpu.memory_space<vmem>>, vector<16x1xf32>
    tpu.vector_store %arg8[%c0_17, %c0_18], %23 {strides = array<i32>} : memref<16x1xf32, #tpu.memory_space<vmem>>, vector<16x1xf32>,
    return
  }
  func.func @transform_0(%arg0: i32) -> (i32, i32) {
    %c0_i32 = arith.constant 0 : i32
    %c0_i32_0 = arith.constant 0 : i32
    return %arg0, %c0_i32 : i32, i32
  }
  func.func @transform_1(%arg0: i32) -> (i32, i32) {
    %c0_i32 = arith.constant 0 : i32
    %c0_i32_0 = arith.constant 0 : i32
    %c0_i32_1 = arith.constant 0 : i32
    return %c0_i32, %c0_i32_0 : i32, i32
  }
  func.func @transform_2(%arg0: i32) -> (i32, i32) {
    %c0_i32 = arith.constant 0 : i32
    %c0_i32_0 = arith.constant 0 : i32
    %c0_i32_1 = arith.constant 0 : i32
    return %c0_i32, %c0_i32_0 : i32, i32
  }
  func.func @transform_3(%arg0: i32) -> (i32, i32) {
    %c0_i32 = arith.constant 0 : i32
    %c0_i32_0 = arith.constant 0 : i32
    %c0_i32_1 = arith.constant 0 : i32
    return %c0_i32, %c0_i32_0 : i32, i32
  }
  func.func @transform_4(%arg0: i32) -> (i32, i32) {
    %c0_i32 = arith.constant 0 : i32
    %c0_i32_0 = arith.constant 0 : i32
    %c0_i32_1 = arith.constant 0 : i32
    return %c0_i32, %c0_i32_0 : i32, i32
  }
  func.func @transform_5(%arg0: i32) -> (i32, i32) {
    %c0_i32 = arith.constant 0 : i32
    %c0_i32_0 = arith.constant 0 : i32
    %c0_i32_1 = arith.constant 0 : i32
    return %c0_i32, %c0_i32_0 : i32, i32
  }
  func.func @transform_6(%arg0: i32) -> (i32, i32) {
    %c0_i32 = arith.constant 0 : i32
    %c0_i32_0 = arith.constant 0 : i32
    %c0_i32_1 = arith.constant 0 : i32
    return %c0_i32, %c0_i32_0 : i32, i32
  }
  func.func @transform_7(%arg0: i32) -> (i32, i32) {
    %c0_i32 = arith.constant 0 : i32
    %c0_i32_0 = arith.constant 0 : i32
    return %arg0, %c0_i32 : i32, i32
  }
}

</mosaic_0001>

<bundles_post_ra>
// kernel: model_ecg_forward_packed.2
= control target key start
LH: loop header
LB: loop body
LE: loop exit
PB: predicated region body
PF: predicated region fallthrough
CT: control target
= control target key end

     0   :  { %s3116_s18 = smov 0   ;;  %s5233_s0 = inlined_call_operand.vmem [shape: f32[2,8,1024], index: 0, kind: input, shape index: {}]   ;;  %s5234_s1 = inlined_call_operand.vmem [shape: f32[192,8], index: 1, kind: input, shape index: {}]   ;;  %s5235_s2 = inlined_call_operand.vmem [shape: f32[96,1], index: 2, kind: input, shape index: {}]   ;;  %s5236_s3 = inlined_call_operand.vmem [shape: f32[128,96], index: 3, kind: input, shape index: {}]   ;;  %s5237_s4 = inlined_call_operand.vmem [shape: f32[64,1], index: 4, kind: input, shape index: {}]   ;;  %s5238_s5 = inlined_call_operand.vmem [shape: bf16[16,64,128], index: 5, kind: output, shape index: {}]  }
   0x1 LB: > { %s3122_s19 = sadd.s32 4294967295, %s3083_s18   ;;  %p2580_p0 = scmp.ge.s32.totalorder %s3083_s18, 1  ;;  %s3083_s18 = sphi %s3116_s18, %s15_s18  }
   0x2   : > { %p187_p1 = scmp.lt.s32.totalorder %s3083_s18, 3 }
   0x4   : > { %p188_p2 = pnand %p2580_p0, %p187_p1 }
   0x6   : > { %191 = sbr.rel (%p188_p2) target bundleno = 826 (0x33a), region = 40 }
   0xb   : > { %p216_p3 = scmp.lt.s32.totalorder %s3122_s19, 1  ;;  %v3136_v0 = vld [vmem:[%s5234_s1] sm:$0xff]  ;;  %vm260_vm0 = vcmask 64512   ;;  %v3153_v5 = vld [vmem:[%s5234_s1 + $0x8] sm:$0xff]  ;;  %v3166_v6 = vld [vmem:[%s5234_s1 + $0x10] sm:$0xff]  ;;  %v3085_v13 = vmov 0  }
   0xc   : > { %v3179_v7 = vld [vmem:[%s5234_s1 + $0x18] sm:$0xff]  ;;  %v3192_v8 = vld [vmem:[%s5234_s1 + $0x20] sm:$0xff]  ;;  %v3205_v9 = vld [vmem:[%s5234_s1 + $0x28] sm:$0xff]  ;;  %3071 = vset.pattern.permute.xlu1 %v3085_v13  ;;  %3070 = vset.pattern.permute.xlu0 %v3085_v13  ;;  %vm1421_vm1 = vcmask 785408   ;;  %s2583_s6 = sshll.u32 %s3122_s19, 3 }
   0xd   : > { %s217_s20 = scalar_select %p216_p3, %s3122_s19, 1  ;;  %v3218_v10 = vld [vmem:[%s5234_s1 + $0x30] sm:$0xff]  ;;  %v3231_v11 = vld [vmem:[%s5234_s1 + $0x38] sm:$0xff]  ;;  %v1150_v12 = vld [vmem:[%s5235_s2 + $0x48] sm:$0xff]  ;;  %3072 = vset.pattern.permute.xlu2 %v3085_v13 }
   0xe   : > { %1200 = vperm.xlu1 %3071, %v1150_v12   ;;  %v3247_v14 = vld [vmem:[%s5234_s1 + $0x40] sm:$0xff]  ;;  %v1152_v15 = vld [vmem:[%s5235_s2 + $0x58] sm:$0xff]  ;;  %v3266_v17 = vld [vmem:[%s5234_s1 + $0x48] sm:$0xff]  ;;  %p222_p4 = scmp.lt.s32.totalorder %s2583_s6, 15 }
   0xf   : > { %s2964_s21 = sshll.u32 %s217_s20, 6  ;;  %v1149_v16 = vld [vmem:[%s5235_s2 + $0x40] sm:$0xff]  ;;  %1210 = vperm.xlu0 %3070, %v1152_v15   ;;  %v1151_v20 = vld [vmem:[%s5235_s2 + $0x50] sm:$0xff]  ;;  %v1148_v21 = vld [vmem:[%s5235_s2 + $0x38] sm:$0xff] }
  0x10   : > { %s3131_s24 = scalar_lea.vmem %s5233_s0, %s2964_s21  ;;  %v1145_v22 = vld [vmem:[%s5235_s2 + $0x20] sm:$0xff]  ;;  %1190 = vperm.xlu2 %3072, %v1148_v21   ;;  %v3290_v23 = vld [vmem:[%s5234_s1 + $0x50] sm:$0xff]  ;;  %v1146_v25 = vld [vmem:[%s5235_s2 + $0x28] sm:$0xff]  ;;  %s5527_s6 = smov (!%p222_p4, %s2583_s6), 15 }
  0x11   : > { %v228_v1 = vld [vmem:[%s3131_s24] sm:$0xff]  ;;  %v229_v2 = vld [vmem:[%s3131_s24 + $0x8] sm:$0xff]  ;;  %v230_v3 = vld [vmem:[%s3131_s24 + $0x10] sm:$0xff]  ;;  %s2965_s19 = sshll.u32 %s5527_s6, 5 }
  0x12   : > { %348 = vmatpush.msra.mxu0 %v228_v1  ;;  %437 = vmatpush.msra.mxu1 %v229_v2  ;;  %v231_v4 = vld [vmem:[%s3131_s24 + $0x18] sm:$0xff]  ;;  %v234_v18 = vld [vmem:[%s3131_s24 + $0x30] sm:$0xff]  ;;  %v1142_v26 = vld [vmem:[%s5235_s2 + $0x8] sm:$0xff]  ;;  %s4766_s9 = scalar_lea.vmem %s5238_s5, %s2965_s19 }
  0x13   : > { %526 = vmatpush.msra.mxu2 %v230_v3  ;;  %615 = vmatpush.msra.mxu3 %v231_v4  ;;  %v235_v19 = vld [vmem:[%s3131_s24 + $0x38] sm:$0xff]  ;;  %v1147_v24 = vld [vmem:[%s5235_s2 + $0x30] sm:$0xff]  ;;  %v232_v27 = vld [vmem:[%s3131_s24 + $0x20] sm:$0xff] }
  0x14   : > { %2586 = vmatmul.msk.f32.vlgmr.msra.gmra.mxu0 %vm260_vm0, %v3136_v0  ;;  %2610 = vmatmul.msk.f32.vlgmr.msra.gmra.mxu1 %vm260_vm0, %v3136_v0  ;;  %v233_v28 = vld [vmem:[%s3131_s24 + $0x28] sm:$0xff]  ;;  %v3314_v29 = vld [vmem:[%s5234_s1 + $0x58] sm:$0xff]  ;;  %v1143_v31 = vld [vmem:[%s5235_s2 + $0x10] sm:$0xff] }
  0x15   : > { %2634 = vmatmul.msk.f32.vlgmr.msra.gmra.mxu2 %vm260_vm0, %v3136_v0  ;;  %2658 = vmatmul.msk.f32.vlgmr.msra.gmra.mxu3 %vm260_vm0, %v3136_v0  ;;  %v1144_v30 = vld [vmem:[%s5235_s2 + $0x18] sm:$0xff]  ;;  %v3333_v32 = vld [vmem:[%s5234_s1 + $0x60] sm:$0xff]  ;;  %v3349_v34 = vld [vmem:[%s5234_s1 + $0x68] sm:$0xff] }
  0x16   : > { %1195 = vperm.xlu1 %3071, %v1149_v16   ;;  %882 = vmatpush.msrb.mxu2 %v234_v18  ;;  %v1141_v33 = vld [vmem:[%s5235_s2] sm:$0xff]  ;;  %v3362_v35 = vld [vmem:[%s5234_s1 + $0x70] sm:$0xff]  ;;  %v3375_v36 = vld [vmem:[%s5234_s1 + $0x78] sm:$0xff] }
  0x17   : > { %971 = vmatpush.msrb.mxu3 %v235_v19  ;;  %1205 = vperm.xlu0 %3070, %v1151_v20   ;;  %v3392_v39 = vld [vmem:[%s5234_s1 + $0x80] sm:$0xff]  ;;  %v3413_v44 = vld [vmem:[%s5234_s1 + $0x88] sm:$0xff]  ;;  %v3434_v49 = vld [vmem:[%s5234_s1 + $0x90] sm:$0xff] }
  0x18   : > { %1185 = vperm.xlu2 %3072, %v1147_v24   ;;  %704 = vmatpush.msrb.mxu0 %v232_v27  ;;  %5288 = vst [vmem:[#allocation2_spill] sm:$0xff] %v3392_v39  ;;  %v3455_v54 = vld [vmem:[%s5234_s1 + $0x98] sm:$0xff]  ;;  %v2054_v55 = vld [vmem:[%s5237_s4] sm:$0xff]  ;;  %v3503_v3 = vld [vmem:[%s5234_s1 + $0xa8] sm:$0xff] }
  0x19   : > { %793 = vmatpush.msrb.mxu1 %v233_v28  ;;  %5291 = vst [vmem:[#allocation5_spill] sm:$0xff] %v3413_v44  ;;  %v3479_v60 = vld [vmem:[%s5234_s1 + $0xa0] sm:$0xff]  ;;  %v2057_v61 = vld [vmem:[%s5237_s4 + $0x18] sm:$0xff]  ;;  %v2060_v4 = vld [vmem:[%s5237_s4 + $0x30] sm:$0xff] }
  0x1a   : > { %5294 = vst [vmem:[#allocation8_spill] sm:$0xff] %v3434_v49  ;;  %v3527_v18 = vld [vmem:[%s5234_s1 + $0xb0] sm:$0xff]  ;;  %v3548_v24 = vld [vmem:[%s5234_s1 + $0xb8] sm:$0xff] }
  0x1b   : > { %5297 = vst [vmem:[#allocation11_spill] sm:$0xff] %v3455_v54 }
  0x1c   : > { %2587 = vmatmul.msk.f32.gmra.mxu0 %vm260_vm0, %v3153_v5  ;;  %2611 = vmatmul.msk.f32.gmra.mxu1 %vm260_vm0, %v3153_v5  ;;  %5300 = vst [vmem:[#allocation14_spill] sm:$0xff] %v3479_v60 }
  0x1d   : > { %2635 = vmatmul.msk.f32.gmra.mxu2 %vm260_vm0, %v3153_v5  ;;  %2659 = vmatmul.msk.f32.gmra.mxu3 %vm260_vm0, %v3153_v5  ;;  %5303 = vst [vmem:[#allocation17_spill] sm:$0xff] %v3503_v3 }
  0x1e   : > { %1175 = vperm.xlu1 %3071, %v1145_v22   ;;  %5306 = vst [vmem:[#allocation20_spill] sm:$0xff] %v3527_v18 }
  0x1f   : > { %1180 = vperm.xlu0 %3070, %v1146_v25   ;;  %5309 = vst [vmem:[#allocation23_spill] sm:$0xff] %v3548_v24  ;;  %v2055_v25 = vld [vmem:[%s5237_s4 + $0x8] sm:$0xff] }
  0x20   : > { %1170 = vperm.xlu2 %3072, %v1144_v30  }
  0x24   : > { %2588 = vmatmul.msk.f32.gmra.mxu0 %vm260_vm0, %v3166_v6  ;;  %2612 = vmatmul.msk.f32.gmra.mxu1 %vm260_vm0, %v3166_v6 }
  0x25   : > { %2636 = vmatmul.msk.f32.gmra.mxu2 %vm260_vm0, %v3166_v6  ;;  %2660 = vmatmul.msk.f32.gmra.mxu3 %vm260_vm0, %v3166_v6 }
  0x26   : > { %1160 = vperm.xlu1 %3071, %v1142_v26  }
  0x27   : > { %1165 = vperm.xlu0 %3070, %v1143_v31   ;;  %v2058_v31 = vld [vmem:[%s5237_s4 + $0x20] sm:$0xff] }
  0x28   : > { %1155 = vperm.xlu2 %3072, %v1141_v33  }
  0x2c   : > { %2589 = vmatmul.msk.f32.gmra.mxu0 %vm260_vm0, %v3179_v7  ;;  %2613 = vmatmul.msk.f32.gmra.mxu1 %vm260_vm0, %v3179_v7 }
  0x2d   : > { %2637 = vmatmul.msk.f32.gmra.mxu2 %vm260_vm0, %v3179_v7  ;;  %2661 = vmatmul.msk.f32.gmra.mxu3 %vm260_vm0, %v3179_v7 }
  0x2e   : > { %2069 = vperm.xlu1 %3071, %v2055_v25  }
  0x2f   : > { %2064 = vperm.xlu0 %3070, %v2054_v55  }
  0x34   : > { %2590 = vmatmul.msk.f32.gmra.mxu0 %vm260_vm0, %v3192_v8  ;;  %2614 = vmatmul.msk.f32.gmra.mxu1 %vm260_vm0, %v3192_v8 }
  0x35   : > { %2638 = vmatmul.msk.f32.gmra.mxu2 %vm260_vm0, %v3192_v8  ;;  %2662 = vmatmul.msk.f32.gmra.mxu3 %vm260_vm0, %v3192_v8 }
  0x36   : > { %2084 = vperm.xlu1 %3071, %v2058_v31  }
  0x37   : > { %2079 = vperm.xlu0 %3070, %v2057_v61  }
  0x3c   : > { %2591 = vmatmul.msk.f32.gmra.mxu0 %vm260_vm0, %v3205_v9  ;;  %2615 = vmatmul.msk.f32.gmra.mxu1 %vm260_vm0, %v3205_v9 }
  0x3d   : > { %2639 = vmatmul.msk.f32.gmra.mxu2 %vm260_vm0, %v3205_v9  ;;  %2663 = vmatmul.msk.f32.gmra.mxu3 %vm260_vm0, %v3205_v9 }
  0x3f   : > { %2094 = vperm.xlu0 %3070, %v2060_v4  }
  0x44   : > { %2592 = vmatmul.msk.f32.gmra.mxu0 %vm260_vm0, %v3218_v10  ;;  %2616 = vmatmul.msk.f32.gmra.mxu1 %vm260_vm0, %v3218_v10 }
  0x45   : > { %2640 = vmatmul.msk.f32.gmra.mxu2 %vm260_vm0, %v3218_v10  ;;  %2664 = vmatmul.msk.f32.gmra.mxu3 %vm260_vm0, %v3218_v10 }
  0x4c   : > { %2593 = vmatmul.msk.f32.gmra.mxu0 %vm260_vm0, %v3231_v11  ;;  %2617 = vmatmul.msk.f32.gmra.mxu1 %vm260_vm0, %v3231_v11 }
  0x4d   : > { %2641 = vmatmul.msk.f32.gmra.mxu2 %vm260_vm0, %v3231_v11  ;;  %2665 = vmatmul.msk.f32.gmra.mxu3 %vm260_vm0, %v3231_v11 }
  0x54   : > { %2594 = vmatmul.msk.f32.gmra.mxu0 %vm260_vm0, %v3247_v14  ;;  %2618 = vmatmul.msk.f32.gmra.mxu1 %vm260_vm0, %v3247_v14 }
  0x55   : > { %2642 = vmatmul.msk.f32.gmra.mxu2 %vm260_vm0, %v3247_v14  ;;  %2666 = vmatmul.msk.f32.gmra.mxu3 %vm260_vm0, %v3247_v14 }
  0x5c   : > { %2595 = vmatmul.msk.f32.gmra.mxu0 %vm260_vm0, %v3266_v17  ;;  %2619 = vmatmul.msk.f32.gmra.mxu1 %vm260_vm0, %v3266_v17 }
  0x5d   : > { %2643 = vmatmul.msk.f32.gmra.mxu2 %vm260_vm0, %v3266_v17  ;;  %2667 = vmatmul.msk.f32.gmra.mxu3 %vm260_vm0, %v3266_v17 }
  0x64   : > { %2596 = vmatmul.msk.f32.gmra.mxu0 %vm260_vm0, %v3290_v23  ;;  %2620 = vmatmul.msk.f32.gmra.mxu1 %vm260_vm0, %v3290_v23 }
  0x65   : > { %2644 = vmatmul.msk.f32.gmra.mxu2 %vm260_vm0, %v3290_v23  ;;  %2668 = vmatmul.msk.f32.gmra.mxu3 %vm260_vm0, %v3290_v23 }
  0x6c   : > { %2597 = vmatmul.msk.f32.gmra.mxu0 %vm260_vm0, %v3314_v29  ;;  %2621 = vmatmul.msk.f32.gmra.mxu1 %vm260_vm0, %v3314_v29 }
  0x6d   : > { %2645 = vmatmul.msk.f32.gmra.mxu2 %vm260_vm0, %v3314_v29  ;;  %2669 = vmatmul.msk.f32.gmra.mxu3 %vm260_vm0, %v3314_v29 }
  0x74   : > { %2598 = vmatmul.msk.f32.gmra.mxu0 %vm260_vm0, %v3333_v32  ;;  %2622 = vmatmul.msk.f32.gmra.mxu1 %vm260_vm0, %v3333_v32 }
  0x75   : > { %2646 = vmatmul.msk.f32.gmra.mxu2 %vm260_vm0, %v3333_v32  ;;  %2670 = vmatmul.msk.f32.gmra.mxu3 %vm260_vm0, %v3333_v32 }
  0x7c   : > { %2599 = vmatmul.msk.f32.gmra.mxu0 %vm260_vm0, %v3349_v34  ;;  %2623 = vmatmul.msk.f32.gmra.mxu1 %vm260_vm0, %v3349_v34 }
  0x7d   : > { %2647 = vmatmul.msk.f32.gmra.mxu2 %vm260_vm0, %v3349_v34  ;;  %2671 = vmatmul.msk.f32.gmra.mxu3 %vm260_vm0, %v3349_v34 }
  0x84   : > { %2600 = vmatmul.msk.f32.gmra.mxu0 %vm260_vm0, %v3362_v35  ;;  %2624 = vmatmul.msk.f32.gmra.mxu1 %vm260_vm0, %v3362_v35 }
  0x85   : > { %2648 = vmatmul.msk.f32.gmra.mxu2 %vm260_vm0, %v3362_v35  ;;  %2672 = vmatmul.msk.f32.gmra.mxu3 %vm260_vm0, %v3362_v35 }
  0x8c   : > { %2601 = vmatmul.msk.f32.gmra.mxu0 %vm260_vm0, %v3375_v36  ;;  %2625 = vmatmul.msk.f32.gmra.mxu1 %vm260_vm0, %v3375_v36 }
  0x8d   : > { %2649 = vmatmul.msk.f32.gmra.mxu2 %vm260_vm0, %v3375_v36  ;;  %2673 = vmatmul.msk.f32.gmra.mxu3 %vm260_vm0, %v3375_v36 }
  0x91   : > { %v3385_v37 = vpop.f32.mrf.mxu0  ;;  %v3387_v38 = vpop.f32.mrf.mxu1 }
  0x94   : > { %2602 = vmatmul.msk.f32.gmra.mxu0 %vm260_vm0, %v3392_v39  ;;  %2626 = vmatmul.msk.f32.gmra.mxu1 %vm260_vm0, %v3392_v39 }
  0x95   : > { %2650 = vmatmul.msk.f32.gmra.mxu2 %vm260_vm0, %v3392_v39  ;;  %2674 = vmatmul.msk.f32.gmra.mxu3 %vm260_vm0, %v3392_v39 }
  0x98   : > { %v3402_v40 = vpop.f32.mrf.mxu2  ;;  %v3404_v41 = vpop.f32.mrf.mxu3 }
  0x99   : > { %5289 = vst [vmem:[#allocation3_spill] sm:$0xff] %v3402_v40  ;;  %v3406_v42 = vpop.f32.mrf.mxu0  ;;  %v3408_v43 = vpop.f32.mrf.mxu1 }
  0x9a   : > { %5290 = vst [vmem:[#allocation4_spill] sm:$0xff] %v3404_v41 }
  0x9c   : > { %2603 = vmatmul.msk.f32.gmra.mxu0 %vm260_vm0, %v3413_v44  ;;  %2627 = vmatmul.msk.f32.gmra.mxu1 %vm260_vm0, %v3413_v44 }
  0x9d   : > { %2651 = vmatmul.msk.f32.gmra.mxu2 %vm260_vm0, %v3413_v44  ;;  %2675 = vmatmul.msk.f32.gmra.mxu3 %vm260_vm0, %v3413_v44 }
  0xa0   : > { %v3423_v45 = vpop.f32.mrf.mxu2  ;;  %v3425_v46 = vpop.f32.mrf.mxu3 }
  0xa1   : > { %5292 = vst [vmem:[#allocation6_spill] sm:$0xff] %v3423_v45  ;;  %v3427_v47 = vpop.f32.mrf.mxu0  ;;  %v3429_v48 = vpop.f32.mrf.mxu1 }
  0xa2   : > { %5293 = vst [vmem:[#allocation7_spill] sm:$0xff] %v3425_v46 }
  0xa4   : > { %2604 = vmatmul.msk.f32.gmra.mxu0 %vm260_vm0, %v3434_v49  ;;  %2628 = vmatmul.msk.f32.gmra.mxu1 %vm260_vm0, %v3434_v49 }
  0xa5   : > { %2652 = vmatmul.msk.f32.gmra.mxu2 %vm260_vm0, %v3434_v49  ;;  %2676 = vmatmul.msk.f32.gmra.mxu3 %vm260_vm0, %v3434_v49 }
  0xa8   : > { %v3444_v50 = vpop.f32.mrf.mxu2  ;;  %v3446_v51 = vpop.f32.mrf.mxu3 }
  0xa9   : > { %5295 = vst [vmem:[#allocation9_spill] sm:$0xff] %v3444_v50  ;;  %v3448_v52 = vpop.f32.mrf.mxu0  ;;  %v3450_v53 = vpop.f32.mrf.mxu1 }
  0xaa   : > { %5296 = vst [vmem:[#allocation10_spill] sm:$0xff] %v3446_v51 }
  0xac   : > { %2605 = vmatmul.msk.f32.gmra.mxu0 %vm260_vm0, %v3455_v54  ;;  %2629 = vmatmul.msk.f32.gmra.mxu1 %vm260_vm0, %v3455_v54 }
  0xad   : > { %2653 = vmatmul.msk.f32.gmra.mxu2 %vm260_vm0, %v3455_v54  ;;  %2677 = vmatmul.msk.f32.gmra.mxu3 %vm260_vm0, %v3455_v54 }
  0xb0   : > { %v3468_v56 = vpop.f32.mrf.mxu2  ;;  %v3470_v57 = vpop.f32.mrf.mxu3 }
  0xb1   : > { %5298 = vst [vmem:[#allocation12_spill] sm:$0xff] %v3468_v56  ;;  %v3472_v58 = vpop.f32.mrf.mxu0  ;;  %v3474_v59 = vpop.f32.mrf.mxu1 }
  0xb2   : > { %5299 = vst [vmem:[#allocation13_spill] sm:$0xff] %v3470_v57 }
  0xb4   : > { %2606 = vmatmul.msk.f32.gmra.mxu0 %vm260_vm0, %v3479_v60  ;;  %2630 = vmatmul.msk.f32.gmra.mxu1 %vm260_vm0, %v3479_v60 }
  0xb5   : > { %2654 = vmatmul.msk.f32.gmra.mxu2 %vm260_vm0, %v3479_v60  ;;  %2678 = vmatmul.msk.f32.gmra.mxu3 %vm260_vm0, %v3479_v60 }
  0xb8   : > { %v3492_v62 = vpop.f32.mrf.mxu2  ;;  %v3494_v63 = vpop.f32.mrf.mxu3 }
  0xb9   : > { %5301 = vst [vmem:[#allocation15_spill] sm:$0xff] %v3492_v62  ;;  %v3496_v1 = vpop.f32.mrf.mxu0  ;;  %v3498_v2 = vpop.f32.mrf.mxu1 }
  0xba   : > { %5302 = vst [vmem:[#allocation16_spill] sm:$0xff] %v3494_v63 }
  0xbc   : > { %2607 = vmatmul.msk.f32.gmra.mxu0 %vm260_vm0, %v3503_v3  ;;  %2631 = vmatmul.msk.f32.gmra.mxu1 %vm260_vm0, %v3503_v3 }
  0xbd   : > { %2655 = vmatmul.msk.f32.gmra.mxu2 %vm260_vm0, %v3503_v3  ;;  %2679 = vmatmul.msk.f32.gmra.mxu3 %vm260_vm0, %v3503_v3 }
  0xc0   : > { %v3516_v12 = vpop.f32.mrf.mxu2  ;;  %v3518_v13 = vpop.f32.mrf.mxu3 }
  0xc1   : > { %5304 = vst [vmem:[#allocation18_spill] sm:$0xff] %v3516_v12  ;;  %v3520_v15 = vpop.f32.mrf.mxu0  ;;  %v3522_v16 = vpop.f32.mrf.mxu1 }
  0xc2   : > { %5305 = vst [vmem:[#allocation19_spill] sm:$0xff] %v3518_v13 }
  0xc4   : > { %2608 = vmatmul.msk.f32.gmra.mxu0 %vm260_vm0, %v3527_v18  ;;  %2632 = vmatmul.msk.f32.gmra.mxu1 %vm260_vm0, %v3527_v18 }
  0xc5   : > { %2656 = vmatmul.msk.f32.gmra.mxu2 %vm260_vm0, %v3527_v18  ;;  %2680 = vmatmul.msk.f32.gmra.mxu3 %vm260_vm0, %v3527_v18 }
  0xc8   : > { %v3537_v19 = vpop.f32.mrf.mxu2  ;;  %v3539_v20 = vpop.f32.mrf.mxu3 }
  0xc9   : > { %5307 = vst [vmem:[#allocation21_spill] sm:$0xff] %v3537_v19  ;;  %v3541_v21 = vpop.f32.mrf.mxu0  ;;  %v3543_v22 = vpop.f32.mrf.mxu1 }
  0xca   : > { %5308 = vst [vmem:[#allocation22_spill] sm:$0xff] %v3539_v20 }
  0xcc   : > { %2609 = vmatmul.msk.f32.gmra.mxu0 %vm260_vm0, %v3548_v24  ;;  %2633 = vmatmul.msk.f32.gmra.mxu1 %vm260_vm0, %v3548_v24 }
  0xcd   : > { %2657 = vmatmul.msk.f32.gmra.mxu2 %vm260_vm0, %v3548_v24  ;;  %2681 = vmatmul.msk.f32.gmra.mxu3 %vm260_vm0, %v3548_v24 }
  0xd0   : > { %v3561_v26 = vpop.f32.mrf.mxu2  ;;  %v3563_v27 = vpop.f32.mrf.mxu3 }
  0xd1   : > { %5310 = vst [vmem:[#allocation24_spill] sm:$0xff] %v3561_v26  ;;  %v3565_v28 = vpop.f32.mrf.mxu0  ;;  %v3567_v30 = vpop.f32.mrf.mxu1 }
  0xd2   : > { %5311 = vst [vmem:[#allocation25_spill] sm:$0xff] %v3563_v27 }
  0xd4   : > { %2682 = vmatmul.msk.f32.vlgmr.msrb.gmra.mxu0 %vm260_vm0, %v3136_v0  ;;  %2706 = vmatmul.msk.f32.vlgmr.msrb.gmra.mxu1 %vm260_vm0, %v3136_v0 }
  0xd5   : > { %2730 = vmatmul.msk.f32.vlgmr.msrb.gmra.mxu2 %vm260_vm0, %v3136_v0  ;;  %2754 = vmatmul.msk.f32.vlgmr.msrb.gmra.mxu3 %vm260_vm0, %v3136_v0  ;;  %v2061_v0 = vld [vmem:[%s5237_s4 + $0x38] sm:$0xff] }
  0xd6   : > { %2099 = vperm.xlu1 %3071, %v2061_v0  }
  0xd8   : > { %v3580_v33 = vpop.f32.mrf.mxu2  ;;  %v3582_v55 = vpop.f32.mrf.mxu3 }
  0xd9   : > { %5312 = vst [vmem:[#allocation26_spill] sm:$0xff] %v3580_v33  ;;  %v3584_v61 = vpop.f32.mrf.mxu0  ;;  %v3586_v4 = vpop.f32.mrf.mxu1 }
  0xda   : > { %5313 = vst [vmem:[#allocation27_spill] sm:$0xff] %v3582_v55 }
  0xdc   : > { %2683 = vmatmul.msk.f32.gmra.mxu0 %vm260_vm0, %v3153_v5  ;;  %2707 = vmatmul.msk.f32.gmra.mxu1 %vm260_vm0, %v3153_v5 }
  0xdd   : > { %2731 = vmatmul.msk.f32.gmra.mxu2 %vm260_vm0, %v3153_v5  ;;  %2755 = vmatmul.msk.f32.gmra.mxu3 %vm260_vm0, %v3153_v5 }
  0xe0   : > { %v3599_v25 = vpop.f32.mrf.mxu2  ;;  %v3601_v31 = vpop.f32.mrf.mxu3 }
  0xe1   : > { %v3603_v24 = vpop.f32.mrf.mxu0  ;;  %v3605_v18 = vpop.f32.mrf.mxu1 }
  0xe4   : > { %2684 = vmatmul.msk.f32.gmra.mxu0 %vm260_vm0, %v3166_v6  ;;  %2708 = vmatmul.msk.f32.gmra.mxu1 %vm260_vm0, %v3166_v6 }
  0xe5   : > { %2732 = vmatmul.msk.f32.gmra.mxu2 %vm260_vm0, %v3166_v6  ;;  %2756 = vmatmul.msk.f32.gmra.mxu3 %vm260_vm0, %v3166_v6 }
  0xe8   : > { %v3615_v5 = vpop.f32.mrf.mxu2  ;;  %v3617_v0 = vpop.f32.mrf.mxu3 }
  0xe9   : > { %v3619_v3 = vpop.f32.mrf.mxu0  ;;  %v3621_v60 = vpop.f32.mrf.mxu1 }
  0xec   : > { %2685 = vmatmul.msk.f32.gmra.mxu0 %vm260_vm0, %v3179_v7  ;;  %2709 = vmatmul.msk.f32.gmra.mxu1 %vm260_vm0, %v3179_v7 }
  0xed   : > { %2733 = vmatmul.msk.f32.gmra.mxu2 %vm260_vm0, %v3179_v7  ;;  %2757 = vmatmul.msk.f32.gmra.mxu3 %vm260_vm0, %v3179_v7 }
  0xf0   : > { %v3631_v6 = vpop.f32.mrf.mxu2  ;;  %v3633_v54 = vpop.f32.mrf.mxu3 }
  0xf1   : > { %5314 = vst [vmem:[#allocation28_spill] sm:$0xff] %v3631_v6  ;;  %v3635_v49 = vpop.f32.mrf.mxu0  ;;  %v3637_v41 = vpop.f32.mrf.mxu1 }
  0xf2   : > { %5315 = vst [vmem:[#allocation29_spill] sm:$0xff] %v3633_v54 }
  0xf3   : > { %5316 = vst [vmem:[#allocation30_spill] sm:$0xff] %v3637_v41 }
  0xf4   : > { %2686 = vmatmul.msk.f32.gmra.mxu0 %vm260_vm0, %v3192_v8  ;;  %2710 = vmatmul.msk.f32.gmra.mxu1 %vm260_vm0, %v3192_v8 }
  0xf5   : > { %2734 = vmatmul.msk.f32.gmra.mxu2 %vm260_vm0, %v3192_v8  ;;  %2758 = vmatmul.msk.f32.gmra.mxu3 %vm260_vm0, %v3192_v8 }
  0xf8   : > { %v3647_v7 = vpop.f32.mrf.mxu2  ;;  %v3649_v40 = vpop.f32.mrf.mxu3 }
  0xf9   : > { %5317 = vst [vmem:[#allocation31_spill] sm:$0xff] %v3647_v7  ;;  %v3651_v46 = vpop.f32.mrf.mxu0  ;;  %v3653_v45 = vpop.f32.mrf.mxu1 }
  0xfa   : > { %5318 = vst [vmem:[#allocation32_spill] sm:$0xff] %v3649_v40 }
  0xfc   : > { %2687 = vmatmul.msk.f32.gmra.mxu0 %vm260_vm0, %v3205_v9  ;;  %2711 = vmatmul.msk.f32.gmra.mxu1 %vm260_vm0, %v3205_v9 }
  0xfd   : > { %2735 = vmatmul.msk.f32.gmra.mxu2 %vm260_vm0, %v3205_v9  ;;  %2759 = vmatmul.msk.f32.gmra.mxu3 %vm260_vm0, %v3205_v9 }
 0x100   : > { %v3663_v8 = vpop.f32.mrf.mxu2  ;;  %v3665_v7 = vpop.f32.mrf.mxu3 }
 0x101   : > { %5319 = vst [vmem:[#allocation33_spill] sm:$0xff] %v3663_v8  ;;  %v3667_v40 = vpop.f32.mrf.mxu0  ;;  %v3669_v51 = vpop.f32.mrf.mxu1 }
 0x102   : > { %5320 = vst [vmem:[#allocation34_spill] sm:$0xff] %v3665_v7  ;;  %v1061_v33 = vmax.f32 %v3427_v47, %v3667_v40 }
 0x104   : > { %2688 = vmatmul.msk.f32.gmra.mxu0 %vm260_vm0, %v3218_v10  ;;  %2712 = vmatmul.msk.f32.gmra.mxu1 %vm260_vm0, %v3218_v10 }
 0x105   : > { %2736 = vmatmul.msk.f32.gmra.mxu2 %vm260_vm0, %v3218_v10  ;;  %2760 = vmatmul.msk.f32.gmra.mxu3 %vm260_vm0, %v3218_v10  ;;  %v2056_v10 = vld [vmem:[%s5237_s4 + $0x10] sm:$0xff] }
 0x106   : > { %2074 = vperm.xlu2 %3072, %v2056_v10  }
 0x108   : > { %v3679_v9 = vpop.f32.mrf.mxu2  ;;  %v3681_v8 = vpop.f32.mrf.mxu3 }
 0x109   : > { %5321 = vst [vmem:[#allocation35_spill] sm:$0xff] %v3679_v9  ;;  %v3683_v7 = vpop.f32.mrf.mxu0  ;;  %v3685_v50 = vpop.f32.mrf.mxu1 }
 0x10a   : > { %5322 = vst [vmem:[#allocation36_spill] sm:$0xff] %v3681_v8 }
 0x10c   : > { %2689 = vmatmul.msk.f32.gmra.mxu0 %vm260_vm0, %v3231_v11  ;;  %2713 = vmatmul.msk.f32.gmra.mxu1 %vm260_vm0, %v3231_v11 }
 0x10d   : > { %2737 = vmatmul.msk.f32.gmra.mxu2 %vm260_vm0, %v3231_v11  ;;  %2761 = vmatmul.msk.f32.gmra.mxu3 %vm260_vm0, %v3231_v11  ;;  %v2059_v11 = vld [vmem:[%s5237_s4 + $0x28] sm:$0xff] }
 0x10e   : > { %2089 = vperm.xlu2 %3072, %v2059_v11  }
 0x110   : > { %v3698_v8 = vpop.f32.mrf.mxu2  ;;  %v3700_v9 = vpop.f32.mrf.mxu3 }
 0x111   : > { %5323 = vst [vmem:[#allocation37_spill] sm:$0xff] %v3698_v8  ;;  %v3702_v57 = vpop.f32.mrf.mxu0  ;;  %v3704_v56 = vpop.f32.mrf.mxu1 }
 0x112   : > { %5324 = vst [vmem:[#allocation38_spill] sm:$0xff] %v3700_v9 }
 0x114   : > { %2690 = vmatmul.msk.f32.gmra.mxu0 %vm260_vm0, %v3247_v14  ;;  %2714 = vmatmul.msk.f32.gmra.mxu1 %vm260_vm0, %v3247_v14 }
 0x115   : > { %2738 = vmatmul.msk.f32.gmra.mxu2 %vm260_vm0, %v3247_v14  ;;  %2762 = vmatmul.msk.f32.gmra.mxu3 %vm260_vm0, %v3247_v14 }
 0x118   : > { %v3717_v10 = vpop.f32.mrf.mxu2  ;;  %v3719_v9 = vpop.f32.mrf.mxu3 }
 0x119   : > { %5325 = vst [vmem:[#allocation39_spill] sm:$0xff] %v3717_v10  ;;  %v3721_v8 = vpop.f32.mrf.mxu0  ;;  %v3723_v63 = vpop.f32.mrf.mxu1 }
 0x11a   : > { %5326 = vst [vmem:[#allocation40_spill] sm:$0xff] %v3719_v9  ;;  %v3745_v10 = vpop.permute.xlu0 %1210 }
 0x11c   : > { %2691 = vmatmul.msk.f32.gmra.mxu0 %vm260_vm0, %v3266_v17  ;;  %2715 = vmatmul.msk.f32.gmra.mxu1 %vm260_vm0, %v3266_v17 }
 0x11d   : > { %2739 = vmatmul.msk.f32.gmra.mxu2 %vm260_vm0, %v3266_v17  ;;  %2763 = vmatmul.msk.f32.gmra.mxu3 %vm260_vm0, %v3266_v17 }
 0x120   : > { %v3733_v14 = vpop.f32.mrf.mxu2  ;;  %v3735_v11 = vpop.f32.mrf.mxu3 }
 0x121   : > { %5327 = vst [vmem:[#allocation41_spill] sm:$0xff] %v3733_v14  ;;  %v3737_v9 = vpop.f32.mrf.mxu0  ;;  %v3739_v62 = vpop.f32.mrf.mxu1 }
 0x122   : > { %5328 = vst [vmem:[#allocation42_spill] sm:$0xff] %v3735_v11 }
 0x124   : > { %2692 = vmatmul.msk.f32.gmra.mxu0 %vm260_vm0, %v3290_v23  ;;  %2716 = vmatmul.msk.f32.gmra.mxu1 %vm260_vm0, %v3290_v23 }
 0x125   : > { %2740 = vmatmul.msk.f32.gmra.mxu2 %vm260_vm0, %v3290_v23  ;;  %2764 = vmatmul.msk.f32.gmra.mxu3 %vm260_vm0, %v3290_v23  ;;  %v3767_v23 = vpop.permute.xlu0 %1205 }
 0x128   : > { %v3751_v17 = vpop.f32.mrf.mxu2  ;;  %v3753_v44 = vpop.f32.mrf.mxu3 }
 0x129   : > { %5329 = vst [vmem:[#allocation43_spill] sm:$0xff] %v3751_v17  ;;  %v3755_v13 = vpop.f32.mrf.mxu0  ;;  %v3757_v11 = vpop.f32.mrf.mxu1 }
 0x12a   : > { %5330 = vst [vmem:[#allocation44_spill] sm:$0xff] %v3753_v44 }
 0x12c   : > { %2693 = vmatmul.msk.f32.gmra.mxu0 %vm260_vm0, %v3314_v29  ;;  %2717 = vmatmul.msk.f32.gmra.mxu1 %vm260_vm0, %v3314_v29 }
 0x12d   : > { %2741 = vmatmul.msk.f32.gmra.mxu2 %vm260_vm0, %v3314_v29  ;;  %2765 = vmatmul.msk.f32.gmra.mxu3 %vm260_vm0, %v3314_v29 }
 0x130   : > { %v3769_v12 = vpop.f32.mrf.mxu2  ;;  %v3771_v14 = vpop.f32.mrf.mxu3 }
 0x131   : > { %5331 = vst [vmem:[#allocation45_spill] sm:$0xff] %v3769_v12  ;;  %v3773_v20 = vpop.f32.mrf.mxu0  ;;  %v3775_v44 = vpop.f32.mrf.mxu1 }
 0x132   : > { %5332 = vst [vmem:[#allocation46_spill] sm:$0xff] %v3771_v14  ;;  %v3793_v14 = vpop.permute.xlu0 %1180 }
 0x133   : > { %5335 = vst [vmem:[#allocation49_spill] sm:$0xff] %v3793_v14 }
 0x134   : > { %2694 = vmatmul.msk.f32.gmra.mxu0 %vm260_vm0, %v3333_v32  ;;  %2718 = vmatmul.msk.f32.gmra.mxu1 %vm260_vm0, %v3333_v32 }
 0x135   : > { %2742 = vmatmul.msk.f32.gmra.mxu2 %vm260_vm0, %v3333_v32  ;;  %2766 = vmatmul.msk.f32.gmra.mxu3 %vm260_vm0, %v3333_v32  ;;  %v3803_v32 = vpop.permute.xlu1 %1200 }
 0x138   : > { %v3785_v29 = vpop.f32.mrf.mxu2  ;;  %v3787_v19 = vpop.f32.mrf.mxu3 }
 0x139   : > { %5333 = vst [vmem:[#allocation47_spill] sm:$0xff] %v3785_v29  ;;  %v3789_v17 = vpop.f32.mrf.mxu0  ;;  %v3791_v27 = vpop.f32.mrf.mxu1 }
 0x13a   : > { %5334 = vst [vmem:[#allocation48_spill] sm:$0xff] %v3787_v19  ;;  %v3809_v19 = vpop.permute.xlu2 %1190  ;;  %v3819_v29 = vpop.permute.xlu0 %1165 }
 0x13b   : > { %5336 = vst [vmem:[#allocation50_spill] sm:$0xff] %v3809_v19 }
 0x13c   : > { %2695 = vmatmul.msk.f32.gmra.mxu0 %vm260_vm0, %v3349_v34  ;;  %2719 = vmatmul.msk.f32.gmra.mxu1 %vm260_vm0, %v3349_v34  ;;  %5337 = vst [vmem:[#allocation51_spill] sm:$0xff] %v3819_v29 }
 0x13d   : > { %2743 = vmatmul.msk.f32.gmra.mxu2 %vm260_vm0, %v3349_v34  ;;  %2767 = vmatmul.msk.f32.gmra.mxu3 %vm260_vm0, %v3349_v34  ;;  %v1062_v34 = vmax.f32 %v3429_v48, %v3669_v51 }
 0x13f   : > { %v3845_v48 = vadd.f32 %v3819_v29, %v1062_v34  ;;  %v1118_v34 = vmax.f32 %v3586_v4, %v3791_v27  ;;  %v1109_v27 = vmax.f32 %v3565_v28, %v3773_v20 }
 0x140   : > { %v3805_v26 = vpop.f32.mrf.mxu2  ;;  %v3807_v12 = vpop.f32.mrf.mxu3 }
 0x141   : > { %v416_v55 = vpop.f32.mrf.mxu0  ;;  %v505_v14 = vpop.f32.mrf.mxu1 }
 0x142   : > { %v1125_v39 = vmax.f32 %v3603_v24, %v416_v55  ;;  %v1126_v51 = vmax.f32 %v3605_v18, %v505_v14  ;;  %v1093_v24 = vmax.f32 %v3520_v15, %v3737_v9  ;;  %v3847_v18 = vpop.permute.xlu1 %1195  ;;  %v1085_v15 = vmax.f32 %v3496_v1, %v3721_v8  ;;  %v3862_v41 = vpop.permute.xlu2 %1185 }
 0x143   : > { %5338 = vst [vmem:[#allocation52_spill] sm:$0xff] %v3847_v18  ;;  %v1117_v9 = vmax.f32 %v3584_v61, %v3789_v17  ;;  %v1110_v61 = vmax.f32 %v3567_v30, %v3775_v44 }
 0x144   : > { %2696 = vmatmul.msk.f32.gmra.mxu0 %vm260_vm0, %v3362_v35  ;;  %2720 = vmatmul.msk.f32.gmra.mxu1 %vm260_vm0, %v3362_v35 }
 0x145   : > { %2744 = vmatmul.msk.f32.gmra.mxu2 %vm260_vm0, %v3362_v35  ;;  %2768 = vmatmul.msk.f32.gmra.mxu3 %vm260_vm0, %v3362_v35  ;;  %v3836_v35 = vadd.f32 %v3819_v29, %v1061_v33  ;;  %v1293_v29 = vadd.f32 %v3767_v23, %v1125_v39  ;;  %v1294_v33 = vadd.f32 %v3767_v23, %v1126_v51 }
 0x146   : > { %v1094_v39 = vmax.f32 %v3522_v16, %v3739_v62  ;;  %v1102_v62 = vmax.f32 %v3543_v22, %v3757_v11  ;;  %v5339_v22 = vld [vmem:[#allocation28_spill] sm:$0xff]  ;;  %v1278_v51 = vadd.f32 %v3847_v18, %v1110_v61 }
 0x147   : > { %v1389_v44 = vmax.f32 %v1293_v29, 0.0  ;;  %v1390_v30 = vmax.f32 %v1294_v33, 0.0  ;;  %v1277_v29 = vadd.f32 %v3847_v18, %v1109_v27 }
 0x148   : > { %v594_v54 = vpop.f32.mrf.mxu2  ;;  %v683_v6 = vpop.f32.mrf.mxu3 }
 0x149   : > { %v419_v55 = vpop.f32.mrf.mxu0  ;;  %v508_v19 = vpop.f32.mrf.mxu1  ;;  %v1127_v16 = vmax.f32 %v3615_v5, %v594_v54  ;;  %v1128_v17 = vmax.f32 %v3617_v0, %v683_v6  ;;  %v5340_v5 = vld [vmem:[#allocation29_spill] sm:$0xff] }
 0x14a   : > { %v1133_v40 = vmax.f32 %v3619_v3, %v419_v55  ;;  %v1134_v47 = vmax.f32 %v3621_v60, %v508_v19  ;;  %v1086_v60 = vmax.f32 %v3498_v2, %v3723_v63  ;;  %v3874_v19 = vadd.f32 %v3862_v41, %v1093_v24  ;;  %v3913_v24 = vpop.permute.xlu1 %1175  ;;  %v5341_v55 = vld [vmem:[#allocation50_spill] sm:$0xff] }
 0x14b   : > { %v1101_v2 = vmax.f32 %v3541_v21, %v3755_v13  ;;  %v1119_v13 = vmax.f32 %v3599_v25, %v3805_v26  ;;  %v1120_v21 = vmax.f32 %v3601_v31, %v3807_v12  ;;  %v1295_v26 = vadd.f32 %v3767_v23, %v1127_v16  ;;  %v5345_v16 = vld [vmem:[#allocation48_spill] sm:$0xff] }
 0x14c   : > { %v1301_v14 = vadd.f32 %v3745_v10, %v1133_v40  ;;  %v1302_v3 = vadd.f32 %v3745_v10, %v1134_v47  ;;  %2697 = vmatmul.msk.f32.gmra.mxu0 %vm260_vm0, %v3375_v36  ;;  %2721 = vmatmul.msk.f32.gmra.mxu1 %vm260_vm0, %v3375_v36  ;;  %v1286_v40 = vadd.f32 %v3803_v32, %v1118_v34 }
 0x14d   : > { %2745 = vmatmul.msk.f32.gmra.mxu2 %vm260_vm0, %v3375_v36  ;;  %2769 = vmatmul.msk.f32.gmra.mxu3 %vm260_vm0, %v3375_v36  ;;  %v1285_v36 = vadd.f32 %v3803_v32, %v1117_v9  ;;  %v3905_v47 = vadd.f32 %v3862_v41, %v1094_v39  ;;  %v1296_v12 = vadd.f32 %v3767_v23, %v1128_v17  ;;  %v5342_v9 = vld [vmem:[#allocation2_spill] sm:$0xff]  ;;  %v5346_v17 = vld [vmem:[#allocation27_spill] sm:$0xff] }
 0x14e   : > { %v1397_v4 = vmax.f32 %v1301_v14, 0.0  ;;  %v1398_v63 = vmax.f32 %v1302_v3, 0.0  ;;  %v1269_v33 = vadd.f32 %v5341_v55, %v1101_v2  ;;  %v1270_v14 = vadd.f32 %v5341_v55, %v1102_v62  ;;  %v5344_v2 = vld [vmem:[#allocation26_spill] sm:$0xff] }
 0x14f   : > { %v1381_v34 = vmax.f32 %v1285_v36, 0.0  ;;  %v1382_v3 = vmax.f32 %v1286_v40, 0.0  ;;  %v1287_v39 = vadd.f32 %v3803_v32, %v1119_v13  ;;  %v1288_v27 = vadd.f32 %v3803_v32, %v1120_v21 }
 0x150   : > { %v597_v20 = vpop.f32.mrf.mxu2  ;;  %v686_v28 = vpop.f32.mrf.mxu3  ;;  %1474 = vmatpush.msra.mxu0 %v1397_v4  ;;  %1539 = vmatpush.msra.mxu1 %v1398_v63  ;;  %v5343_v63 = vld [vmem:[#allocation47_spill] sm:$0xff]  ;;  %v1373_v36 = vmax.f32 %v1277_v29, 0.0  ;;  %v1374_v40 = vmax.f32 %v1278_v51, 0.0  ;;  %v1391_v21 = vmax.f32 %v1295_v26, 0.0  ;;  %v1365_v1 = vmax.f32 %v1269_v33, 0.0 }
 0x151   : > { %v1135_v54 = vmax.f32 %v5339_v22, %v597_v20  ;;  %v1136_v0 = vmax.f32 %v5340_v5, %v686_v28  ;;  %v3900_v6 = vpop.f32.mrf.mxu0  ;;  %v3902_v11 = vpop.f32.mrf.mxu1  ;;  %v1111_v62 = vmax.f32 %v5344_v2, %v5343_v63  ;;  %v1112_v20 = vmax.f32 %v5346_v17, %v5345_v16  ;;  %v5349_v5 = vld [vmem:[#allocation24_spill] sm:$0xff]  ;;  %v5357_v2 = vld [vmem:[#allocation22_spill] sm:$0xff] }
 0x152   : > { %1475 = vmatpush.msra.mxu0 %v1389_v44  ;;  %1540 = vmatpush.msra.mxu1 %v1390_v30  ;;  %v3931_v28 = vpop.permute.xlu2 %1170  ;;  %v5347_v44 = vld [vmem:[#allocation49_spill] sm:$0xff]  ;;  %v1392_v22 = vmax.f32 %v1296_v12, 0.0  ;;  %v1366_v8 = vmax.f32 %v1270_v14, 0.0  ;;  %v5356_v63 = vld [vmem:[#allocation44_spill] sm:$0xff]  ;;  %v1358_v14 = vmax.f32 %v3905_v47, 0.0 }
 0x153   : > { %v1303_v25 = vadd.f32 %v3745_v10, %v1135_v54  ;;  %v1304_v31 = vadd.f32 %v3745_v10, %v1136_v0  ;;  %v1253_v30 = vadd.f32 %v5347_v44, %v1085_v15  ;;  %v1254_v13 = vadd.f32 %v5347_v44, %v1086_v60  ;;  %v5348_v54 = vld [vmem:[#allocation45_spill] sm:$0xff]  ;;  %v5354_v15 = vld [vmem:[#allocation43_spill] sm:$0xff] }
 0x154   : > { %2698 = vmatmul.msk.f32.gmra.mxu0 %vm260_vm0, %v5342_v9  ;;  %2722 = vmatmul.msk.f32.gmra.mxu1 %vm260_vm0, %v5342_v9  ;;  %v1103_v0 = vmax.f32 %v5349_v5, %v5348_v54  ;;  %v5355_v60 = vld [vmem:[#allocation21_spill] sm:$0xff]  ;;  %v1096_v16 = vmax.f32 %v5357_v2, %v5356_v63  ;;  %v1279_v17 = vadd.f32 %v3847_v18, %v1111_v62  ;;  %v5362_v62 = vld [vmem:[#allocation42_spill] sm:$0xff] }
 0x155   : > { %v1399_v61 = vmax.f32 %v1303_v25, 0.0  ;;  %v1400_v4 = vmax.f32 %v1304_v31, 0.0  ;;  %2746 = vmatmul.msk.f32.gmra.mxu2 %vm260_vm0, %v5342_v9  ;;  %2770 = vmatmul.msk.f32.gmra.mxu3 %vm260_vm0, %v5342_v9  ;;  %v5350_v25 = vld [vmem:[#allocation46_spill] sm:$0xff]  ;;  %v5351_v31 = vld [vmem:[#allocation25_spill] sm:$0xff]  ;;  %v1280_v33 = vadd.f32 %v3847_v18, %v1112_v20  ;;  %v5363_v20 = vld [vmem:[#allocation19_spill] sm:$0xff] }
 0x156   : > { %1476 = vmatpush.msra.mxu0 %v1381_v34  ;;  %1541 = vmatpush.msra.mxu1 %v1382_v3  ;;  %v1104_v29 = vmax.f32 %v5351_v31, %v5350_v25  ;;  %v1095_v34 = vmax.f32 %v5355_v60, %v5354_v15  ;;  %v1357_v3 = vmax.f32 %v3874_v19, 0.0  ;;  %v5359_v19 = vmax.f32 %v3474_v59, %v3704_v56  ;;  %v5366_v25 = vld [vmem:[#allocation5_spill] sm:$0xff]  ;;  %v5369_v60 = vld [vmem:[#allocation40_spill] sm:$0xff] }
 0x157   : > { %1604 = vmatpush.msra.mxu2 %v1399_v61  ;;  %1669 = vmatpush.msra.mxu3 %v1400_v4  ;;  %v1383_v61 = vmax.f32 %v1287_v39, 0.0  ;;  %v1384_v4 = vmax.f32 %v1288_v27, 0.0  ;;  %v5360_v27 = vld [vmem:[#allocation41_spill] sm:$0xff]  ;;  %v1088_v54 = vmax.f32 %v5363_v20, %v5362_v62  ;;  %v1271_v47 = vadd.f32 %v5341_v55, %v1103_v0  ;;  %v5376_v20 = vld [vmem:[#allocation12_spill] sm:$0xff] }
 0x158   : > { %1477 = vmatpush.msra.mxu0 %v1373_v36  ;;  %1542 = vmatpush.msra.mxu1 %v1374_v40  ;;  %v3942_v51 = vpop.f32.mrf.mxu2  ;;  %v3944_v9 = vpop.f32.mrf.mxu3  ;;  %v5358_v36 = vmax.f32 %v3472_v58, %v3702_v57  ;;  %v1246_v39 = vadd.f32 %v3913_v24, %v5359_v19  ;;  %v1272_v5 = vadd.f32 %v5341_v55, %v1104_v29  ;;  %v1349_v0 = vmax.f32 %v1253_v30, 0.0  ;;  %v5370_v30 = vld [vmem:[#allocation16_spill] sm:$0xff]  ;;  %v5375_v62 = vld [vmem:[#allocation37_spill] sm:$0xff] }
 0x159   : > { %5352 = vst [vmem:[#allocation28_spill] sm:$0xff] %v3942_v51  ;;  %1605 = vmatpush.msra.mxu2 %v1391_v21  ;;  %1670 = vmatpush.msra.mxu3 %v1392_v22  ;;  %v3948_v26 = vpop.f32.mrf.mxu0  ;;  %v3950_v12 = vpop.f32.mrf.mxu1  ;;  %v5361_v21 = vld [vmem:[#allocation18_spill] sm:$0xff]  ;;  %v5364_v57 = vmax.f32 %v3448_v52, %v3683_v7  ;;  %v5365_v58 = vmax.f32 %v3450_v53, %v3685_v50  ;;  %v1350_v31 = vmax.f32 %v1254_v13, 0.0  ;;  %v1375_v50 = vmax.f32 %v1279_v17, 0.0  ;;  %v5367_v7 = vld [vmem:[#allocation39_spill] sm:$0xff] }
 0x15a   : > { %5353 = vst [vmem:[#allocation29_spill] sm:$0xff] %v3944_v9  ;;  %1478 = vmatpush.msra.mxu0 %v1365_v1  ;;  %1543 = vmatpush.msra.mxu1 %v1366_v8  ;;  %v1245_v40 = vadd.f32 %v3913_v24, %v5358_v36  ;;  %v1087_v22 = vmax.f32 %v5361_v21, %v5360_v27  ;;  %v3984_v29 = vpop.permute.xlu1 %1160  ;;  %v1376_v53 = vmax.f32 %v1280_v33, 0.0  ;;  %v5368_v8 = vld [vmem:[#allocation15_spill] sm:$0xff]  ;;  %v1367_v63 = vmax.f32 %v1271_v47, 0.0  ;;  %v5377_v47 = vld [vmem:[#allocation38_spill] sm:$0xff] }
 0x15b   : > { %1606 = vmatpush.msra.mxu2 %v1383_v61  ;;  %1671 = vmatpush.msra.mxu3 %v1384_v4  ;;  %v1237_v56 = vadd.f32 %v3931_v28, %v5364_v57  ;;  %v1238_v59 = vadd.f32 %v3931_v28, %v5365_v58  ;;  %v1263_v1 = vadd.f32 %v3862_v41, %v1095_v34  ;;  %v1342_v34 = vmax.f32 %v1246_v39, 0.0 }
 0x15c   : > { %1479 = vmatpush.msra.mxu0 %v1357_v3  ;;  %1544 = vmatpush.msra.mxu1 %v1358_v14  ;;  %v1264_v52 = vadd.f32 %v3862_v41, %v1096_v16  ;;  %v1079_v15 = vmax.f32 %v5368_v8, %v5367_v7  ;;  %v1080_v13 = vmax.f32 %v5370_v30, %v5369_v60  ;;  %v1341_v3 = vmax.f32 %v1245_v40, 0.0  ;;  %v5383_v7 = vld [vmem:[#allocation33_spill] sm:$0xff]  ;;  %v5384_v8 = vld [vmem:[#allocation6_spill] sm:$0xff] }
 0x15d   : > { %2699 = vmatmul.msk.f32.gmra.mxu0 %vm260_vm0, %v5366_v25  ;;  %2723 = vmatmul.msk.f32.gmra.mxu1 %vm260_vm0, %v5366_v25  ;;  %v1255_v61 = vadd.f32 %v5347_v44, %v1087_v22  ;;  %v1256_v4 = vadd.f32 %v5347_v44, %v1088_v54  ;;  %v1368_v2 = vmax.f32 %v1272_v5, 0.0  ;;  %v1333_v33 = vmax.f32 %v1237_v56, 0.0  ;;  %v4014_v22 = vpop.permute.xlu2 %1155  ;;  %v5378_v5 = vld [vmem:[#allocation13_spill] sm:$0xff] }
 0x15e   : > { %2747 = vmatmul.msk.f32.gmra.mxu2 %vm260_vm0, %v5366_v25  ;;  %2771 = vmatmul.msk.f32.gmra.mxu3 %vm260_vm0, %v5366_v25  ;;  %v1334_v14 = vmax.f32 %v1238_v59, 0.0  ;;  %v5373_v19 = vmax.f32 %v3406_v42, %v3651_v46  ;;  %v5374_v27 = vmax.f32 %v3408_v43, %v3653_v45  ;;  %v1071_v54 = vmax.f32 %v5376_v20, %v5375_v62  ;;  %v5379_v42 = vld [vmem:[#allocation35_spill] sm:$0xff]  ;;  %v5380_v46 = vld [vmem:[#allocation9_spill] sm:$0xff]  ;;  %v5381_v25 = vld [vmem:[#allocation36_spill] sm:$0xff] }
 0x15f   : > { %1480 = vmatpush.msra.mxu0 %v1349_v0  ;;  %1545 = vmatpush.msra.mxu1 %v1350_v31  ;;  %v1072_v57 = vmax.f32 %v5378_v5, %v5377_v47  ;;  %v1359_v56 = vmax.f32 %v1263_v1, 0.0  ;;  %v1360_v58 = vmax.f32 %v1264_v52, 0.0  ;;  %v1063_v59 = vmax.f32 %v5380_v46, %v5379_v42  ;;  %v5382_v0 = vld [vmem:[#allocation10_spill] sm:$0xff]  ;;  %v5395_v20 = vld [vmem:[#allocation51_spill] sm:$0xff] }
 0x160   : > { %1607 = vmatpush.msra.mxu2 %v1375_v50  ;;  %1672 = vmatpush.msra.mxu3 %v1376_v53  ;;  %v3998_v16 = vpop.f32.mrf.mxu2  ;;  %v4000_v17 = vpop.f32.mrf.mxu3  ;;  %v1221_v39 = vadd.f32 %v3984_v29, %v5373_v19  ;;  %v1222_v21 = vadd.f32 %v3984_v29, %v5374_v27  ;;  %v1064_v43 = vmax.f32 %v5382_v0, %v5381_v25  ;;  %v1325_v45 = vmax.f32 %v3836_v35, 0.0  ;;  %v5394_v27 = vld [vmem:[#allocation8_spill] sm:$0xff] }
 0x161   : > { %5371 = vst [vmem:[#allocation50_spill] sm:$0xff] %v3998_v16  ;;  %1481 = vmatpush.msra.mxu0 %v1341_v3  ;;  %1546 = vmatpush.msra.mxu1 %v1342_v34  ;;  %v4002_v36 = vpop.f32.mrf.mxu0  ;;  %v4004_v40 = vpop.f32.mrf.mxu1  ;;  %v1326_v31 = vmax.f32 %v3845_v48, 0.0  ;;  %v1247_v50 = vadd.f32 %v3913_v24, %v1079_v15  ;;  %v1248_v53 = vadd.f32 %v3913_v24, %v1080_v13  ;;  %v1351_v1 = vmax.f32 %v1255_v61, 0.0  ;;  %v5386_v48 = vld [vmem:[#allocation30_spill] sm:$0xff]  ;;  %v5389_v34 = vld [vmem:[#allocation7_spill] sm:$0xff] }
 0x162   : > { %5372 = vst [vmem:[#allocation2_spill] sm:$0xff] %v4000_v17  ;;  %1608 = vmatpush.msra.mxu2 %v1367_v63  ;;  %1673 = vmatpush.msra.mxu3 %v1368_v2  ;;  %v1352_v52 = vmax.f32 %v1256_v4, 0.0  ;;  %v1055_v60 = vmax.f32 %v5384_v8, %v5383_v7  ;;  %v5385_v30 = vmax.f32 %v3385_v37, %v3635_v49  ;;  %v5388_v13 = vld [vmem:[#allocation34_spill] sm:$0xff]  ;;  %v5390_v2 = vld [vmem:[#allocation31_spill] sm:$0xff]  ;;  %v5392_v37 = vld [vmem:[#allocation32_spill] sm:$0xff]  ;;  %v1318_v62 = vmax.f32 %v1222_v21, 0.0 }
 0x163   : > { %1482 = vmatpush.msra.mxu0 %v1333_v33  ;;  %1547 = vmatpush.msra.mxu1 %v1334_v14  ;;  %v5387_v3 = vmax.f32 %v3387_v38, %v5386_v48  ;;  %v1056_v63 = vmax.f32 %v5389_v34, %v5388_v13  ;;  %v1239_v61 = vadd.f32 %v3931_v28, %v1071_v54  ;;  %v5391_v33 = vld [vmem:[#allocation3_spill] sm:$0xff]  ;;  %v5393_v49 = vld [vmem:[#allocation4_spill] sm:$0xff]  ;;  %v1317_v38 = vmax.f32 %v1221_v39, 0.0 }
 0x164   : > { %1609 = vmatpush.msra.mxu2 %v1359_v56  ;;  %1674 = vmatpush.msra.mxu3 %v1360_v58  ;;  %v1213_v35 = vadd.f32 %v4014_v22, %v5385_v30  ;;  %v1240_v4 = vadd.f32 %v3931_v28, %v1072_v57  ;;  %v1047_v14 = vmax.f32 %v5391_v33, %v5390_v2  ;;  %v1343_v5 = vmax.f32 %v1247_v50, 0.0  ;;  %v5398_v7 = vld [vmem:[#allocation11_spill] sm:$0xff] }
 0x165   : > { %1483 = vmatpush.msra.mxu0 %v1325_v45  ;;  %1548 = vmatpush.msra.mxu1 %v1326_v31  ;;  %v1214_v15 = vadd.f32 %v4014_v22, %v5387_v3  ;;  %v1048_v19 = vmax.f32 %v5393_v49, %v5392_v37  ;;  %v1231_v54 = vadd.f32 %v5395_v20, %v1063_v59  ;;  %v1344_v57 = vmax.f32 %v1248_v53, 0.0  ;;  %v5407_v49 = vld [vmem:[#allocation20_spill] sm:$0xff]  ;;  %v4256_v16 = vld [vmem:[%s5236_s3 + $0x28] sm:$0xff] }
 0x166   : > { %1610 = vmatpush.msra.mxu2 %v1351_v1  ;;  %1675 = vmatpush.msra.mxu3 %v1352_v52  ;;  %v1232_v47 = vadd.f32 %v5395_v20, %v1064_v43  ;;  %v1309_v39 = vmax.f32 %v1213_v35, 0.0  ;;  %v1223_v59 = vadd.f32 %v3984_v29, %v1055_v60  ;;  %v1224_v25 = vadd.f32 %v3984_v29, %v1056_v63 }
 0x167   : > { %2700 = vmatmul.msk.f32.gmra.mxu0 %vm260_vm0, %v5394_v27  ;;  %2724 = vmatmul.msk.f32.gmra.mxu1 %vm260_vm0, %v5394_v27  ;;  %v1310_v21 = vmax.f32 %v1214_v15, 0.0  ;;  %v1335_v0 = vmax.f32 %v1239_v61, 0.0  ;;  %v1336_v43 = vmax.f32 %v1240_v4, 0.0  ;;  %v1215_v45 = vadd.f32 %v4014_v22, %v1047_v14  ;;  %v5401_v15 = vld [vmem:[#allocation14_spill] sm:$0xff]  ;;  %v5404_v4 = vld [vmem:[#allocation17_spill] sm:$0xff]  ;;  %5428 = vst [vmem:[#allocation9_spill] sm:$0xff] %v4256_v16 }
 0x168   : > { %2748 = vmatmul.msk.f32.gmra.mxu2 %vm260_vm0, %v5394_v27  ;;  %2772 = vmatmul.msk.f32.gmra.mxu3 %vm260_vm0, %v5394_v27  ;;  %v4056_v56 = vpop.f32.mrf.mxu2  ;;  %v4058_v58 = vpop.f32.mrf.mxu3  ;;  %v1216_v31 = vadd.f32 %v4014_v22, %v1048_v19  ;;  %v1327_v50 = vmax.f32 %v1231_v54, 0.0  ;;  %v1328_v53 = vmax.f32 %v1232_v47, 0.0  ;;  %v1319_v1 = vmax.f32 %v1223_v59, 0.0  ;;  %v5410_v54 = vld [vmem:[#allocation23_spill] sm:$0xff] }
 0x169   : > { %5396 = vst [vmem:[#allocation47_spill] sm:$0xff] %v4056_v56  ;;  %1484 = vmatpush.msra.mxu0 %v1317_v38  ;;  %1549 = vmatpush.msra.mxu1 %v1318_v62  ;;  %v4060_v42 = vpop.f32.mrf.mxu0  ;;  %v4062_v46 = vpop.f32.mrf.mxu1  ;;  %v1320_v52 = vmax.f32 %v1224_v25, 0.0  ;;  %v1311_v8 = vmax.f32 %v1215_v45, 0.0  ;;  %v4172_v45 = vld [vmem:[%s5236_s3 + $0x8] sm:$0xff]  ;;  %v4277_v56 = vld [vmem:[%s5236_s3 + $0x30] sm:$0xff] }
 0x16a   : > { %5397 = vst [vmem:[#allocation26_spill] sm:$0xff] %v4058_v58  ;;  %1611 = vmatpush.msra.mxu2 %v1343_v5  ;;  %1676 = vmatpush.msra.mxu3 %v1344_v57  ;;  %v1312_v60 = vmax.f32 %v1216_v31, 0.0 }
 0x16b   : > { %1485 = vmatpush.msra.mxu0 %v1309_v39  ;;  %1550 = vmatpush.msra.mxu1 %v1310_v21  ;;  %v4151_v21 = vld [vmem:[%s5236_s3] sm:$0xff]  ;;  %5416 = vst [vmem:[#allocation42_spill] sm:$0xff] %v4172_v45 }
 0x16c   : > { %1612 = vmatpush.msra.mxu2 %v1335_v0  ;;  %1677 = vmatpush.msra.mxu3 %v1336_v43  ;;  %5413 = vst [vmem:[#allocation22_spill] sm:$0xff] %v4151_v21 }
 0x16d   : > { %5431 = vst [vmem:[#allocation33_spill] sm:$0xff] %v4277_v56 }
 0x16e   : > { %1613 = vmatpush.msra.mxu2 %v1327_v50  ;;  %1678 = vmatpush.msra.mxu3 %v1328_v53 }
 0x16f   : > { %2701 = vmatmul.msk.f32.gmra.mxu0 %vm260_vm0, %v5398_v7  ;;  %2725 = vmatmul.msk.f32.gmra.mxu1 %vm260_vm0, %v5398_v7 }
 0x170   : > { %1614 = vmatpush.msra.mxu2 %v1319_v1  ;;  %1679 = vmatpush.msra.mxu3 %v1320_v52  ;;  %v4072_v30 = vpop.f32.mrf.mxu2  ;;  %v4074_v35 = vpop.f32.mrf.mxu3  ;;  %v4193_v52 = vld [vmem:[%s5236_s3 + $0x10] sm:$0xff] }
 0x171   : > { %5399 = vst [vmem:[#allocation48_spill] sm:$0xff] %v4072_v30  ;;  %2749 = vmatmul.msk.f32.gmra.mxu2 %vm260_vm0, %v5398_v7  ;;  %2773 = vmatmul.msk.f32.gmra.mxu3 %vm260_vm0, %v5398_v7  ;;  %v4080_v48 = vpop.f32.mrf.mxu0  ;;  %v4082_v3 = vpop.f32.mrf.mxu1  ;;  %v4298_v30 = vld [vmem:[%s5236_s3 + $0x38] sm:$0xff] }
 0x172   : > { %5400 = vst [vmem:[#allocation27_spill] sm:$0xff] %v4074_v35  ;;  %1615 = vmatpush.msra.mxu2 %v1311_v8  ;;  %1680 = vmatpush.msra.mxu3 %v1312_v60 }
 0x173   : > { %5419 = vst [vmem:[#allocation39_spill] sm:$0xff] %v4193_v52 }
 0x174   : > { %5434 = vst [vmem:[#allocation34_spill] sm:$0xff] %v4298_v30 }
 0x177   : > { %2702 = vmatmul.msk.f32.gmra.mxu0 %vm260_vm0, %v5401_v15  ;;  %2726 = vmatmul.msk.f32.gmra.mxu1 %vm260_vm0, %v5401_v15 }
 0x178   : > { %v4088_v13 = vpop.f32.mrf.mxu2  ;;  %v4090_v34 = vpop.f32.mrf.mxu3 }
 0x179   : > { %5402 = vst [vmem:[#allocation49_spill] sm:$0xff] %v4088_v13  ;;  %2750 = vmatmul.msk.f32.gmra.mxu2 %vm260_vm0, %v5401_v15  ;;  %2774 = vmatmul.msk.f32.gmra.mxu3 %vm260_vm0, %v5401_v15  ;;  %v4096_v63 = vpop.f32.mrf.mxu0  ;;  %v4098_v61 = vpop.f32.mrf.mxu1  ;;  %v4319_v13 = vld [vmem:[%s5236_s3 + $0x40] sm:$0xff] }
 0x17a   : > { %5403 = vst [vmem:[#allocation45_spill] sm:$0xff] %v4090_v34 }
 0x17b   : > { %5437 = vst [vmem:[#allocation3_spill] sm:$0xff] %v4319_v13 }
 0x17f   : > { %2703 = vmatmul.msk.f32.gmra.mxu0 %vm260_vm0, %v5404_v4  ;;  %2727 = vmatmul.msk.f32.gmra.mxu1 %vm260_vm0, %v5404_v4 }
 0x180   : > { %v4104_v2 = vpop.f32.mrf.mxu2  ;;  %v4106_v33 = vpop.f32.mrf.mxu3 }
 0x181   : > { %5405 = vst [vmem:[#allocation24_spill] sm:$0xff] %v4104_v2  ;;  %2751 = vmatmul.msk.f32.gmra.mxu2 %vm260_vm0, %v5404_v4  ;;  %2775 = vmatmul.msk.f32.gmra.mxu3 %vm260_vm0, %v5404_v4  ;;  %v4112_v14 = vpop.f32.mrf.mxu0  ;;  %v4114_v37 = vpop.f32.mrf.mxu1  ;;  %v4214_v4 = vld [vmem:[%s5236_s3 + $0x18] sm:$0xff]  ;;  %v4340_v2 = vld [vmem:[%s5236_s3 + $0x48] sm:$0xff] }
 0x182   : > { %5406 = vst [vmem:[#allocation46_spill] sm:$0xff] %v4106_v33 }
 0x183   : > { %5422 = vst [vmem:[#allocation16_spill] sm:$0xff] %v4214_v4 }
 0x184   : > { %5440 = vst [vmem:[#allocation8_spill] sm:$0xff] %v4340_v2 }
 0x187   : > { %2704 = vmatmul.msk.f32.gmra.mxu0 %vm260_vm0, %v5407_v49  ;;  %2728 = vmatmul.msk.f32.gmra.mxu1 %vm260_vm0, %v5407_v49 }
 0x188   : > { %v4120_v19 = vpop.f32.mrf.mxu2  ;;  %v4122_v27 = vpop.f32.mrf.mxu3 }
 0x189   : > { %5408 = vst [vmem:[#allocation25_spill] sm:$0xff] %v4120_v19  ;;  %2752 = vmatmul.msk.f32.gmra.mxu2 %vm260_vm0, %v5407_v49  ;;  %2776 = vmatmul.msk.f32.gmra.mxu3 %vm260_vm0, %v5407_v49  ;;  %v4128_v38 = vpop.f32.mrf.mxu0  ;;  %v4130_v62 = vpop.f32.mrf.mxu1  ;;  %v4361_v19 = vld [vmem:[%s5236_s3 + $0x50] sm:$0xff] }
 0x18a   : > { %5409 = vst [vmem:[#allocation43_spill] sm:$0xff] %v4122_v27 }
 0x18b   : > { %5443 = vst [vmem:[#allocation14_spill] sm:$0xff] %v4361_v19 }
 0x18f   : > { %2705 = vmatmul.msk.f32.gmra.mxu0 %vm260_vm0, %v5410_v54  ;;  %2729 = vmatmul.msk.f32.gmra.mxu1 %vm260_vm0, %v5410_v54 }
 0x190   : > { %v4136_v47 = vpop.f32.mrf.mxu2  ;;  %v4138_v5 = vpop.f32.mrf.mxu3 }
 0x191   : > { %5411 = vst [vmem:[#allocation21_spill] sm:$0xff] %v4136_v47  ;;  %2753 = vmatmul.msk.f32.gmra.mxu2 %vm260_vm0, %v5410_v54  ;;  %2777 = vmatmul.msk.f32.gmra.mxu3 %vm260_vm0, %v5410_v54  ;;  %v4144_v57 = vpop.f32.mrf.mxu0  ;;  %v4146_v39 = vpop.f32.mrf.mxu1  ;;  %v4382_v47 = vld [vmem:[%s5236_s3 + $0x58] sm:$0xff] }
 0x192   : > { %5412 = vst [vmem:[#allocation44_spill] sm:$0xff] %v4138_v5 }
 0x193   : > { %5446 = vst [vmem:[#allocation23_spill] sm:$0xff] %v4382_v47 }
 0x197   : > { %2778 = vmatmul.msk.f32.vlgmr.msra.gmra.mxu0 %vm1421_vm1, %v4151_v21  ;;  %2794 = vmatmul.msk.f32.vlgmr.msra.gmra.mxu1 %vm1421_vm1, %v4151_v21 }
 0x198   : > { %v4157_v59 = vpop.f32.mrf.mxu2  ;;  %v4159_v25 = vpop.f32.mrf.mxu3 }
 0x199   : > { %5414 = vst [vmem:[#allocation41_spill] sm:$0xff] %v4157_v59  ;;  %2810 = vmatmul.msk.f32.vlgmr.msra.gmra.mxu2 %vm1421_vm1, %v4151_v21  ;;  %2826 = vmatmul.msk.f32.vlgmr.msra.gmra.mxu3 %vm1421_vm1, %v4151_v21  ;;  %v4165_v0 = vpop.f32.mrf.mxu0  ;;  %v4167_v43 = vpop.f32.mrf.mxu1  ;;  %v4235_v21 = vld [vmem:[%s5236_s3 + $0x20] sm:$0xff] }
 0x19a   : > { %5415 = vst [vmem:[#allocation18_spill] sm:$0xff] %v4159_v25 }
 0x19b   : > { %5425 = vst [vmem:[#allocation38_spill] sm:$0xff] %v4235_v21 }
 0x19f   : > { %2779 = vmatmul.msk.f32.gmra.mxu0 %vm1421_vm1, %v4172_v45  ;;  %2795 = vmatmul.msk.f32.gmra.mxu1 %vm1421_vm1, %v4172_v45 }
 0x1a0   : > { %v4178_v31 = vpop.f32.mrf.mxu2  ;;  %v4180_v50 = vpop.f32.mrf.mxu3 }
 0x1a1   : > { %5417 = vst [vmem:[#allocation19_spill] sm:$0xff] %v4178_v31  ;;  %2811 = vmatmul.msk.f32.gmra.mxu2 %vm1421_vm1, %v4172_v45  ;;  %2827 = vmatmul.msk.f32.gmra.mxu3 %vm1421_vm1, %v4172_v45  ;;  %v4186_v53 = vpop.f32.mrf.mxu0  ;;  %v4188_v1 = vpop.f32.mrf.mxu1 }
 0x1a2   : > { %5418 = vst [vmem:[#allocation5_spill] sm:$0xff] %v4180_v50 }
 0x1a7   : > { %2780 = vmatmul.msk.f32.gmra.mxu0 %vm1421_vm1, %v4193_v52  ;;  %2796 = vmatmul.msk.f32.gmra.mxu1 %vm1421_vm1, %v4193_v52 }
 0x1a8   : > { %v4199_v7 = vpop.f32.mrf.mxu2  ;;  %v4201_v8 = vpop.f32.mrf.mxu3 }
 0x1a9   : > { %5420 = vst [vmem:[#allocation15_spill] sm:$0xff] %v4199_v7  ;;  %2812 = vmatmul.msk.f32.gmra.mxu2 %vm1421_vm1, %v4193_v52  ;;  %2828 = vmatmul.msk.f32.gmra.mxu3 %vm1421_vm1, %v4193_v52  ;;  %v4207_v60 = vpop.f32.mrf.mxu0  ;;  %v4209_v15 = vpop.f32.mrf.mxu1 }
 0x1aa   : > { %5421 = vst [vmem:[#allocation40_spill] sm:$0xff] %v4201_v8 }
 0x1af   : > { %2781 = vmatmul.msk.f32.gmra.mxu0 %vm1421_vm1, %v4214_v4  ;;  %2797 = vmatmul.msk.f32.gmra.mxu1 %vm1421_vm1, %v4214_v4 }
 0x1b0   : > { %v4220_v49 = vpop.f32.mrf.mxu2  ;;  %v4222_v54 = vpop.f32.mrf.mxu3 }
 0x1b1   : > { %5423 = vst [vmem:[#allocation37_spill] sm:$0xff] %v4220_v49  ;;  %2813 = vmatmul.msk.f32.gmra.mxu2 %vm1421_vm1, %v4214_v4  ;;  %2829 = vmatmul.msk.f32.gmra.mxu3 %vm1421_vm1, %v4214_v4  ;;  %v4228_v52 = vpop.f32.mrf.mxu0  ;;  %v4230_v45 = vpop.f32.mrf.mxu1 }
 0x1b2   : > { %5424 = vst [vmem:[#allocation12_spill] sm:$0xff] %v4222_v54  ;;  %v1049_v50 = vmax.f32 %v3900_v6, %v4228_v52  ;;  %v1050_v31 = vmax.f32 %v3902_v11, %v4230_v45 }
 0x1b7   : > { %2782 = vmatmul.msk.f32.gmra.mxu0 %vm1421_vm1, %v4235_v21  ;;  %2798 = vmatmul.msk.f32.gmra.mxu1 %vm1421_vm1, %v4235_v21 }
 0x1b8   : > { %v4241_v9 = vpop.f32.mrf.mxu2  ;;  %v4243_v51 = vpop.f32.mrf.mxu3 }
 0x1b9   : > { %5426 = vst [vmem:[#allocation13_spill] sm:$0xff] %v4241_v9  ;;  %2814 = vmatmul.msk.f32.gmra.mxu2 %vm1421_vm1, %v4235_v21  ;;  %2830 = vmatmul.msk.f32.gmra.mxu3 %vm1421_vm1, %v4235_v21  ;;  %v4249_v4 = vpop.f32.mrf.mxu0  ;;  %v4251_v17 = vpop.f32.mrf.mxu1 }
 0x1ba   : > { %5427 = vst [vmem:[#allocation35_spill] sm:$0xff] %v4243_v51  ;;  %v1057_v7 = vmax.f32 %v3948_v26, %v4249_v4  ;;  %v5455_v4 = vld [vmem:[#allocation40_spill] sm:$0xff] }
 0x1bf   : > { %2783 = vmatmul.msk.f32.gmra.mxu0 %vm1421_vm1, %v4256_v16  ;;  %2799 = vmatmul.msk.f32.gmra.mxu1 %vm1421_vm1, %v4256_v16 }
 0x1c0   : > { %v4262_v51 = vpop.f32.mrf.mxu2  ;;  %v4264_v9 = vpop.f32.mrf.mxu3 }
 0x1c1   : > { %5429 = vst [vmem:[#allocation36_spill] sm:$0xff] %v4262_v51  ;;  %2815 = vmatmul.msk.f32.gmra.mxu2 %vm1421_vm1, %v4256_v16  ;;  %2831 = vmatmul.msk.f32.gmra.mxu3 %vm1421_vm1, %v4256_v16  ;;  %v4270_v21 = vpop.f32.mrf.mxu0  ;;  %v4272_v58 = vpop.f32.mrf.mxu1 }
 0x1c2   : > { %5430 = vst [vmem:[#allocation10_spill] sm:$0xff] %v4264_v9 }
 0x1c7   : > { %2784 = vmatmul.msk.f32.gmra.mxu0 %vm1421_vm1, %v4277_v56  ;;  %2800 = vmatmul.msk.f32.gmra.mxu1 %vm1421_vm1, %v4277_v56 }
 0x1c8   : > { %v4283_v9 = vpop.f32.mrf.mxu2  ;;  %v4285_v51 = vpop.f32.mrf.mxu3 }
 0x1c9   : > { %5432 = vst [vmem:[#allocation6_spill] sm:$0xff] %v4283_v9  ;;  %2816 = vmatmul.msk.f32.gmra.mxu2 %vm1421_vm1, %v4277_v56  ;;  %2832 = vmatmul.msk.f32.gmra.mxu3 %vm1421_vm1, %v4277_v56  ;;  %v4291_v16 = vpop.f32.mrf.mxu0  ;;  %v4293_v35 = vpop.f32.mrf.mxu1 }
 0x1ca   : > { %5433 = vst [vmem:[#allocation30_spill] sm:$0xff] %v4285_v51  ;;  %v1073_v6 = vmax.f32 %v4060_v42, %v4291_v16  ;;  %v1074_v11 = vmax.f32 %v4062_v46, %v4293_v35  ;;  %v4465_v16 = vadd.f32 %v4014_v22, %v1050_v31 }
 0x1cc   : > { %v4480_v42 = vadd.f32 %v3931_v28, %v1073_v6 }
 0x1cf   : > { %2785 = vmatmul.msk.f32.gmra.mxu0 %vm1421_vm1, %v4298_v30  ;;  %2801 = vmatmul.msk.f32.gmra.mxu1 %vm1421_vm1, %v4298_v30 }
 0x1d0   : > { %v4304_v51 = vpop.f32.mrf.mxu2  ;;  %v4306_v9 = vpop.f32.mrf.mxu3 }
 0x1d1   : > { %5435 = vst [vmem:[#allocation7_spill] sm:$0xff] %v4304_v51  ;;  %2817 = vmatmul.msk.f32.gmra.mxu2 %vm1421_vm1, %v4298_v30  ;;  %2833 = vmatmul.msk.f32.gmra.mxu3 %vm1421_vm1, %v4298_v30  ;;  %v4312_v56 = vpop.f32.mrf.mxu0  ;;  %v4314_v34 = vpop.f32.mrf.mxu1 }
 0x1d2   : > { %5436 = vst [vmem:[#allocation31_spill] sm:$0xff] %v4306_v9  ;;  %v1081_v45 = vmax.f32 %v4080_v48, %v4312_v56  ;;  %v1082_v26 = vmax.f32 %v4082_v3, %v4314_v34 }
 0x1d4   : > { %v4486_v46 = vadd.f32 %v3913_v24, %v1081_v45 }
 0x1d7   : > { %2786 = vmatmul.msk.f32.gmra.mxu0 %vm1421_vm1, %v4319_v13  ;;  %2802 = vmatmul.msk.f32.gmra.mxu1 %vm1421_vm1, %v4319_v13 }
 0x1d8   : > { %v4325_v9 = vpop.f32.mrf.mxu2  ;;  %v4327_v51 = vpop.f32.mrf.mxu3 }
 0x1d9   : > { %5438 = vst [vmem:[#allocation32_spill] sm:$0xff] %v4325_v9  ;;  %2818 = vmatmul.msk.f32.gmra.mxu2 %vm1421_vm1, %v4319_v13  ;;  %2834 = vmatmul.msk.f32.gmra.mxu3 %vm1421_vm1, %v4319_v13 }
 0x1da   : > { %5439 = vst [vmem:[#allocation4_spill] sm:$0xff] %v4327_v51  ;;  %v4333_v30 = vpop.f32.mrf.mxu0  ;;  %v4335_v33 = vpop.f32.mrf.mxu1 }
 0x1db   : > { %v1090_v35 = vmax.f32 %v4098_v61, %v4335_v33 }
 0x1df   : > { %2787 = vmatmul.msk.f32.gmra.mxu0 %vm1421_vm1, %v4340_v2  ;;  %2803 = vmatmul.msk.f32.gmra.mxu1 %vm1421_vm1, %v4340_v2 }
 0x1e1   : > { %2819 = vmatmul.msk.f32.gmra.mxu2 %vm1421_vm1, %v4340_v2  ;;  %2835 = vmatmul.msk.f32.gmra.mxu3 %vm1421_vm1, %v4340_v2  ;;  %v4350_v13 = vpop.f32.mrf.mxu2  ;;  %v4352_v51 = vpop.f32.mrf.mxu3 }
 0x1e2   : > { %5441 = vst [vmem:[#allocation51_spill] sm:$0xff] %v4350_v13 }
 0x1e3   : > { %5442 = vst [vmem:[#allocation11_spill] sm:$0xff] %v4352_v51 }
 0x1e4   : > { %v4354_v9 = vpop.f32.mrf.mxu0  ;;  %v4356_v27 = vpop.f32.mrf.mxu1 }
 0x1e5   : > { %v1098_v31 = vmax.f32 %v4114_v37, %v4356_v27 }
 0x1e7   : > { %2788 = vmatmul.msk.f32.gmra.mxu0 %vm1421_vm1, %v4361_v19  ;;  %2804 = vmatmul.msk.f32.gmra.mxu1 %vm1421_vm1, %v4361_v19 }
 0x1e9   : > { %2820 = vmatmul.msk.f32.gmra.mxu2 %vm1421_vm1, %v4361_v19  ;;  %2836 = vmatmul.msk.f32.gmra.mxu3 %vm1421_vm1, %v4361_v19 }
 0x1eb   : > { %v4371_v2 = vpop.f32.mrf.mxu2  ;;  %v4373_v51 = vpop.f32.mrf.mxu3 }
 0x1ec   : > { %5444 = vst [vmem:[#allocation17_spill] sm:$0xff] %v4371_v2  ;;  %v4375_v13 = vpop.f32.mrf.mxu0  ;;  %v4377_v5 = vpop.f32.mrf.mxu1  ;;  %v4399_v2 = vld [vmem:[%s5236_s3 + $0x60] sm:$0xff] }
 0x1ed   : > { %5445 = vst [vmem:[#allocation20_spill] sm:$0xff] %v4373_v51 }
 0x1ee   : > { %5449 = vst [vmem:[#allocation55_spill] sm:$0xff] %v4399_v2 }
 0x1ef   : > { %2789 = vmatmul.msk.f32.gmra.mxu0 %vm1421_vm1, %v4382_v47  ;;  %2805 = vmatmul.msk.f32.gmra.mxu1 %vm1421_vm1, %v4382_v47 }
 0x1f1   : > { %2821 = vmatmul.msk.f32.gmra.mxu2 %vm1421_vm1, %v4382_v47  ;;  %2837 = vmatmul.msk.f32.gmra.mxu3 %vm1421_vm1, %v4382_v47 }
 0x1f4   : > { %v4392_v19 = vpop.f32.mrf.mxu2  ;;  %v4394_v51 = vpop.f32.mrf.mxu3 }
 0x1f5   : > { %5447 = vst [vmem:[#allocation53_spill] sm:$0xff] %v4392_v19  ;;  %v4401_v25 = vpop.f32.mrf.mxu0  ;;  %v4403_v59 = vpop.f32.mrf.mxu1  ;;  %v1418_v19 = vld [vmem:[%s5236_s3 + $0x68] sm:$0xff] }
 0x1f6   : > { %5448 = vst [vmem:[#allocation54_spill] sm:$0xff] %v4394_v51 }
 0x1f7   : > { %2790 = vmatmul.msk.f32.gmra.mxu0 %vm1421_vm1, %v4399_v2  ;;  %2806 = vmatmul.msk.f32.gmra.mxu1 %vm1421_vm1, %v4399_v2 }
 0x1f9   : > { %2822 = vmatmul.msk.f32.gmra.mxu2 %vm1421_vm1, %v4399_v2  ;;  %2838 = vmatmul.msk.f32.gmra.mxu3 %vm1421_vm1, %v4399_v2 }
 0x1fc   : > { %v4413_v47 = vpop.f32.mrf.mxu2  ;;  %v4415_v51 = vpop.f32.mrf.mxu3 }
 0x1fd   : > { %5450 = vst [vmem:[#allocation56_spill] sm:$0xff] %v4413_v47  ;;  %v4420_v54 = vpop.f32.mrf.mxu0  ;;  %v4422_v49 = vpop.f32.mrf.mxu1 }
 0x1fe   : > { %5451 = vst [vmem:[#allocation57_spill] sm:$0xff] %v4415_v51  ;;  %v1419_v51 = vld [vmem:[%s5236_s3 + $0x70] sm:$0xff] }
 0x1ff   : > { %2791 = vmatmul.msk.f32.gmra.mxu0 %vm1421_vm1, %v1418_v19  ;;  %2807 = vmatmul.msk.f32.gmra.mxu1 %vm1421_vm1, %v1418_v19 }
 0x201   : > { %2823 = vmatmul.msk.f32.gmra.mxu2 %vm1421_vm1, %v1418_v19  ;;  %2839 = vmatmul.msk.f32.gmra.mxu3 %vm1421_vm1, %v1418_v19  ;;  %v1058_v19 = vmax.f32 %v3950_v12, %v4251_v17  ;;  %v4458_v12 = vadd.f32 %v4014_v22, %v1049_v50  ;;  %v1089_v17 = vmax.f32 %v4096_v63, %v4333_v30 }
 0x202   : > { %v4489_v30 = vadd.f32 %v3913_v24, %v1082_v26  ;;  %v1121_v50 = vmax.f32 %v4165_v0, %v4420_v54  ;;  %v5456_v54 = vld [vmem:[#allocation52_spill] sm:$0xff] }
 0x204   : > { %v4428_v2 = vpop.f32.mrf.mxu2  ;;  %v4430_v47 = vpop.f32.mrf.mxu3 }
 0x205   : > { %5452 = vst [vmem:[#allocation58_spill] sm:$0xff] %v4428_v2  ;;  %v772_v18 = vpop.f32.mrf.mxu0  ;;  %v861_v8 = vpop.f32.mrf.mxu1  ;;  %v1066_v2 = vmax.f32 %v4004_v40, %v4272_v58  ;;  %v4471_v40 = vadd.f32 %v3984_v29, %v1058_v19 }
 0x206   : > { %5453 = vst [vmem:[#allocation59_spill] sm:$0xff] %v4430_v47  ;;  %v1065_v47 = vmax.f32 %v4002_v36, %v4270_v21  ;;  %v4468_v36 = vadd.f32 %v3984_v29, %v1057_v7  ;;  %v1129_v48 = vmax.f32 %v4186_v53, %v772_v18  ;;  %v1130_v3 = vmax.f32 %v4188_v1, %v861_v8 }
 0x207   : > { %2792 = vmatmul.msk.f32.gmra.mxu0 %vm1421_vm1, %v1419_v51  ;;  %2808 = vmatmul.msk.f32.gmra.mxu1 %vm1421_vm1, %v1419_v51  ;;  %v4477_v58 = vadd.f32 %v5395_v20, %v1066_v2  ;;  %v1420_v2 = vld [vmem:[%s5236_s3 + $0x78] sm:$0xff]  ;;  %v1097_v21 = vmax.f32 %v4112_v14, %v4354_v9  ;;  %v1105_v18 = vmax.f32 %v4128_v38, %v4375_v13 }
 0x208   : > { %v4474_v56 = vadd.f32 %v5395_v20, %v1065_v47  ;;  %v4499_v47 = vadd.f32 %v5347_v44, %v1089_v17  ;;  %v1122_v53 = vmax.f32 %v4167_v43, %v4422_v49  ;;  %v1106_v9 = vmax.f32 %v4130_v62, %v4377_v5 }
 0x209   : > { %2824 = vmatmul.msk.f32.gmra.mxu2 %vm1421_vm1, %v1419_v51  ;;  %2840 = vmatmul.msk.f32.gmra.mxu3 %vm1421_vm1, %v1419_v51  ;;  %v4483_v51 = vadd.f32 %v3931_v28, %v1074_v11  ;;  %v1113_v14 = vmax.f32 %v4144_v57, %v4401_v25  ;;  %v1114_v13 = vmax.f32 %v4146_v39, %v4403_v59 }
 0x20a   : > { %v1297_v37 = vadd.f32 %v3767_v23, %v1129_v48  ;;  %v1298_v27 = vadd.f32 %v3767_v23, %v1130_v3  ;;  %v4526_v62 = vadd.f32 %v5347_v44, %v1090_v35  ;;  %v4529_v5 = vadd.f32 %v3862_v41, %v1097_v21  ;;  %v5458_v48 = vld [vmem:[#allocation19_spill] sm:$0xff]  ;;  %v5460_v21 = vld [vmem:[#allocation5_spill] sm:$0xff] }
 0x20b   : > { %v4532_v57 = vadd.f32 %v3862_v41, %v1098_v31  ;;  %v1289_v39 = vadd.f32 %v3803_v32, %v1121_v50  ;;  %v1290_v59 = vadd.f32 %v3803_v32, %v1122_v53  ;;  %v1273_v7 = vadd.f32 %v5341_v55, %v1105_v18  ;;  %v5461_v18 = vld [vmem:[#allocation37_spill] sm:$0xff]  ;;  %v5463_v53 = vld [vmem:[#allocation56_spill] sm:$0xff] }
 0x20c   : > { %v950_v34 = vpop.f32.mrf.mxu2  ;;  %v1039_v63 = vpop.f32.mrf.mxu3  ;;  %v1274_v8 = vadd.f32 %v5341_v55, %v1106_v9  ;;  %v1281_v19 = vadd.f32 %v5456_v54, %v1113_v14  ;;  %v1282_v6 = vadd.f32 %v5456_v54, %v1114_v13  ;;  %v1393_v26 = vmax.f32 %v1297_v37, 0.0  ;;  %v5457_v35 = vld [vmem:[#allocation58_spill] sm:$0xff]  ;;  %v5465_v9 = vld [vmem:[#allocation57_spill] sm:$0xff] }
 0x20d   : > { %v775_v61 = vpop.f32.mrf.mxu0  ;;  %v864_v33 = vpop.f32.mrf.mxu1  ;;  %v1132_v49 = vmax.f32 %v5455_v4, %v1039_v63  ;;  %v1394_v17 = vmax.f32 %v1298_v27, 0.0  ;;  %v1123_v3 = vmax.f32 %v5458_v48, %v5457_v35  ;;  %v5466_v14 = vld [vmem:[#allocation18_spill] sm:$0xff]  ;;  %v1385_v37 = vmax.f32 %v1289_v39, 0.0  ;;  %v5468_v4 = vld [vmem:[#allocation21_spill] sm:$0xff]  ;;  %v5470_v35 = vld [vmem:[#allocation44_spill] sm:$0xff] }
 0x20e   : > { %v1137_v1 = vmax.f32 %v4207_v60, %v775_v61  ;;  %v1138_v52 = vmax.f32 %v4209_v15, %v864_v33  ;;  %v5454_v60 = vld [vmem:[#allocation15_spill] sm:$0xff]  ;;  %v5462_v61 = vld [vmem:[#allocation12_spill] sm:$0xff]  ;;  %v1116_v13 = vmax.f32 %v5466_v14, %v5465_v9  ;;  %v1386_v27 = vmax.f32 %v1290_v59, 0.0  ;;  %v5478_v14 = vld [vmem:[#allocation46_spill] sm:$0xff] }
 0x20f   : > { %2793 = vmatmul.msk.f32.gmra.mxu0 %vm1421_vm1, %v1420_v2  ;;  %2809 = vmatmul.msk.f32.gmra.mxu1 %vm1421_vm1, %v1420_v2  ;;  %v1131_v15 = vmax.f32 %v5454_v60, %v950_v34  ;;  %v5467_v60 = vld [vmem:[#allocation53_spill] sm:$0xff]  ;;  %v1291_v39 = vadd.f32 %v3803_v32, %v1123_v3  ;;  %v5475_v3 = vld [vmem:[#allocation51_spill] sm:$0xff] }
 0x210   : > { %v1305_v38 = vadd.f32 %v3745_v10, %v1137_v1  ;;  %v1306_v0 = vadd.f32 %v3745_v10, %v1138_v52  ;;  %v5464_v1 = vld [vmem:[#allocation41_spill] sm:$0xff]  ;;  %v5477_v9 = vld [vmem:[#allocation11_spill] sm:$0xff] }
 0x211   : > { %2825 = vmatmul.msk.f32.gmra.mxu2 %vm1421_vm1, %v1420_v2  ;;  %2841 = vmatmul.msk.f32.gmra.mxu3 %vm1421_vm1, %v1420_v2  ;;  %v5459_v2 = vld [vmem:[#allocation59_spill] sm:$0xff]  ;;  %v1115_v52 = vmax.f32 %v5464_v1, %v5463_v53 }
 0x212   : > { %v1401_v25 = vmax.f32 %v1305_v38, 0.0  ;;  %v1402_v43 = vmax.f32 %v1306_v0, 0.0  ;;  %v1124_v31 = vmax.f32 %v5460_v21, %v5459_v2  ;;  %v1299_v38 = vadd.f32 %v3767_v23, %v1131_v15  ;;  %v5472_v2 = vld [vmem:[#allocation25_spill] sm:$0xff] }
 0x213   : > { %v1300_v0 = vadd.f32 %v3767_v23, %v1132_v49  ;;  %v5471_v49 = vld [vmem:[#allocation17_spill] sm:$0xff]  ;;  %v1283_v53 = vadd.f32 %v5456_v54, %v1115_v52 }
 0x214   : > { %v953_v11 = vpop.f32.mrf.mxu2  ;;  %v1042_v45 = vpop.f32.mrf.mxu3  ;;  %1734 = vmatpush.msrb.mxu0 %v1401_v25  ;;  %1799 = vmatpush.msrb.mxu1 %v1402_v43  ;;  %v1292_v59 = vadd.f32 %v3803_v32, %v1124_v31  ;;  %v1099_v21 = vmax.f32 %v5472_v2, %v5471_v49  ;;  %v5476_v31 = vld [vmem:[#allocation24_spill] sm:$0xff]  ;;  %v5485_v49 = vld [vmem:[#allocation31_spill] sm:$0xff] }
 0x215   : > { %v1139_v34 = vmax.f32 %v5461_v18, %v953_v11  ;;  %v1140_v63 = vmax.f32 %v5462_v61, %v1042_v45  ;;  %v4550_v33 = vpop.f32.mrf.mxu0  ;;  %v4552_v50 = vpop.f32.mrf.mxu1  ;;  %v1107_v11 = vmax.f32 %v5468_v4, %v5467_v60  ;;  %v5469_v45 = vld [vmem:[#allocation54_spill] sm:$0xff]  ;;  %v5474_v18 = vld [vmem:[#allocation43_spill] sm:$0xff]  ;;  %v1369_v61 = vmax.f32 %v1273_v7, 0.0  ;;  %v5479_v60 = vld [vmem:[#allocation32_spill] sm:$0xff] }
 0x216   : > { %1735 = vmatpush.msrb.mxu0 %v1393_v26  ;;  %1800 = vmatpush.msrb.mxu1 %v1394_v17  ;;  %v1108_v48 = vmax.f32 %v5470_v35, %v5469_v45  ;;  %v1377_v26 = vmax.f32 %v1281_v19, 0.0  ;;  %v1378_v17 = vmax.f32 %v1282_v6, 0.0  ;;  %v1284_v19 = vadd.f32 %v5456_v54, %v1116_v13  ;;  %v5480_v4 = vld [vmem:[#allocation49_spill] sm:$0xff]  ;;  %v5481_v35 = vld [vmem:[#allocation4_spill] sm:$0xff]  ;;  %v5486_v2 = vld [vmem:[#allocation27_spill] sm:$0xff] }
 0x217   : > { %v1307_v25 = vadd.f32 %v3745_v10, %v1139_v34  ;;  %v1308_v43 = vadd.f32 %v3745_v10, %v1140_v63  ;;  %v5473_v10 = vld [vmem:[#allocation20_spill] sm:$0xff]  ;;  %v1370_v63 = vmax.f32 %v1274_v8, 0.0  ;;  %v1395_v6 = vmax.f32 %v1299_v38, 0.0 }
 0x218   : > { %1736 = vmatpush.msrb.mxu0 %v1385_v37  ;;  %1801 = vmatpush.msrb.mxu1 %v1386_v27  ;;  %v1100_v34 = vmax.f32 %v5474_v18, %v5473_v10  ;;  %v1396_v32 = vmax.f32 %v1300_v0, 0.0  ;;  %v1091_v1 = vmax.f32 %v5476_v31, %v5475_v3  ;;  %v1092_v37 = vmax.f32 %v5478_v14, %v5477_v9  ;;  %v5491_v9 = vld [vmem:[#allocation36_spill] sm:$0xff]  ;;  %v5492_v14 = vld [vmem:[#allocation50_spill] sm:$0xff] }
 0x219   : > { %v1403_v15 = vmax.f32 %v1307_v25, 0.0  ;;  %v1404_v23 = vmax.f32 %v1308_v43, 0.0  ;;  %v1361_v7 = vmax.f32 %v4529_v5, 0.0  ;;  %v1362_v8 = vmax.f32 %v4532_v57, 0.0 }
 0x21a   : > { %1737 = vmatpush.msrb.mxu0 %v1377_v26  ;;  %1802 = vmatpush.msrb.mxu1 %v1378_v17  ;;  %v1275_v54 = vadd.f32 %v5341_v55, %v1107_v11  ;;  %v1276_v52 = vadd.f32 %v5341_v55, %v1108_v48  ;;  %v1387_v0 = vmax.f32 %v1291_v39, 0.0  ;;  %v1388_v43 = vmax.f32 %v1292_v59, 0.0  ;;  %v5482_v26 = vld [vmem:[#allocation45_spill] sm:$0xff]  ;;  %v5483_v59 = vld [vmem:[#allocation7_spill] sm:$0xff] }
 0x21b   : > { %1864 = vmatpush.msrb.mxu2 %v1403_v15  ;;  %1929 = vmatpush.msrb.mxu3 %v1404_v23  ;;  %v1083_v45 = vmax.f32 %v5480_v4, %v5479_v60  ;;  %v1084_v5 = vmax.f32 %v5482_v26, %v5481_v35  ;;  %v1353_v57 = vmax.f32 %v4499_v47, 0.0  ;;  %v1354_v55 = vmax.f32 %v4526_v62, 0.0  ;;  %v5484_v15 = vld [vmem:[#allocation48_spill] sm:$0xff]  ;;  %v5495_v26 = vld [vmem:[#allocation13_spill] sm:$0xff] }
 0x21c   : > { %v4578_v27 = vpop.f32.mrf.mxu2  ;;  %v4580_v25 = vpop.f32.mrf.mxu3  ;;  %1738 = vmatpush.msrb.mxu0 %v1369_v61  ;;  %1803 = vmatpush.msrb.mxu1 %v1370_v63  ;;  %v1267_v11 = vadd.f32 %v3862_v41, %v1099_v21  ;;  %v1268_v48 = vadd.f32 %v3862_v41, %v1100_v34  ;;  %v1379_v17 = vmax.f32 %v1283_v53, 0.0  ;;  %v1380_v39 = vmax.f32 %v1284_v19, 0.0  ;;  %v5487_v61 = vld [vmem:[#allocation6_spill] sm:$0xff]  ;;  %v5488_v63 = vld [vmem:[#allocation47_spill] sm:$0xff] }
 0x21d   : > { %1865 = vmatpush.msrb.mxu2 %v1395_v6  ;;  %1930 = vmatpush.msrb.mxu3 %v1396_v32  ;;  %v4586_v13 = vpop.f32.mrf.mxu0  ;;  %v4588_v38 = vpop.f32.mrf.mxu1  ;;  %v1075_v23 = vmax.f32 %v5484_v15, %v5483_v59  ;;  %v1076_v10 = vmax.f32 %v5486_v2, %v5485_v49  ;;  %v1345_v47 = vmax.f32 %v4486_v46, 0.0  ;;  %v1346_v62 = vmax.f32 %v4489_v30, 0.0  ;;  %v5489_v19 = vld [vmem:[#allocation30_spill] sm:$0xff] }
 0x21e   : > { %1739 = vmatpush.msrb.mxu0 %v1361_v7  ;;  %1804 = vmatpush.msrb.mxu1 %v1362_v8  ;;  %v1259_v21 = vadd.f32 %v5347_v44, %v1091_v1  ;;  %v1260_v41 = vadd.f32 %v5347_v44, %v1092_v37  ;;  %v1371_v18 = vmax.f32 %v1275_v54, 0.0  ;;  %v1372_v34 = vmax.f32 %v1276_v52, 0.0  ;;  %v5490_v6 = vld [vmem:[#allocation26_spill] sm:$0xff] }
 0x21f   : > { %1866 = vmatpush.msrb.mxu2 %v1387_v0  ;;  %1931 = vmatpush.msrb.mxu3 %v1388_v43  ;;  %v1067_v53 = vmax.f32 %v5488_v63, %v5487_v61  ;;  %v1068_v32 = vmax.f32 %v5490_v6, %v5489_v19  ;;  %v1337_v46 = vmax.f32 %v4480_v42, 0.0  ;;  %v1338_v30 = vmax.f32 %v4483_v51, 0.0  ;;  %v5493_v7 = vld [vmem:[#allocation10_spill] sm:$0xff] }
 0x220   : > { %1740 = vmatpush.msrb.mxu0 %v1353_v57  ;;  %1805 = vmatpush.msrb.mxu1 %v1354_v55  ;;  %v1251_v3 = vadd.f32 %v3913_v24, %v1083_v45  ;;  %v1252_v44 = vadd.f32 %v3913_v24, %v1084_v5  ;;  %v1363_v31 = vmax.f32 %v1267_v11, 0.0  ;;  %v1364_v1 = vmax.f32 %v1268_v48, 0.0  ;;  %v5494_v8 = vld [vmem:[#allocation2_spill] sm:$0xff]  ;;  %v5496_v5 = vld [vmem:[#allocation28_spill] sm:$0xff]  ;;  %v5497_v55 = vld [vmem:[#allocation35_spill] sm:$0xff] }
 0x221   : > { %1867 = vmatpush.msrb.mxu2 %v1379_v17  ;;  %1932 = vmatpush.msrb.mxu3 %v1380_v39  ;;  %v1059_v37 = vmax.f32 %v5492_v14, %v5491_v9  ;;  %v1060_v54 = vmax.f32 %v5494_v8, %v5493_v7  ;;  %v1329_v42 = vmax.f32 %v4474_v56, 0.0  ;;  %v1330_v24 = vmax.f32 %v4477_v58, 0.0  ;;  %v5498_v11 = vld [vmem:[#allocation29_spill] sm:$0xff]  ;;  %v5500_v19 = vld [vmem:[#allocation42_spill] sm:$0xff]  ;;  %v5502_v14 = vld [vmem:[#allocation16_spill] sm:$0xff] }
 0x222   : > { %1741 = vmatpush.msrb.mxu0 %v1345_v47  ;;  %1806 = vmatpush.msrb.mxu1 %v1346_v62  ;;  %v1243_v51 = vadd.f32 %v3931_v28, %v1075_v23  ;;  %v1244_v43 = vadd.f32 %v3931_v28, %v1076_v10  ;;  %v1355_v45 = vmax.f32 %v1259_v21, 0.0  ;;  %v1356_v35 = vmax.f32 %v1260_v41, 0.0  ;;  %v5499_v21 = vld [vmem:[#allocation22_spill] sm:$0xff] }
 0x223   : > { %1868 = vmatpush.msrb.mxu2 %v1371_v18  ;;  %1933 = vmatpush.msrb.mxu3 %v1372_v34  ;;  %v1051_v57 = vmax.f32 %v5496_v5, %v5495_v26  ;;  %v1052_v56 = vmax.f32 %v5498_v11, %v5497_v55  ;;  %v1321_v58 = vmax.f32 %v4468_v36, 0.0  ;;  %v1322_v28 = vmax.f32 %v4471_v40, 0.0 }
 0x224   : > { %v4618_v52 = vpop.f32.mrf.mxu2  ;;  %v4620_v0 = vpop.f32.mrf.mxu3  ;;  %1742 = vmatpush.msrb.mxu0 %v1337_v46  ;;  %1807 = vmatpush.msrb.mxu1 %v1338_v30  ;;  %v1235_v48 = vadd.f32 %v5395_v20, %v1067_v53  ;;  %v1236_v17 = vadd.f32 %v5395_v20, %v1068_v32  ;;  %v1347_v39 = vmax.f32 %v1251_v3, 0.0  ;;  %v1348_v59 = vmax.f32 %v1252_v44, 0.0  ;;  %v5501_v3 = vld [vmem:[#allocation39_spill] sm:$0xff] }
 0x225   : > { %1869 = vmatpush.msrb.mxu2 %v1363_v31  ;;  %1934 = vmatpush.msrb.mxu3 %v1364_v1  ;;  %v4626_v60 = vpop.f32.mrf.mxu0  ;;  %v4628_v4 = vpop.f32.mrf.mxu1  ;;  %v1313_v15 = vmax.f32 %v4458_v12, 0.0  ;;  %v1314_v23 = vmax.f32 %v4465_v16, 0.0  ;;  %v1227_v49 = vadd.f32 %v3984_v29, %v1059_v37  ;;  %v1228_v36 = vadd.f32 %v3984_v29, %v1060_v54 }
 0x226   : > { %1743 = vmatpush.msrb.mxu0 %v1329_v42  ;;  %1808 = vmatpush.msrb.mxu1 %v1330_v24  ;;  %v1339_v40 = vmax.f32 %v1243_v51, 0.0  ;;  %v1340_v2 = vmax.f32 %v1244_v43, 0.0  ;;  %v1219_v20 = vadd.f32 %v4014_v22, %v1051_v57  ;;  %v1220_v10 = vadd.f32 %v4014_v22, %v1052_v56  ;;  %v5503_v24 = vld [vmem:[#allocation38_spill] sm:$0xff]  ;;  %v5504_v57 = vld [vmem:[#allocation9_spill] sm:$0xff] }
 0x227   : > { %1870 = vmatpush.msrb.mxu2 %v1355_v45  ;;  %1935 = vmatpush.msrb.mxu3 %v1356_v35  ;;  %v1331_v47 = vmax.f32 %v1235_v48, 0.0  ;;  %v1332_v12 = vmax.f32 %v1236_v17, 0.0  ;;  %v1323_v22 = vmax.f32 %v1227_v49, 0.0  ;;  %v1324_v18 = vmax.f32 %v1228_v36, 0.0  ;;  %v4738_v48 = vpop.permute.xlu0 %2064 }
 0x228   : > { %1744 = vmatpush.msrb.mxu0 %v1321_v58  ;;  %1809 = vmatpush.msrb.mxu1 %v1322_v28  ;;  %v1315_v34 = vmax.f32 %v1219_v20, 0.0  ;;  %v1316_v61 = vmax.f32 %v1220_v10, 0.0  ;;  %v2230_v8 = vlaneseq }
 0x229   : > { %1871 = vmatpush.msrb.mxu2 %v1347_v39  ;;  %1936 = vmatpush.msrb.mxu3 %v1348_v59 }
 0x22a   : > { %1745 = vmatpush.msrb.mxu0 %v1313_v15  ;;  %1810 = vmatpush.msrb.mxu1 %v1314_v23  ;;  %v4720_v45 = vand.u32 127, %v2230_v8 }
 0x22b   : > { %1872 = vmatpush.msrb.mxu2 %v1339_v40  ;;  %1937 = vmatpush.msrb.mxu3 %v1340_v2 }
 0x22c   : > { %v4644_v62 = vpop.f32.mrf.mxu2  ;;  %v4646_v16 = vpop.f32.mrf.mxu3  ;;  %2842 = vmatmul.msk.f32.vlgmr.msrb.gmra.mxu0 %vm1421_vm1, %v5499_v21  ;;  %2858 = vmatmul.msk.f32.vlgmr.msrb.gmra.mxu1 %vm1421_vm1, %v5499_v21  ;;  %v2232_v35 = vadd.s32 128, %v4720_v45  ;;  %v2233_v59 = vadd.s32 256, %v4720_v45  ;;  %v2234_v15 = vadd.s32 384, %v4720_v45  ;;  %vm2247_vm2 = vcmp.lt.s32.totalorder %v4720_v45, 124 }
 0x22d   : > { %1873 = vmatpush.msrb.mxu2 %v1331_v47  ;;  %1938 = vmatpush.msrb.mxu3 %v1332_v12  ;;  %v4652_v29 = vpop.f32.mrf.mxu0  ;;  %v4654_v41 = vpop.f32.mrf.mxu1  ;;  %v5507_v47 = vld [vmem:[#allocation33_spill] sm:$0xff] }
 0x22e   : > { %v2240_v56 = vand.u32 127, %v2232_v35  ;;  %v2241_v2 = vand.u32 127, %v2233_v59  ;;  %v2242_v10 = vand.u32 127, %v2234_v15 }
 0x22f   : > { %1874 = vmatpush.msrb.mxu2 %v1323_v22  ;;  %1939 = vmatpush.msrb.mxu3 %v1324_v18 }
 0x230   : > { %vm4745_vm3 = vcmp.lt.s32.totalorder %v2240_v56, 124  ;;  %vm4774_vm4 = vcmp.lt.s32.totalorder %v2241_v2, 124  ;;  %vm4778_vm5 = vcmp.lt.s32.totalorder %v2242_v10, 124 }
 0x231   : > { %1875 = vmatpush.msrb.mxu2 %v1315_v34  ;;  %1940 = vmatpush.msrb.mxu3 %v1316_v61 }
 0x232   : > { %2874 = vmatmul.msk.f32.vlgmr.msrb.gmra.mxu2 %vm1421_vm1, %v5499_v21  ;;  %2890 = vmatmul.msk.f32.vlgmr.msrb.gmra.mxu3 %vm1421_vm1, %v5499_v21 }
 0x234   : > { %v4660_v63 = vpop.f32.mrf.mxu2  ;;  %v4662_v53 = vpop.f32.mrf.mxu3  ;;  %2843 = vmatmul.msk.f32.gmra.mxu0 %vm1421_vm1, %v5500_v19  ;;  %2859 = vmatmul.msk.f32.gmra.mxu1 %vm1421_vm1, %v5500_v19 }
 0x235   : > { %v4668_v6 = vpop.f32.mrf.mxu0  ;;  %v4670_v32 = vpop.f32.mrf.mxu1 }
 0x23a   : > { %2875 = vmatmul.msk.f32.gmra.mxu2 %vm1421_vm1, %v5500_v19  ;;  %2891 = vmatmul.msk.f32.gmra.mxu3 %vm1421_vm1, %v5500_v19 }
 0x23c   : > { %v4676_v46 = vpop.f32.mrf.mxu2  ;;  %v4678_v30 = vpop.f32.mrf.mxu3  ;;  %2844 = vmatmul.msk.f32.gmra.mxu0 %vm1421_vm1, %v5501_v3  ;;  %2860 = vmatmul.msk.f32.gmra.mxu1 %vm1421_vm1, %v5501_v3 }
 0x23d   : > { %v4684_v44 = vpop.f32.mrf.mxu0  ;;  %v4686_v31 = vpop.f32.mrf.mxu1 }
 0x242   : > { %2876 = vmatmul.msk.f32.gmra.mxu2 %vm1421_vm1, %v5501_v3  ;;  %2892 = vmatmul.msk.f32.gmra.mxu3 %vm1421_vm1, %v5501_v3  ;;  %v4770_v3 = vpop.permute.xlu1 %2069 }
 0x244   : > { %v4692_v1 = vpop.f32.mrf.mxu2  ;;  %v4694_v9 = vpop.f32.mrf.mxu3  ;;  %2845 = vmatmul.msk.f32.gmra.mxu0 %vm1421_vm1, %v5502_v14  ;;  %2861 = vmatmul.msk.f32.gmra.mxu1 %vm1421_vm1, %v5502_v14 }
 0x245   : > { %v4700_v37 = vpop.f32.mrf.mxu0  ;;  %v4702_v7 = vpop.f32.mrf.mxu1 }
 0x24a   : > { %2877 = vmatmul.msk.f32.gmra.mxu2 %vm1421_vm1, %v5502_v14  ;;  %2893 = vmatmul.msk.f32.gmra.mxu3 %vm1421_vm1, %v5502_v14 }
 0x24c   : > { %v4708_v54 = vpop.f32.mrf.mxu2  ;;  %v4710_v42 = vpop.f32.mrf.mxu3  ;;  %2846 = vmatmul.msk.f32.gmra.mxu0 %vm1421_vm1, %v5503_v24  ;;  %2862 = vmatmul.msk.f32.gmra.mxu1 %vm1421_vm1, %v5503_v24 }
 0x24d   : > { %v4716_v51 = vpop.f32.mrf.mxu0  ;;  %v4718_v43 = vpop.f32.mrf.mxu1 }
 0x252   : > { %2878 = vmatmul.msk.f32.gmra.mxu2 %vm1421_vm1, %v5503_v24  ;;  %2894 = vmatmul.msk.f32.gmra.mxu3 %vm1421_vm1, %v5503_v24 }
 0x254   : > { %v4728_v26 = vpop.f32.mrf.mxu2  ;;  %v4730_v5 = vpop.f32.mrf.mxu3  ;;  %2847 = vmatmul.msk.f32.gmra.mxu0 %vm1421_vm1, %v5504_v57  ;;  %2863 = vmatmul.msk.f32.gmra.mxu1 %vm1421_vm1, %v5504_v57 }
 0x255   : > { %v1511_v55 = vpop.f32.mrf.mxu0  ;;  %v1576_v11 = vpop.f32.mrf.mxu1 }
 0x256   : > { %v1990_v58 = vmax.f32 %v4550_v33, %v1511_v55  ;;  %v1991_v28 = vmax.f32 %v4552_v50, %v1576_v11 }
 0x258   : > { %v2102_v17 = vadd.f32 %v4738_v48, %v1990_v58  ;;  %v2103_v39 = vadd.f32 %v4738_v48, %v1991_v28 }
 0x25a   : > { %v2166_v33 = vmax.f32 %v2102_v17, 0.0  ;;  %v2167_v49 = vmax.f32 %v2103_v39, 0.0  ;;  %2879 = vmatmul.msk.f32.gmra.mxu2 %vm1421_vm1, %v5504_v57  ;;  %2895 = vmatmul.msk.f32.gmra.mxu3 %vm1421_vm1, %v5504_v57 }
 0x25c   : > { %v2255_v50 = vsel %vm2247_vm2, %v2166_v33, 0.0  ;;  %v2256_v36 = vsel %vm4745_vm3, %v2167_v49, 0.0  ;;  %v1641_v40 = vpop.f32.mrf.mxu2  ;;  %v1706_v20 = vpop.f32.mrf.mxu3  ;;  %2848 = vmatmul.msk.f32.gmra.mxu0 %vm1421_vm1, %v5507_v47  ;;  %2864 = vmatmul.msk.f32.gmra.mxu1 %vm1421_vm1, %v5507_v47  ;;  %v5512_v33 = vld [vmem:[#allocation34_spill] sm:$0xff] }
 0x25d   : > { %v2319_v12 = vpack.c.bf16 %v2256_v36, %v2255_v50  ;;  %v1992_v21 = vmax.f32 %v4578_v27, %v1641_v40  ;;  %v1993_v22 = vmax.f32 %v4580_v25, %v1706_v20  ;;  %v1514_v18 = vpop.f32.mrf.mxu0  ;;  %v1579_v34 = vpop.f32.mrf.mxu1  ;;  %v3076_v25 = vld [vmem:[%s5236_s3 + $0x78] sm:$0xff] }
 0x25e   : > { %v1998_v61 = vmax.f32 %v4586_v13, %v1514_v18  ;;  %v1999_v19 = vmax.f32 %v4588_v38, %v1579_v34 }
 0x25f   : > { %v2367_v14 = vrot.slane %v2319_v12, 4  ;;  %v2104_v8 = vadd.f32 %v4738_v48, %v1992_v21  ;;  %v2105_v27 = vadd.f32 %v4738_v48, %v1993_v22  ;;  %v4805_v22 = vpop.permute.xlu2 %2074 }
 0x260   : > { %v2110_v35 = vadd.f32 %v4770_v3, %v1998_v61  ;;  %v2111_v13 = vadd.f32 %v4770_v3, %v1999_v19 }
 0x261   : > { %2906 = vst [vmem:[%s4766_s9 + $0x20] sm:$0xf] %v2367_v14  ;;  %v2168_v38 = vmax.f32 %v2104_v8, 0.0  ;;  %v2169_v57 = vmax.f32 %v2105_v27, 0.0 }
 0x262   : > { %v2174_v55 = vmax.f32 %v2110_v35, 0.0  ;;  %v2175_v11 = vmax.f32 %v2111_v13, 0.0  ;;  %2880 = vmatmul.msk.f32.gmra.mxu2 %vm1421_vm1, %v5507_v47  ;;  %2896 = vmatmul.msk.f32.gmra.mxu3 %vm1421_vm1, %v5507_v47 }
 0x263   : > { %v2257_v56 = vsel %vm4774_vm4, %v2168_v38, 0.0  ;;  %v2258_v58 = vsel %vm4778_vm5, %v2169_v57, 0.0 }
 0x264   : > { %v2320_v28 = vpack.c.bf16 %v2258_v58, %v2257_v56  ;;  %v2263_v17 = vsel %vm2247_vm2, %v2174_v55, 0.0  ;;  %v2264_v39 = vsel %vm4745_vm3, %v2175_v11, 0.0  ;;  %v1644_v59 = vpop.f32.mrf.mxu2  ;;  %v1709_v15 = vpop.f32.mrf.mxu3  ;;  %2849 = vmatmul.msk.f32.gmra.mxu0 %vm1421_vm1, %v5512_v33  ;;  %2865 = vmatmul.msk.f32.gmra.mxu1 %vm1421_vm1, %v5512_v33  ;;  %v5513_v11 = vld [vmem:[#allocation3_spill] sm:$0xff] }
 0x265   : > { %v2969_v49 = vpack.c.bf16 %v2263_v17, %v2255_v50  ;;  %v2323_v36 = vpack.c.bf16 %v2264_v39, %v2263_v17  ;;  %v2000_v40 = vmax.f32 %v4618_v52, %v1644_v59  ;;  %v2001_v2 = vmax.f32 %v4620_v0, %v1709_v15  ;;  %v1517_v20 = vpop.f32.mrf.mxu0  ;;  %v1582_v10 = vpop.f32.mrf.mxu1 }
 0x266   : > { %v2409_v47 = vrot.slane %v2320_v28, 4  ;;  %v2006_v12 = vmax.f32 %v4626_v60, %v1517_v20  ;;  %v2007_v21 = vmax.f32 %v4628_v4, %v1582_v10 }
 0x267   : > { %2970 = vst [vmem:[%s4766_s9] sm:$0xff] %v2969_v49   ;;  %v2368_v18 = vrot.slane %v2323_v36, 4  ;;  %v2112_v34 = vadd.f32 %v4770_v3, %v2000_v40  ;;  %v2113_v50 = vadd.f32 %v4770_v3, %v2001_v2  ;;  %v4835_v49 = vpop.permute.xlu0 %2079 }
 0x268   : > { %2922 = vst [vmem:[%s4766_s9 + $0x60] sm:$0xf] %v2409_v47  ;;  %v2118_v52 = vadd.f32 %v4805_v22, %v2006_v12  ;;  %v2119_v0 = vadd.f32 %v4805_v22, %v2007_v21 }
 0x269   : > { %2907 = vst [vmem:[%s4766_s9 + $0x24] sm:$0xf] %v2368_v18  ;;  %v2176_v61 = vmax.f32 %v2112_v34, 0.0  ;;  %v2177_v19 = vmax.f32 %v2113_v50, 0.0 }
 0x26a   : > { %v2182_v14 = vmax.f32 %v2118_v52, 0.0  ;;  %v2183_v60 = vmax.f32 %v2119_v0, 0.0  ;;  %2881 = vmatmul.msk.f32.gmra.mxu2 %vm1421_vm1, %v5512_v33  ;;  %2897 = vmatmul.msk.f32.gmra.mxu3 %vm1421_vm1, %v5512_v33  ;;  %v5514_v0 = vld [vmem:[#allocation8_spill] sm:$0xff] }
 0x26b   : > { %v2265_v4 = vsel %vm4774_vm4, %v2176_v61, 0.0  ;;  %v2266_v8 = vsel %vm4778_vm5, %v2177_v19, 0.0 }
 0x26c   : > { %v2989_v27 = vpack.c.bf16 %v2265_v4, %v2257_v56  ;;  %v2324_v35 = vpack.c.bf16 %v2266_v8, %v2265_v4  ;;  %v2271_v13 = vsel %vm2247_vm2, %v2182_v14, 0.0  ;;  %v2272_v38 = vsel %vm4745_vm3, %v2183_v60, 0.0  ;;  %v1647_v57 = vpop.f32.mrf.mxu2  ;;  %v1712_v55 = vpop.f32.mrf.mxu3  ;;  %2850 = vmatmul.msk.f32.gmra.mxu0 %vm1421_vm1, %v5513_v11  ;;  %2866 = vmatmul.msk.f32.gmra.mxu1 %vm1421_vm1, %v5513_v11 }
 0x26d   : > { %v2327_v58 = vpack.c.bf16 %v2272_v38, %v2271_v13  ;;  %v2008_v56 = vmax.f32 %v4644_v62, %v1647_v57  ;;  %v2009_v28 = vmax.f32 %v4646_v16, %v1712_v55  ;;  %v1520_v17 = vpop.f32.mrf.mxu0  ;;  %v1585_v39 = vpop.f32.mrf.mxu1 }
 0x26e   : > { %3049 = vst [vmem:[%s4766_s9 + $0x40] sm:$0xff] %v2989_v27   ;;  %v2410_v59 = vrot.slane %v2324_v35, 4  ;;  %v2014_v15 = vmax.f32 %v4652_v29, %v1520_v17  ;;  %v2015_v33 = vmax.f32 %v4654_v41, %v1585_v39  ;;  %v4863_v57 = vpop.permute.xlu1 %2084 }
 0x26f   : > { %v2369_v36 = vrot.slane %v2327_v58, 4  ;;  %v2120_v40 = vadd.f32 %v4805_v22, %v2008_v56  ;;  %v2121_v2 = vadd.f32 %v4805_v22, %v2009_v28 }
 0x270   : > { %2923 = vst [vmem:[%s4766_s9 + $0x64] sm:$0xf] %v2410_v59  ;;  %v2126_v62 = vadd.f32 %v4835_v49, %v2014_v15  ;;  %v2127_v16 = vadd.f32 %v4835_v49, %v2015_v33 }
 0x271   : > { %2908 = vst [vmem:[%s4766_s9 + $0x28] sm:$0xf] %v2369_v36  ;;  %v2184_v20 = vmax.f32 %v2120_v40, 0.0  ;;  %v2185_v10 = vmax.f32 %v2121_v2, 0.0  ;;  %v5515_v2 = vld [vmem:[#allocation14_spill] sm:$0xff] }
 0x272   : > { %v2190_v47 = vmax.f32 %v2126_v62, 0.0  ;;  %v2191_v12 = vmax.f32 %v2127_v16, 0.0  ;;  %2882 = vmatmul.msk.f32.gmra.mxu2 %vm1421_vm1, %v5513_v11  ;;  %2898 = vmatmul.msk.f32.gmra.mxu3 %vm1421_vm1, %v5513_v11 }
 0x273   : > { %v2273_v29 = vsel %vm4774_vm4, %v2184_v20, 0.0  ;;  %v2274_v41 = vsel %vm4778_vm5, %v2185_v10, 0.0 }
 0x274   : > { %v2328_v21 = vpack.c.bf16 %v2274_v41, %v2273_v29  ;;  %v2279_v18 = vsel %vm2247_vm2, %v2190_v47, 0.0  ;;  %v2280_v34 = vsel %vm4745_vm3, %v2191_v12, 0.0  ;;  %v1650_v50 = vpop.f32.mrf.mxu2  ;;  %v1715_v52 = vpop.f32.mrf.mxu3  ;;  %2851 = vmatmul.msk.f32.gmra.mxu0 %vm1421_vm1, %v5514_v0  ;;  %2867 = vmatmul.msk.f32.gmra.mxu1 %vm1421_vm1, %v5514_v0 }
 0x275   : > { %v2974_v61 = vpack.c.bf16 %v2279_v18, %v2271_v13  ;;  %v2331_v19 = vpack.c.bf16 %v2280_v34, %v2279_v18  ;;  %v2016_v14 = vmax.f32 %v4660_v63, %v1650_v50  ;;  %v2017_v60 = vmax.f32 %v4662_v53, %v1715_v52  ;;  %v1523_v4 = vpop.f32.mrf.mxu0  ;;  %v1588_v8 = vpop.f32.mrf.mxu1 }
 0x276   : > { %v2411_v27 = vrot.slane %v2328_v21, 4  ;;  %v2022_v35 = vmax.f32 %v4668_v6, %v1523_v4  ;;  %v2023_v38 = vmax.f32 %v4670_v32, %v1588_v8  ;;  %v4893_v21 = vpop.permute.xlu2 %2089 }
 0x277   : > { %3046 = vst [vmem:[%s4766_s9 + $0x8] sm:$0xff] %v2974_v61   ;;  %v2370_v55 = vrot.slane %v2331_v19, 4  ;;  %v2128_v11 = vadd.f32 %v4835_v49, %v2016_v14  ;;  %v2129_v13 = vadd.f32 %v4835_v49, %v2017_v60 }
 0x278   : > { %2924 = vst [vmem:[%s4766_s9 + $0x68] sm:$0xf] %v2411_v27  ;;  %v2134_v63 = vadd.f32 %v4863_v57, %v2022_v35  ;;  %v2135_v53 = vadd.f32 %v4863_v57, %v2023_v38  ;;  %v5516_v35 = vld [vmem:[#allocation23_spill] sm:$0xff] }
 0x279   : > { %2909 = vst [vmem:[%s4766_s9 + $0x2c] sm:$0xf] %v2370_v55  ;;  %v2192_v58 = vmax.f32 %v2128_v11, 0.0  ;;  %v2193_v56 = vmax.f32 %v2129_v13, 0.0 }
 0x27a   : > { %v2198_v28 = vmax.f32 %v2134_v63, 0.0  ;;  %v2199_v6 = vmax.f32 %v2135_v53, 0.0  ;;  %2883 = vmatmul.msk.f32.gmra.mxu2 %vm1421_vm1, %v5514_v0  ;;  %2899 = vmatmul.msk.f32.gmra.mxu3 %vm1421_vm1, %v5514_v0 }
 0x27b   : > { %v2281_v32 = vsel %vm4774_vm4, %v2192_v58, 0.0  ;;  %v2282_v17 = vsel %vm4778_vm5, %v2193_v56, 0.0 }
 0x27c   : > { %v2994_v39 = vpack.c.bf16 %v2281_v32, %v2273_v29  ;;  %v2332_v59 = vpack.c.bf16 %v2282_v17, %v2281_v32  ;;  %v2287_v15 = vsel %vm2247_vm2, %v2198_v28, 0.0  ;;  %v2288_v33 = vsel %vm4745_vm3, %v2199_v6, 0.0  ;;  %v1653_v36 = vpop.f32.mrf.mxu2  ;;  %v1718_v40 = vpop.f32.mrf.mxu3  ;;  %2852 = vmatmul.msk.f32.gmra.mxu0 %vm1421_vm1, %v5515_v2  ;;  %2868 = vmatmul.msk.f32.gmra.mxu1 %vm1421_vm1, %v5515_v2 }
 0x27d   : > { %v2335_v62 = vpack.c.bf16 %v2288_v33, %v2287_v15  ;;  %v2024_v16 = vmax.f32 %v4676_v46, %v1653_v36  ;;  %v2025_v20 = vmax.f32 %v4678_v30, %v1718_v40  ;;  %v1526_v10 = vpop.f32.mrf.mxu0  ;;  %v1591_v47 = vpop.f32.mrf.mxu1 }
 0x27e   : > { %3050 = vst [vmem:[%s4766_s9 + $0x48] sm:$0xff] %v2994_v39   ;;  %v2412_v12 = vrot.slane %v2332_v59, 4  ;;  %v2030_v29 = vmax.f32 %v4684_v44, %v1526_v10  ;;  %v2031_v41 = vmax.f32 %v4686_v31, %v1591_v47  ;;  %v4921_v6 = vpop.permute.xlu0 %2094  ;;  %v5517_v47 = vld [vmem:[#allocation55_spill] sm:$0xff] }
 0x27f   : > { %v2371_v18 = vrot.slane %v2335_v62, 4  ;;  %v2136_v34 = vadd.f32 %v4863_v57, %v2024_v16  ;;  %v2137_v50 = vadd.f32 %v4863_v57, %v2025_v20 }
 0x280   : > { %2925 = vst [vmem:[%s4766_s9 + $0x6c] sm:$0xf] %v2412_v12  ;;  %v2142_v46 = vadd.f32 %v4893_v21, %v2030_v29  ;;  %v2143_v30 = vadd.f32 %v4893_v21, %v2031_v41 }
 0x281   : > { %2910 = vst [vmem:[%s4766_s9 + $0x30] sm:$0xf] %v2371_v18  ;;  %v2200_v52 = vmax.f32 %v2136_v34, 0.0  ;;  %v2201_v0 = vmax.f32 %v2137_v50, 0.0 }
 0x282   : > { %v2206_v61 = vmax.f32 %v2142_v46, 0.0  ;;  %v2207_v19 = vmax.f32 %v2143_v30, 0.0  ;;  %2884 = vmatmul.msk.f32.gmra.mxu2 %vm1421_vm1, %v5515_v2  ;;  %2900 = vmatmul.msk.f32.gmra.mxu3 %vm1421_vm1, %v5515_v2 }
 0x283   : > { %v2289_v44 = vsel %vm4774_vm4, %v2200_v52, 0.0  ;;  %v2290_v31 = vsel %vm4778_vm5, %v2201_v0, 0.0  ;;  %v4951_v52 = vpop.permute.xlu1 %2099 }
 0x284   : > { %v2336_v14 = vpack.c.bf16 %v2290_v31, %v2289_v44  ;;  %v2295_v60 = vsel %vm2247_vm2, %v2206_v61, 0.0  ;;  %v2296_v4 = vsel %vm4745_vm3, %v2207_v19, 0.0  ;;  %v1656_v8 = vpop.f32.mrf.mxu2  ;;  %v1721_v27 = vpop.f32.mrf.mxu3  ;;  %2853 = vmatmul.msk.f32.gmra.mxu0 %vm1421_vm1, %v5516_v35  ;;  %2869 = vmatmul.msk.f32.gmra.mxu1 %vm1421_vm1, %v5516_v35 }
 0x285   : > { %v2979_v38 = vpack.c.bf16 %v2295_v60, %v2287_v15  ;;  %v2339_v55 = vpack.c.bf16 %v2296_v4, %v2295_v60  ;;  %v2032_v11 = vmax.f32 %v4692_v1, %v1656_v8  ;;  %v2033_v13 = vmax.f32 %v4694_v9, %v1721_v27  ;;  %v1529_v63 = vpop.f32.mrf.mxu0  ;;  %v1594_v53 = vpop.f32.mrf.mxu1 }
 0x286   : > { %v2413_v58 = vrot.slane %v2336_v14, 4  ;;  %v2038_v56 = vmax.f32 %v4700_v37, %v1529_v63  ;;  %v2039_v28 = vmax.f32 %v4702_v7, %v1594_v53 }
 0x287   : > { %3047 = vst [vmem:[%s4766_s9 + $0x10] sm:$0xff] %v2979_v38   ;;  %v2372_v32 = vrot.slane %v2339_v55, 4  ;;  %v2144_v17 = vadd.f32 %v4893_v21, %v2032_v11  ;;  %v2145_v39 = vadd.f32 %v4893_v21, %v2033_v13  ;;  %v3074_v11 = vld [vmem:[%s5236_s3 + $0x68] sm:$0xff] }
 0x288   : > { %2926 = vst [vmem:[%s4766_s9 + $0x70] sm:$0xf] %v2413_v58  ;;  %v2150_v1 = vadd.f32 %v4921_v6, %v2038_v56  ;;  %v2151_v9 = vadd.f32 %v4921_v6, %v2039_v28 }
 0x289   : > { %2911 = vst [vmem:[%s4766_s9 + $0x34] sm:$0xf] %v2372_v32  ;;  %v2208_v59 = vmax.f32 %v2144_v17, 0.0  ;;  %v2209_v15 = vmax.f32 %v2145_v39, 0.0 }
 0x28a   : > { %v2214_v33 = vmax.f32 %v2150_v1, 0.0  ;;  %v2215_v37 = vmax.f32 %v2151_v9, 0.0  ;;  %2885 = vmatmul.msk.f32.gmra.mxu2 %vm1421_vm1, %v5516_v35  ;;  %2901 = vmatmul.msk.f32.gmra.mxu3 %vm1421_vm1, %v5516_v35 }
 0x28b   : > { %v2297_v7 = vsel %vm4774_vm4, %v2208_v59, 0.0  ;;  %v2298_v36 = vsel %vm4778_vm5, %v2209_v15, 0.0  ;;  %v3075_v59 = vld [vmem:[%s5236_s3 + $0x70] sm:$0xff] }
 0x28c   : > { %v2999_v40 = vpack.c.bf16 %v2297_v7, %v2289_v44  ;;  %v2340_v2 = vpack.c.bf16 %v2298_v36, %v2297_v7  ;;  %v2303_v62 = vsel %vm2247_vm2, %v2214_v33, 0.0  ;;  %v2304_v16 = vsel %vm4745_vm3, %v2215_v37, 0.0  ;;  %v1659_v20 = vpop.f32.mrf.mxu2  ;;  %v1724_v10 = vpop.f32.mrf.mxu3  ;;  %2854 = vmatmul.msk.f32.gmra.mxu0 %vm1421_vm1, %v5517_v47  ;;  %2870 = vmatmul.msk.f32.gmra.mxu1 %vm1421_vm1, %v5517_v47 }
 0x28d   : > { %v2343_v12 = vpack.c.bf16 %v2304_v16, %v2303_v62  ;;  %v2040_v29 = vmax.f32 %v4708_v54, %v1659_v20  ;;  %v2041_v41 = vmax.f32 %v4710_v42, %v1724_v10  ;;  %v1532_v18 = vpop.f32.mrf.mxu0  ;;  %v1597_v34 = vpop.f32.mrf.mxu1 }
 0x28e   : > { %3051 = vst [vmem:[%s4766_s9 + $0x50] sm:$0xff] %v2999_v40   ;;  %v2414_v50 = vrot.slane %v2340_v2, 4  ;;  %v2046_v46 = vmax.f32 %v4716_v51, %v1532_v18  ;;  %v2047_v30 = vmax.f32 %v4718_v43, %v1597_v34  ;;  %v3073_v51 = vld [vmem:[%s5236_s3 + $0x60] sm:$0xff] }
 0x28f   : > { %v2373_v0 = vrot.slane %v2343_v12, 4  ;;  %v2152_v61 = vadd.f32 %v4921_v6, %v2040_v29  ;;  %v2153_v19 = vadd.f32 %v4921_v6, %v2041_v41 }
 0x290   : > { %2927 = vst [vmem:[%s4766_s9 + $0x74] sm:$0xf] %v2414_v50  ;;  %v2158_v54 = vadd.f32 %v4951_v52, %v2046_v46  ;;  %v2159_v42 = vadd.f32 %v4951_v52, %v2047_v30 }
 0x291   : > { %2912 = vst [vmem:[%s4766_s9 + $0x38] sm:$0xf] %v2373_v0  ;;  %v2216_v44 = vmax.f32 %v2152_v61, 0.0  ;;  %v2217_v31 = vmax.f32 %v2153_v19, 0.0 }
 0x292   : > { %v2222_v14 = vmax.f32 %v2158_v54, 0.0  ;;  %v2223_v60 = vmax.f32 %v2159_v42, 0.0  ;;  %2886 = vmatmul.msk.f32.gmra.mxu2 %vm1421_vm1, %v3073_v51  ;;  %2902 = vmatmul.msk.f32.gmra.mxu3 %vm1421_vm1, %v3073_v51 }
 0x293   : > { %v2305_v43 = vsel %vm4774_vm4, %v2216_v44, 0.0  ;;  %v2306_v4 = vsel %vm4778_vm5, %v2217_v31, 0.0 }
 0x294   : > { %v2344_v8 = vpack.c.bf16 %v2306_v4, %v2305_v43  ;;  %v2311_v27 = vsel %vm2247_vm2, %v2222_v14, 0.0  ;;  %v2312_v35 = vsel %vm4745_vm3, %v2223_v60, 0.0  ;;  %v1662_v38 = vpop.f32.mrf.mxu2  ;;  %v1727_v55 = vpop.f32.mrf.mxu3  ;;  %2855 = vmatmul.msk.f32.gmra.mxu0 %vm1421_vm1, %v3074_v11  ;;  %2871 = vmatmul.msk.f32.gmra.mxu1 %vm1421_vm1, %v3074_v11  ;;  %v2236_v4 = vadd.s32 640, %v4720_v45 }
 0x295   : > { %v2984_v13 = vpack.c.bf16 %v2311_v27, %v2303_v62  ;;  %v2347_v63 = vpack.c.bf16 %v2312_v35, %v2311_v27  ;;  %v2048_v53 = vmax.f32 %v4728_v26, %v1662_v38  ;;  %v2049_v58 = vmax.f32 %v4730_v5, %v1727_v55 }
 0x296   : > { %v2415_v23 = vrot.slane %v2344_v8, 4  ;;  %v2244_v38 = vand.u32 127, %v2236_v4 }
 0x297   : > { %3048 = vst [vmem:[%s4766_s9 + $0x18] sm:$0xff] %v2984_v13   ;;  %v2374_v56 = vrot.slane %v2347_v63, 4  ;;  %v2160_v28 = vadd.f32 %v4951_v52, %v2048_v53  ;;  %v2161_v32 = vadd.f32 %v4951_v52, %v2049_v58 }
 0x298   : > { %2928 = vst [vmem:[%s4766_s9 + $0x78] sm:$0xf] %v2415_v23  ;;  %vm5066_vm7 = vcmp.lt.s32.totalorder %v2244_v38, 124 }
 0x299   : > { %2913 = vst [vmem:[%s4766_s9 + $0x3c] sm:$0xf] %v2374_v56  ;;  %v2224_v17 = vmax.f32 %v2160_v28, 0.0  ;;  %v2225_v39 = vmax.f32 %v2161_v32, 0.0 }
 0x29a   : > { %2887 = vmatmul.msk.f32.gmra.mxu2 %vm1421_vm1, %v3074_v11  ;;  %2903 = vmatmul.msk.f32.gmra.mxu3 %vm1421_vm1, %v3074_v11 }
 0x29b   : > { %v2313_v26 = vsel %vm4774_vm4, %v2224_v17, 0.0  ;;  %v2314_v5 = vsel %vm4778_vm5, %v2225_v39, 0.0 }
 0x29c   : > { %v3004_v1 = vpack.c.bf16 %v2313_v26, %v2305_v43  ;;  %v2348_v9 = vpack.c.bf16 %v2314_v5, %v2313_v26  ;;  %2856 = vmatmul.msk.f32.gmra.mxu0 %vm1421_vm1, %v3075_v59  ;;  %2872 = vmatmul.msk.f32.gmra.mxu1 %vm1421_vm1, %v3075_v59  ;;  %v2235_v43 = vadd.s32 512, %v4720_v45 }
 0x29e   : > { %3052 = vst [vmem:[%s4766_s9 + $0x58] sm:$0xff] %v3004_v1   ;;  %v2416_v15 = vrot.slane %v2348_v9, 4  ;;  %v2243_v27 = vand.u32 127, %v2235_v43  ;;  %v2237_v9 = vadd.s32 768, %v4720_v45 }
 0x2a0   : > { %2929 = vst [vmem:[%s4766_s9 + $0x7c] sm:$0xf] %v2416_v15  ;;  %vm5062_vm6 = vcmp.lt.s32.totalorder %v2243_v27, 124 }
 0x2a2   : > { %2888 = vmatmul.msk.f32.gmra.mxu2 %vm1421_vm1, %v3075_v59  ;;  %2904 = vmatmul.msk.f32.gmra.mxu3 %vm1421_vm1, %v3075_v59  ;;  %v2238_v59 = vadd.s32 896, %v4720_v45 }
 0x2a4   : > { %2857 = vmatmul.msk.f32.gmra.mxu0 %vm1421_vm1, %v3076_v25  ;;  %2873 = vmatmul.msk.f32.gmra.mxu1 %vm1421_vm1, %v3076_v25 }
 0x2a9   : > { %v1747_v24 = vpop.f32.mrf.mxu0  ;;  %v1812_v33 = vpop.f32.mrf.mxu1 }
 0x2aa   : > { %2889 = vmatmul.msk.f32.gmra.mxu2 %vm1421_vm1, %v3076_v25  ;;  %2905 = vmatmul.msk.f32.gmra.mxu3 %vm1421_vm1, %v3076_v25 }
 0x2b1   : > { %v1750_v37 = vpop.f32.mrf.mxu0  ;;  %v1815_v7 = vpop.f32.mrf.mxu1 }
 0x2b5   : > { %v5006_v36 = vpop.f32.mrf.mxu2  ;;  %v5008_v40 = vpop.f32.mrf.mxu3 }
 0x2b9   : > { %v5010_v2 = vpop.f32.mrf.mxu0  ;;  %v5012_v62 = vpop.f32.mrf.mxu1 }
 0x2bd   : > { %v5014_v16 = vpop.f32.mrf.mxu2  ;;  %v5016_v20 = vpop.f32.mrf.mxu3 }
 0x2c1   : > { %v5018_v10 = vpop.f32.mrf.mxu0  ;;  %v5020_v47 = vpop.f32.mrf.mxu1 }
 0x2c5   : > { %v5022_v12 = vpop.f32.mrf.mxu2  ;;  %v5024_v29 = vpop.f32.mrf.mxu3 }
 0x2c9   : > { %v5026_v41 = vpop.f32.mrf.mxu0  ;;  %v5028_v18 = vpop.f32.mrf.mxu1 }
 0x2cd   : > { %v5030_v34 = vpop.f32.mrf.mxu2  ;;  %v5032_v50 = vpop.f32.mrf.mxu3 }
 0x2d1   : > { %v5034_v46 = vpop.f32.mrf.mxu0  ;;  %v5036_v30 = vpop.f32.mrf.mxu1 }
 0x2d5   : > { %v5038_v0 = vpop.f32.mrf.mxu2  ;;  %v5040_v61 = vpop.f32.mrf.mxu3 }
 0x2d9   : > { %v5042_v19 = vpop.f32.mrf.mxu0  ;;  %v5044_v54 = vpop.f32.mrf.mxu1 }
 0x2dd   : > { %v5046_v42 = vpop.f32.mrf.mxu2  ;;  %v5048_v44 = vpop.f32.mrf.mxu3 }
 0x2e1   : > { %v5050_v31 = vpop.f32.mrf.mxu0  ;;  %v5052_v14 = vpop.f32.mrf.mxu1 }
 0x2e5   : > { %v5054_v60 = vpop.f32.mrf.mxu2  ;;  %v5056_v51 = vpop.f32.mrf.mxu3 }
 0x2e9   : > { %v1771_v8 = vpop.f32.mrf.mxu0  ;;  %v1836_v35 = vpop.f32.mrf.mxu1 }
 0x2ea   : > { %v1994_v55 = vmax.f32 %v1747_v24, %v1771_v8  ;;  %v1995_v11 = vmax.f32 %v1812_v33, %v1836_v35  ;;  %v2245_v8 = vand.u32 127, %v2237_v9  ;;  %v2246_v35 = vand.u32 127, %v2238_v59 }
 0x2ec   : > { %v2106_v13 = vadd.f32 %v4738_v48, %v1994_v55  ;;  %v2107_v63 = vadd.f32 %v4738_v48, %v1995_v11  ;;  %vm5091_vm8 = vcmp.lt.s32.totalorder %v2245_v8, 124  ;;  %vm5095_vm9 = vcmp.lt.s32.totalorder %v2246_v35, 124 }
 0x2ed   : > { %v5070_v23 = vpop.f32.mrf.mxu2  ;;  %v5072_v56 = vpop.f32.mrf.mxu3 }
 0x2ee   : > { %v2170_v28 = vmax.f32 %v2106_v13, 0.0  ;;  %v2171_v32 = vmax.f32 %v2107_v63, 0.0 }
 0x2f0   : > { %v2259_v17 = vsel %vm5062_vm6, %v2170_v28, 0.0  ;;  %v2260_v39 = vsel %vm5066_vm7, %v2171_v32, 0.0 }
 0x2f1   : > { %v2321_v26 = vpack.c.bf16 %v2260_v39, %v2259_v17  ;;  %v1774_v5 = vpop.f32.mrf.mxu0  ;;  %v1839_v1 = vpop.f32.mrf.mxu1 }
 0x2f2   : > { %v2002_v15 = vmax.f32 %v1750_v37, %v1774_v5  ;;  %v2003_v25 = vmax.f32 %v1815_v7, %v1839_v1 }
 0x2f3   : > { %v2451_v24 = vrot.slane %v2321_v26, 4 }
 0x2f4   : > { %v2114_v33 = vadd.f32 %v4770_v3, %v2002_v15  ;;  %v2115_v43 = vadd.f32 %v4770_v3, %v2003_v25 }
 0x2f5   : > { %2938 = vst [vmem:[%s4766_s9 + $0xa0] sm:$0xf] %v2451_v24  ;;  %v1901_v4 = vpop.f32.mrf.mxu2  ;;  %v1966_v27 = vpop.f32.mrf.mxu3 }
 0x2f6   : > { %v2178_v38 = vmax.f32 %v2114_v33, 0.0  ;;  %v2179_v55 = vmax.f32 %v2115_v43, 0.0  ;;  %v1996_v11 = vmax.f32 %v5006_v36, %v1901_v4  ;;  %v1997_v13 = vmax.f32 %v5008_v40, %v1966_v27 }
 0x2f8   : > { %v2267_v45 = vsel %vm5062_vm6, %v2178_v38, 0.0  ;;  %v2268_v37 = vsel %vm5066_vm7, %v2179_v55, 0.0  ;;  %v2108_v7 = vadd.f32 %v4738_v48, %v1996_v11  ;;  %v2109_v63 = vadd.f32 %v4738_v48, %v1997_v13 }
 0x2f9   : > { %v3009_v28 = vpack.c.bf16 %v2267_v45, %v2259_v17  ;;  %v2325_v32 = vpack.c.bf16 %v2268_v37, %v2267_v45  ;;  %v1777_v40 = vpop.f32.mrf.mxu0  ;;  %v1842_v26 = vpop.f32.mrf.mxu1 }
 0x2fa   : > { %v2172_v5 = vmax.f32 %v2108_v7, 0.0  ;;  %v2173_v1 = vmax.f32 %v2109_v63, 0.0  ;;  %v2010_v9 = vmax.f32 %v5010_v2, %v1777_v40  ;;  %v2011_v59 = vmax.f32 %v5012_v62, %v1842_v26 }
 0x2fb   : > { %3053 = vst [vmem:[%s4766_s9 + $0x80] sm:$0xff] %v3009_v28   ;;  %v2452_v48 = vrot.slane %v2325_v32, 4 }
 0x2fc   : > { %v2261_v17 = vsel %vm5091_vm8, %v2172_v5, 0.0  ;;  %v2262_v15 = vsel %vm5095_vm9, %v2173_v1, 0.0  ;;  %v2122_v25 = vadd.f32 %v4805_v22, %v2010_v9  ;;  %v2123_v24 = vadd.f32 %v4805_v22, %v2011_v59 }
 0x2fd   : > { %2939 = vst [vmem:[%s4766_s9 + $0xa4] sm:$0xf] %v2452_v48  ;;  %v2322_v33 = vpack.c.bf16 %v2262_v15, %v2261_v17  ;;  %v1904_v43 = vpop.f32.mrf.mxu2  ;;  %v1969_v4 = vpop.f32.mrf.mxu3 }
 0x2fe   : > { %v2186_v2 = vmax.f32 %v2122_v25, 0.0  ;;  %v2187_v8 = vmax.f32 %v2123_v24, 0.0  ;;  %v2004_v62 = vmax.f32 %v5014_v16, %v1904_v43  ;;  %v2005_v27 = vmax.f32 %v5016_v20, %v1969_v4 }
 0x2ff   : > { %v2493_v35 = vrot.slane %v2322_v33, 4 }
 0x300   : > { %v2275_v38 = vsel %vm5062_vm6, %v2186_v2, 0.0  ;;  %v2276_v55 = vsel %vm5066_vm7, %v2187_v8, 0.0  ;;  %v2116_v11 = vadd.f32 %v4770_v3, %v2004_v62  ;;  %v2117_v13 = vadd.f32 %v4770_v3, %v2005_v27 }
 0x301   : > { %2954 = vst [vmem:[%s4766_s9 + $0xe0] sm:$0xf] %v2493_v35  ;;  %v2329_v45 = vpack.c.bf16 %v2276_v55, %v2275_v38  ;;  %v1780_v37 = vpop.f32.mrf.mxu0  ;;  %v1845_v7 = vpop.f32.mrf.mxu1 }
 0x302   : > { %v2180_v63 = vmax.f32 %v2116_v11, 0.0  ;;  %v2181_v16 = vmax.f32 %v2117_v13, 0.0  ;;  %v2018_v20 = vmax.f32 %v5018_v10, %v1780_v37  ;;  %v2019_v28 = vmax.f32 %v5020_v47, %v1845_v7 }
 0x303   : > { %v2453_v32 = vrot.slane %v2329_v45, 4 }
 0x304   : > { %v2269_v40 = vsel %vm5091_vm8, %v2180_v63, 0.0  ;;  %v2270_v26 = vsel %vm5095_vm9, %v2181_v16, 0.0  ;;  %v2130_v3 = vadd.f32 %v4835_v49, %v2018_v20  ;;  %v2131_v5 = vadd.f32 %v4835_v49, %v2019_v28 }
 0x305   : > { %2940 = vst [vmem:[%s4766_s9 + $0xa8] sm:$0xf] %v2453_v32  ;;  %v3029_v1 = vpack.c.bf16 %v2269_v40, %v2261_v17  ;;  %v2326_v9 = vpack.c.bf16 %v2270_v26, %v2269_v40  ;;  %v1907_v59 = vpop.f32.mrf.mxu2  ;;  %v1972_v10 = vpop.f32.mrf.mxu3 }
 0x306   : > { %v2194_v48 = vmax.f32 %v2130_v3, 0.0  ;;  %v2195_v15 = vmax.f32 %v2131_v5, 0.0  ;;  %v2012_v47 = vmax.f32 %v5022_v12, %v1907_v59  ;;  %v2013_v25 = vmax.f32 %v5024_v29, %v1972_v10 }
 0x307   : > { %3057 = vst [vmem:[%s4766_s9 + $0xc0] sm:$0xff] %v3029_v1   ;;  %v2494_v24 = vrot.slane %v2326_v9, 4 }
 0x308   : > { %v2283_v33 = vsel %vm5062_vm6, %v2194_v48, 0.0  ;;  %v2284_v43 = vsel %vm5066_vm7, %v2195_v15, 0.0  ;;  %v2124_v17 = vadd.f32 %v4805_v22, %v2012_v47  ;;  %v2125_v4 = vadd.f32 %v4805_v22, %v2013_v25 }
 0x309   : > { %2955 = vst [vmem:[%s4766_s9 + $0xe4] sm:$0xf] %v2494_v24  ;;  %v3014_v2 = vpack.c.bf16 %v2283_v33, %v2275_v38  ;;  %v2333_v8 = vpack.c.bf16 %v2284_v43, %v2283_v33  ;;  %v1783_v12 = vpop.f32.mrf.mxu0  ;;  %v1848_v62 = vpop.f32.mrf.mxu1 }
 0x30a   : > { %v2188_v29 = vmax.f32 %v2124_v17, 0.0  ;;  %v2189_v27 = vmax.f32 %v2125_v4, 0.0  ;;  %v2026_v35 = vmax.f32 %v5026_v41, %v1783_v12  ;;  %v2027_v55 = vmax.f32 %v5028_v18, %v1848_v62 }
 0x30b   : > { %3054 = vst [vmem:[%s4766_s9 + $0x88] sm:$0xff] %v3014_v2   ;;  %v2454_v11 = vrot.slane %v2333_v8, 4 }
 0x30c   : > { %v2277_v13 = vsel %vm5091_vm8, %v2188_v29, 0.0  ;;  %v2278_v22 = vsel %vm5095_vm9, %v2189_v27, 0.0  ;;  %v2138_v38 = vadd.f32 %v4863_v57, %v2026_v35  ;;  %v2139_v45 = vadd.f32 %v4863_v57, %v2027_v55 }
 0x30d   : > { %2941 = vst [vmem:[%s4766_s9 + $0xac] sm:$0xf] %v2454_v11  ;;  %v2330_v37 = vpack.c.bf16 %v2278_v22, %v2277_v13  ;;  %v1910_v7 = vpop.f32.mrf.mxu2  ;;  %v1975_v63 = vpop.f32.mrf.mxu3 }
 0x30e   : > { %v2202_v41 = vmax.f32 %v2138_v38, 0.0  ;;  %v2203_v16 = vmax.f32 %v2139_v45, 0.0  ;;  %v2020_v18 = vmax.f32 %v5030_v34, %v1910_v7  ;;  %v2021_v20 = vmax.f32 %v5032_v50, %v1975_v63 }
 0x30f   : > { %v2495_v28 = vrot.slane %v2330_v37, 4 }
 0x310   : > { %v2291_v32 = vsel %vm5062_vm6, %v2202_v41, 0.0  ;;  %v2292_v40 = vsel %vm5066_vm7, %v2203_v16, 0.0  ;;  %v2132_v26 = vadd.f32 %v4835_v49, %v2020_v18  ;;  %v2133_v3 = vadd.f32 %v4835_v49, %v2021_v20 }
 0x311   : > { %2956 = vst [vmem:[%s4766_s9 + $0xe8] sm:$0xf] %v2495_v28  ;;  %v2337_v5 = vpack.c.bf16 %v2292_v40, %v2291_v32  ;;  %v1786_v1 = vpop.f32.mrf.mxu0  ;;  %v1851_v9 = vpop.f32.mrf.mxu1 }
 0x312   : > { %v2196_v59 = vmax.f32 %v2132_v26, 0.0  ;;  %v2197_v34 = vmax.f32 %v2133_v3, 0.0  ;;  %v2034_v50 = vmax.f32 %v5034_v46, %v1786_v1  ;;  %v2035_v10 = vmax.f32 %v5036_v30, %v1851_v9 }
 0x313   : > { %v2455_v48 = vrot.slane %v2337_v5, 4 }
 0x314   : > { %v2285_v15 = vsel %vm5091_vm8, %v2196_v59, 0.0  ;;  %v2286_v47 = vsel %vm5095_vm9, %v2197_v34, 0.0  ;;  %v2146_v49 = vadd.f32 %v4893_v21, %v2034_v50  ;;  %v2147_v25 = vadd.f32 %v4893_v21, %v2035_v10 }
 0x315   : > { %2942 = vst [vmem:[%s4766_s9 + $0xb0] sm:$0xf] %v2455_v48  ;;  %v3034_v24 = vpack.c.bf16 %v2285_v15, %v2277_v13  ;;  %v2334_v33 = vpack.c.bf16 %v2286_v47, %v2285_v15  ;;  %v1913_v43 = vpop.f32.mrf.mxu2  ;;  %v1978_v46 = vpop.f32.mrf.mxu3 }
 0x316   : > { %v2210_v17 = vmax.f32 %v2146_v49, 0.0  ;;  %v2211_v4 = vmax.f32 %v2147_v25, 0.0  ;;  %v2028_v30 = vmax.f32 %v5038_v0, %v1913_v43  ;;  %v2029_v2 = vmax.f32 %v5040_v61, %v1978_v46 }
 0x317   : > { %3058 = vst [vmem:[%s4766_s9 + $0xc8] sm:$0xff] %v3034_v24   ;;  %v2496_v8 = vrot.slane %v2334_v33, 4 }
 0x318   : > { %v2299_v12 = vsel %vm5062_vm6, %v2210_v17, 0.0  ;;  %v2300_v62 = vsel %vm5066_vm7, %v2211_v4, 0.0  ;;  %v2140_v29 = vadd.f32 %v4863_v57, %v2028_v30  ;;  %v2141_v27 = vadd.f32 %v4863_v57, %v2029_v2 }
 0x319   : > { %2957 = vst [vmem:[%s4766_s9 + $0xec] sm:$0xf] %v2496_v8  ;;  %v3019_v35 = vpack.c.bf16 %v2299_v12, %v2291_v32  ;;  %v2341_v55 = vpack.c.bf16 %v2300_v62, %v2299_v12  ;;  %v1789_v0 = vpop.f32.mrf.mxu0  ;;  %v1854_v11 = vpop.f32.mrf.mxu1 }
 0x31a   : > { %v2204_v61 = vmax.f32 %v2140_v29, 0.0  ;;  %v2205_v13 = vmax.f32 %v2141_v27, 0.0  ;;  %v2042_v22 = vmax.f32 %v5042_v19, %v1789_v0  ;;  %v2043_v38 = vmax.f32 %v5044_v54, %v1854_v11 }
 0x31b   : > { %3055 = vst [vmem:[%s4766_s9 + $0x90] sm:$0xff] %v3019_v35   ;;  %v2456_v45 = vrot.slane %v2341_v55, 4 }
 0x31c   : > { %v2293_v37 = vsel %vm5091_vm8, %v2204_v61, 0.0  ;;  %v2294_v57 = vsel %vm5095_vm9, %v2205_v13, 0.0  ;;  %v2154_v7 = vadd.f32 %v4921_v6, %v2042_v22  ;;  %v2155_v63 = vadd.f32 %v4921_v6, %v2043_v38 }
 0x31d   : > { %2943 = vst [vmem:[%s4766_s9 + $0xb4] sm:$0xf] %v2456_v45  ;;  %v2338_v41 = vpack.c.bf16 %v2294_v57, %v2293_v37  ;;  %v1916_v16 = vpop.f32.mrf.mxu2  ;;  %v1981_v18 = vpop.f32.mrf.mxu3 }
 0x31e   : > { %v2218_v19 = vmax.f32 %v2154_v7, 0.0  ;;  %v2219_v20 = vmax.f32 %v2155_v63, 0.0  ;;  %v2036_v54 = vmax.f32 %v5046_v42, %v1916_v16  ;;  %v2037_v28 = vmax.f32 %v5048_v44, %v1981_v18 }
 0x31f   : > { %v2497_v32 = vrot.slane %v2338_v41, 4 }
 0x320   : > { %v2307_v40 = vsel %vm5062_vm6, %v2218_v19, 0.0  ;;  %v2308_v26 = vsel %vm5066_vm7, %v2219_v20, 0.0  ;;  %v2148_v3 = vadd.f32 %v4893_v21, %v2036_v54  ;;  %v2149_v5 = vadd.f32 %v4893_v21, %v2037_v28 }
 0x321   : > { %2958 = vst [vmem:[%s4766_s9 + $0xf0] sm:$0xf] %v2497_v32  ;;  %v2345_v1 = vpack.c.bf16 %v2308_v26, %v2307_v40  ;;  %v1792_v9 = vpop.f32.mrf.mxu0  ;;  %v1857_v59 = vpop.f32.mrf.mxu1 }
 0x322   : > { %v2212_v34 = vmax.f32 %v2148_v3, 0.0  ;;  %v2213_v42 = vmax.f32 %v2149_v5, 0.0  ;;  %v2050_v44 = vmax.f32 %v5050_v31, %v1792_v9  ;;  %v2051_v50 = vmax.f32 %v5052_v14, %v1857_v59 }
 0x323   : > { %v2457_v10 = vrot.slane %v2345_v1, 4 }
 0x324   : > { %v2301_v48 = vsel %vm5091_vm8, %v2212_v34, 0.0  ;;  %v2302_v15 = vsel %vm5095_vm9, %v2213_v42, 0.0  ;;  %v2162_v21 = vadd.f32 %v4951_v52, %v2050_v44  ;;  %v2163_v47 = vadd.f32 %v4951_v52, %v2051_v50 }
 0x325   : > { %2944 = vst [vmem:[%s4766_s9 + $0xb8] sm:$0xf] %v2457_v10  ;;  %v3039_v49 = vpack.c.bf16 %v2301_v48, %v2293_v37  ;;  %v2342_v25 = vpack.c.bf16 %v2302_v15, %v2301_v48  ;;  %v1919_v24 = vpop.f32.mrf.mxu2  ;;  %v1984_v31 = vpop.f32.mrf.mxu3 }
 0x326   : > { %v2226_v33 = vmax.f32 %v2162_v21, 0.0  ;;  %v2227_v14 = vmax.f32 %v2163_v47, 0.0  ;;  %v2044_v43 = vmax.f32 %v5054_v60, %v1919_v24  ;;  %v2045_v46 = vmax.f32 %v5056_v51, %v1984_v31 }
 0x327   : > { %3059 = vst [vmem:[%s4766_s9 + $0xd0] sm:$0xff] %v3039_v49   ;;  %v2498_v17 = vrot.slane %v2342_v25, 4 }
 0x328   : > { %v2315_v4 = vsel %vm5062_vm6, %v2226_v33, 0.0  ;;  %v2316_v30 = vsel %vm5066_vm7, %v2227_v14, 0.0  ;;  %v2156_v2 = vadd.f32 %v4921_v6, %v2044_v43  ;;  %v2157_v8 = vadd.f32 %v4921_v6, %v2045_v46 }
 0x329   : > { %2959 = vst [vmem:[%s4766_s9 + $0xf4] sm:$0xf] %v2498_v17  ;;  %v3024_v12 = vpack.c.bf16 %v2315_v4, %v2307_v40  ;;  %v2349_v62 = vpack.c.bf16 %v2316_v30, %v2315_v4 }
 0x32a   : > { %v2220_v60 = vmax.f32 %v2156_v2, 0.0  ;;  %v2221_v29 = vmax.f32 %v2157_v8, 0.0 }
 0x32b   : > { %3056 = vst [vmem:[%s4766_s9 + $0x98] sm:$0xff] %v3024_v12   ;;  %v2458_v51 = vrot.slane %v2349_v62, 4 }
 0x32c   : > { %v2309_v27 = vsel %vm5091_vm8, %v2220_v60, 0.0  ;;  %v2310_v53 = vsel %vm5095_vm9, %v2221_v29, 0.0 }
 0x32d   : > { %2945 = vst [vmem:[%s4766_s9 + $0xbc] sm:$0xf] %v2458_v51  ;;  %v2346_v58 = vpack.c.bf16 %v2310_v53, %v2309_v27  ;;  %v1922_v35 = vpop.f32.mrf.mxu2  ;;  %v1987_v6 = vpop.f32.mrf.mxu3 }
 0x32e   : > { %v2052_v55 = vmax.f32 %v5070_v23, %v1922_v35  ;;  %v2053_v0 = vmax.f32 %v5072_v56, %v1987_v6 }
 0x32f   : > { %v2499_v11 = vrot.slane %v2346_v58, 4 }
 0x330   : > { %v2164_v61 = vadd.f32 %v4951_v52, %v2052_v55  ;;  %v2165_v13 = vadd.f32 %v4951_v52, %v2053_v0 }
 0x331   : > { %2960 = vst [vmem:[%s4766_s9 + $0xf8] sm:$0xf] %v2499_v11 }
 0x332   : > { %v2228_v22 = vmax.f32 %v2164_v61, 0.0  ;;  %v2229_v38 = vmax.f32 %v2165_v13, 0.0 }
 0x334   : > { %v2317_v45 = vsel %vm5091_vm8, %v2228_v22, 0.0  ;;  %v2318_v37 = vsel %vm5095_vm9, %v2229_v38, 0.0 }
 0x335   : > { %v3044_v57 = vpack.c.bf16 %v2317_v45, %v2309_v27  ;;  %v2350_v7 = vpack.c.bf16 %v2318_v37, %v2317_v45 }
 0x337   : > { %3060 = vst [vmem:[%s4766_s9 + $0xd8] sm:$0xff] %v3044_v57   ;;  %v2500_v23 = vrot.slane %v2350_v7, 4 }
 0x339   : > { %2961 = vst [vmem:[%s4766_s9 + $0xfc] sm:$0xf] %v2500_v23 }
 0x33a PF: > { %s15_s18 = sadd.s32 1, %s3083_s18  }
 0x33b   : > { %p12_p5 = scmp.ge.s32.totalorder %s15_s18, 4  }
 0x33d   :  { %14 = sbr.rel (!%p12_p5) target bundleno = 1 (0x1), region = 77 }

// kernel: model_ecg_forward_packed.3
= control target key start
LH: loop header
LB: loop body
LE: loop exit
PB: predicated region body
PF: predicated region fallthrough
CT: control target
= control target key end

     0   :  { %s9155_s0 = inlined_call_operand.vmem [shape: bf16[16,8192], index: 0, kind: input, shape index: {}]   ;;  %s9156_s1 = inlined_call_operand.hbm [shape: bf16[8192,128], index: 1, kind: input, shape index: {}]   ;;  %s9157_s2 = inlined_call_operand.hbm [shape: f32[1,128], index: 2, kind: input, shape index: {}]   ;;  %s9158_s3 = inlined_call_operand.vmem [shape: f32[128,8], index: 3, kind: input, shape index: {}]   ;;  %s9159_s4 = inlined_call_operand.hbm [shape: f32[1,8], index: 4, kind: input, shape index: {}]   ;;  %s9160_s5 = inlined_call_operand.vmem [shape: f32[8,1], index: 5, kind: input, shape index: {}]   ;;  %s9161_s6 = inlined_call_operand.<no memory space> [shape: f32[1,1], index: 6, kind: input, shape index: {}]   ;;  %s9162_s7 = inlined_call_operand.vmem [shape: f32[16,1], index: 7, kind: output, shape index: {}]  }
   0x1   :  { %v12_v0 = vstv %s9161_s6 }
   0x2   :  { %13 = vst [vmem:[#allocation2] sm:$0x1] %v12_v0 }
   0x3   :  { %14 = vsyncpa [#allocation4], 0 }
   0x4   :  { %15 = vsyncpa [#allocation6], 0  ;;  %s36_s28 = sshll.u32 %s9157_s2, 4  ;;  %s8576_s29 = smov [#allocation5]   ;;  %s37_s28 = int_to_ptr.hbm [resolvable:$true] %s36_s28 }
   0x5   :  { %s38_s30 = sshll.u32 %s8576_s29, 4  ;;  %s22_s10 = sshll.u32 %s9156_s1, 4  ;;  %s39_s30 = int_to_ptr.vmem [resolvable:$true] %s38_s30  ;;  %s23_s10 = int_to_ptr.hbm [resolvable:$true] %s22_s10 }
   0x6   :  { %41 = dma.hbm_to_vmem [thread:$0]  %s37_s28, 16, %s39_s30, [#allocation6]  }
   0x7   :  { %s8577_s11 = smov [#allocation3]   ;;  %s8578_s6 = smov 64  }
   0x8   :  { %s24_s12 = sshll.u32 %s8577_s11, 4  ;;  %s8579_s13 = smov 4   ;;  %s25_s12 = int_to_ptr.vmem [resolvable:$true] %s24_s12 }
   0x9   :  { %30 = dma.hbm_to_vmem [thread:$0]  %s23_s10, 65536, %s25_s12, [#allocation4], %s8578_s6, %s8578_s6, %s8579_s13  }
   0xa   :  { %s49_s2 = sshll.u32 %s9159_s4, 4  ;;  %s8580_s16 = smov [#allocation7]   ;;  %s50_s2 = int_to_ptr.hbm [resolvable:$true] %s49_s2 }
   0xb   :  { %s51_s17 = sshll.u32 %s8580_s16, 4  ;;  %s52_s17 = int_to_ptr.vmem [resolvable:$true] %s51_s17 }
   0xc   :  { %54 = dma.hbm_to_vmem [thread:$0]  %s50_s2, 16, %s52_s17, [#allocation6]  }
   0xd   :  { %8572 = dma.done.wait [#allocation4], 65536  }
   0xe   :  { %8573 = vsyncadd [#allocation4], 4294901760 }
   0xf   :  { %8574 = dma.done.wait [#allocation6], 32  }
  0x10   :  { %8575 = vsyncadd [#allocation6], 4294967264  ;;  %v7959_v1 = vld [vmem:[#allocation3 + $0x38] sm:$0xff]  ;;  %v7958_v5 = vld [vmem:[#allocation3 + $0x30] sm:$0xff]  ;;  %vm5503_vm0 = vcmask 64512   ;;  %vm5571_vm4 = vcmask 7168  }
  0x11   :  { %v7967_v2 = vld [vmem:[#allocation3 + $0x78] sm:$0xff]  ;;  %4555 = vmatpush.bf16.msra.mxu0 %v7959_v1  ;;  %v7966_v6 = vld [vmem:[#allocation3 + $0x70] sm:$0xff]  ;;  %v7957_v9 = vld [vmem:[#allocation3 + $0x28] sm:$0xff] }
  0x12   :  { %v7975_v3 = vld [vmem:[#allocation3 + $0xb8] sm:$0xff]  ;;  %4569 = vmatpush.bf16.msra.mxu1 %v7967_v2  ;;  %v7974_v7 = vld [vmem:[#allocation3 + $0xb0] sm:$0xff]  ;;  %v7965_v10 = vld [vmem:[#allocation3 + $0x68] sm:$0xff] }
  0x13   :  { %v7983_v4 = vld [vmem:[#allocation3 + $0xf8] sm:$0xff]  ;;  %4583 = vmatpush.bf16.msra.mxu2 %v7975_v3  ;;  %v7982_v8 = vld [vmem:[#allocation3 + $0xf0] sm:$0xff]  ;;  %v7973_v11 = vld [vmem:[#allocation3 + $0xa8] sm:$0xff] }
  0x14   :  { %4597 = vmatpush.bf16.msra.mxu3 %v7983_v4  ;;  %v7981_v12 = vld [vmem:[#allocation3 + $0xe8] sm:$0xff]  ;;  %v7956_v13 = vld [vmem:[#allocation3 + $0x20] sm:$0xff]  ;;  %v7955_v17 = vld [vmem:[#allocation3 + $0x18] sm:$0xff] }
  0x15   :  { %4556 = vmatpush.bf16.msra.mxu0 %v7958_v5  ;;  %v7964_v14 = vld [vmem:[#allocation3 + $0x60] sm:$0xff]  ;;  %v7963_v18 = vld [vmem:[#allocation3 + $0x58] sm:$0xff]  ;;  %v7954_v21 = vld [vmem:[#allocation3 + $0x10] sm:$0xff] }
  0x16   :  { %4570 = vmatpush.bf16.msra.mxu1 %v7966_v6  ;;  %v7972_v15 = vld [vmem:[#allocation3 + $0xa0] sm:$0xff]  ;;  %v7971_v19 = vld [vmem:[#allocation3 + $0x98] sm:$0xff]  ;;  %v7962_v22 = vld [vmem:[#allocation3 + $0x50] sm:$0xff] }
  0x17   :  { %4584 = vmatpush.bf16.msra.mxu2 %v7974_v7  ;;  %v7980_v16 = vld [vmem:[#allocation3 + $0xe0] sm:$0xff]  ;;  %v7979_v20 = vld [vmem:[#allocation3 + $0xd8] sm:$0xff]  ;;  %v7970_v23 = vld [vmem:[#allocation3 + $0x90] sm:$0xff] }
  0x18   :  { %4598 = vmatpush.bf16.msra.mxu3 %v7982_v8  ;;  %v7978_v24 = vld [vmem:[#allocation3 + $0xd0] sm:$0xff]  ;;  %v7953_v25 = vld [vmem:[#allocation3 + $0x8] sm:$0xff]  ;;  %v7952_v29 = vld [vmem:[#allocation3] sm:$0xff] }
  0x19   :  { %4557 = vmatpush.bf16.msra.mxu0 %v7957_v9  ;;  %v7961_v26 = vld [vmem:[#allocation3 + $0x48] sm:$0xff]  ;;  %v7960_v30 = vld [vmem:[#allocation3 + $0x40] sm:$0xff]  ;;  %v7991_v33 = vld [vmem:[#allocation3 + $0x138] sm:$0xff] }
  0x1a   :  { %4571 = vmatpush.bf16.msra.mxu1 %v7965_v10  ;;  %v7969_v27 = vld [vmem:[#allocation3 + $0x88] sm:$0xff]  ;;  %v7968_v31 = vld [vmem:[#allocation3 + $0x80] sm:$0xff]  ;;  %v7999_v34 = vld [vmem:[#allocation3 + $0x178] sm:$0xff] }
  0x1b   :  { %4585 = vmatpush.bf16.msra.mxu2 %v7973_v11  ;;  %v7977_v28 = vld [vmem:[#allocation3 + $0xc8] sm:$0xff]  ;;  %v7976_v32 = vld [vmem:[#allocation3 + $0xc0] sm:$0xff]  ;;  %v8007_v43 = vld [vmem:[#allocation3 + $0x1b8] sm:$0xff] }
  0x1c   :  { %4599 = vmatpush.bf16.msra.mxu3 %v7981_v12  ;;  %v5582_v35 = vld [vmem:[%s9155_s0] sm:$0xf]  ;;  %v5590_v37 = vld [vmem:[%s9155_s0 + $0x8] sm:$0xf]  ;;  %v7888_v39 = vld [vmem:[%s9155_s0 + $0x4] sm:$0xf] }
  0x1d   :  { %4558 = vmatpush.bf16.msra.mxu0 %v7956_v13  ;;  %v7920_v36 = vld [vmem:[%s9155_s0 + $0xfc] sm:$0xf0]  ;;  %v7921_v38 = vld [vmem:[%s9155_s0 + $0x104] sm:$0xf0]  ;;  %v5584_v40 = vld [vmem:[%s9155_s0 + $0x100] sm:$0xf0] }
  0x1e   :  { %4572 = vmatpush.bf16.msra.mxu1 %v7964_v14  ;;  %v7889_v41 = vld [vmem:[%s9155_s0 + $0xc] sm:$0xf]  ;;  %v8015_v44 = vld [vmem:[#allocation3 + $0x1f8] sm:$0xff]  ;;  %v5583_v45 = vor.u32 %v7920_v36, %v5582_v35  ;;  %v5591_v46 = vor.u32 %v7921_v38, %v5590_v37  ;;  %v5587_v47 = vor.u32 %v7888_v39, %v5584_v40  ;;  %v7990_v49 = vld [vmem:[#allocation3 + $0x130] sm:$0xff] }
  0x1f   :  { %4586 = vmatpush.bf16.msra.mxu2 %v7972_v15  ;;  %v5592_v42 = vld [vmem:[%s9155_s0 + $0x108] sm:$0xf0]  ;;  %v7998_v50 = vld [vmem:[#allocation3 + $0x170] sm:$0xff]  ;;  %v7988_v57 = vld [vmem:[#allocation3 + $0x120] sm:$0xff] }
  0x20   :  { %4600 = vmatpush.bf16.msra.mxu3 %v7980_v16  ;;  %v5595_v48 = vor.u32 %v7889_v41, %v5592_v42  ;;  %v8006_v51 = vld [vmem:[#allocation3 + $0x1b0] sm:$0xff]  ;;  %v7989_v53 = vld [vmem:[#allocation3 + $0x128] sm:$0xff]  ;;  %v7996_v58 = vld [vmem:[#allocation3 + $0x160] sm:$0xff] }
  0x21   :  { %4559 = vmatpush.bf16.msra.mxu0 %v7955_v17  ;;  %v8014_v52 = vld [vmem:[#allocation3 + $0x1f0] sm:$0xff]  ;;  %v7997_v54 = vld [vmem:[#allocation3 + $0x168] sm:$0xff]  ;;  %v8004_v59 = vld [vmem:[#allocation3 + $0x1a0] sm:$0xff] }
  0x22   :  { %4573 = vmatpush.bf16.msra.mxu1 %v7963_v18  ;;  %v8005_v55 = vld [vmem:[#allocation3 + $0x1a8] sm:$0xff]  ;;  %v8012_v60 = vld [vmem:[#allocation3 + $0x1e0] sm:$0xff]  ;;  %v7987_v61 = vld [vmem:[#allocation3 + $0x118] sm:$0xff] }
  0x23   :  { %4587 = vmatpush.bf16.msra.mxu2 %v7971_v19  ;;  %v8013_v56 = vld [vmem:[#allocation3 + $0x1e8] sm:$0xff]  ;;  %v7995_v62 = vld [vmem:[#allocation3 + $0x158] sm:$0xff]  ;;  %v7986_v1 = vld [vmem:[#allocation3 + $0x110] sm:$0xff] }
  0x24   :  { %4601 = vmatpush.bf16.msra.mxu3 %v7979_v20  ;;  %v8003_v63 = vld [vmem:[#allocation3 + $0x198] sm:$0xff]  ;;  %v7994_v2 = vld [vmem:[#allocation3 + $0x150] sm:$0xff]  ;;  %v7985_v5 = vld [vmem:[#allocation3 + $0x108] sm:$0xff] }
  0x25   :  { %4560 = vmatpush.bf16.msra.mxu0 %v7954_v21  ;;  %v8011_v0 = vld [vmem:[#allocation3 + $0x1d8] sm:$0xff]  ;;  %v8002_v3 = vld [vmem:[#allocation3 + $0x190] sm:$0xff]  ;;  %v7993_v6 = vld [vmem:[#allocation3 + $0x148] sm:$0xff] }
  0x26   :  { %4574 = vmatpush.bf16.msra.mxu1 %v7962_v22  ;;  %v8010_v4 = vld [vmem:[#allocation3 + $0x1d0] sm:$0xff]  ;;  %v8001_v7 = vld [vmem:[#allocation3 + $0x188] sm:$0xff]  ;;  %v7984_v9 = vld [vmem:[#allocation3 + $0x100] sm:$0xff] }
  0x27   :  { %4588 = vmatpush.bf16.msra.mxu2 %v7970_v23  ;;  %v8009_v8 = vld [vmem:[#allocation3 + $0x1c8] sm:$0xff]  ;;  %v7992_v10 = vld [vmem:[#allocation3 + $0x140] sm:$0xff]  ;;  %v8023_v13 = vld [vmem:[#allocation3 + $0x238] sm:$0xff] }
  0x28   :  { %4602 = vmatpush.bf16.msra.mxu3 %v7978_v24  ;;  %v8000_v11 = vld [vmem:[#allocation3 + $0x180] sm:$0xff]  ;;  %v8031_v14 = vld [vmem:[#allocation3 + $0x278] sm:$0xff]  ;;  %v5598_v15 = vld [vmem:[%s9155_s0 + $0x10] sm:$0xf] }
  0x29   :  { %4561 = vmatpush.bf16.msra.mxu0 %v7953_v25  ;;  %v8008_v12 = vld [vmem:[#allocation3 + $0x1c0] sm:$0xff]  ;;  %v7922_v16 = vld [vmem:[%s9155_s0 + $0x10c] sm:$0xf0]  ;;  %v5606_v17 = vld [vmem:[%s9155_s0 + $0x18] sm:$0xf] }
  0x2a   :  { %4575 = vmatpush.bf16.msra.mxu1 %v7961_v26  ;;  %v7923_v18 = vld [vmem:[%s9155_s0 + $0x114] sm:$0xf0]  ;;  %v7890_v19 = vld [vmem:[%s9155_s0 + $0x14] sm:$0xf]  ;;  %v7891_v21 = vld [vmem:[%s9155_s0 + $0x1c] sm:$0xf]  ;;  %v5599_v25 = vor.u32 %v7922_v16, %v5598_v15 }
  0x2b   :  { %4589 = vmatpush.bf16.msra.mxu2 %v7969_v27  ;;  %v5600_v20 = vld [vmem:[%s9155_s0 + $0x110] sm:$0xf0]  ;;  %v5608_v22 = vld [vmem:[%s9155_s0 + $0x118] sm:$0xf0]  ;;  %v5607_v26 = vor.u32 %v7923_v18, %v5606_v17  ;;  %v8037_v35 = vld [vmem:[#allocation3 + $0x2a8] sm:$0xff] }
  0x2c   :  { %4603 = vmatpush.bf16.msra.mxu3 %v7977_v28  ;;  %v8039_v23 = vld [vmem:[#allocation3 + $0x2b8] sm:$0xff]  ;;  %v5603_v27 = vor.u32 %v7890_v19, %v5600_v20  ;;  %v5611_v28 = vor.u32 %v7891_v21, %v5608_v22  ;;  %v8045_v36 = vld [vmem:[#allocation3 + $0x2e8] sm:$0xff]  ;;  %v8020_v37 = vld [vmem:[#allocation3 + $0x220] sm:$0xff] }
  0x2d   :  { %4562 = vmatpush.bf16.msra.mxu0 %v7952_v29  ;;  %v8047_v24 = vld [vmem:[#allocation3 + $0x2f8] sm:$0xff]  ;;  %v8022_v29 = vld [vmem:[#allocation3 + $0x230] sm:$0xff]  ;;  %v8028_v38 = vld [vmem:[#allocation3 + $0x260] sm:$0xff] }
  0x2e   :  { %4576 = vmatpush.bf16.msra.mxu1 %v7960_v30  ;;  %v8030_v30 = vld [vmem:[#allocation3 + $0x270] sm:$0xff]  ;;  %v8036_v39 = vld [vmem:[#allocation3 + $0x2a0] sm:$0xff]  ;;  %v8019_v41 = vld [vmem:[#allocation3 + $0x218] sm:$0xff] }
  0x2f   :  { %4590 = vmatpush.bf16.msra.mxu2 %v7968_v31  ;;  %v8038_v31 = vld [vmem:[#allocation3 + $0x2b0] sm:$0xff]  ;;  %v8044_v40 = vld [vmem:[#allocation3 + $0x2e0] sm:$0xff]  ;;  %v8027_v42 = vld [vmem:[#allocation3 + $0x258] sm:$0xff] }
  0x30   :  { %4604 = vmatpush.bf16.msra.mxu3 %v7976_v32  ;;  %4563 = vmatmul.bf16.vlgmr.msra.gmra.mxu0 %v5583_v45  ;;  %v8046_v32 = vld [vmem:[#allocation3 + $0x2f0] sm:$0xff]  ;;  %v8069_v15 = vld [vmem:[#allocation3 + $0x3a8] sm:$0xff]  ;;  %v8052_v17 = vld [vmem:[#allocation3 + $0x320] sm:$0xff] }
  0x31   :  { %4611 = vmatpush.bf16.msrb.mxu0 %v7991_v33  ;;  %4577 = vmatmul.bf16.vlgmr.msra.gmra.mxu1 %v5587_v47  ;;  %v8021_v33 = vld [vmem:[#allocation3 + $0x228] sm:$0xff]  ;;  %v8018_v45 = vld [vmem:[#allocation3 + $0x210] sm:$0xff]  ;;  %v8060_v18 = vld [vmem:[#allocation3 + $0x360] sm:$0xff] }
  0x32   :  { %4625 = vmatpush.bf16.msrb.mxu1 %v7999_v34  ;;  %4591 = vmatmul.bf16.vlgmr.msra.gmra.mxu2 %v5591_v46  ;;  %v8029_v34 = vld [vmem:[#allocation3 + $0x268] sm:$0xff]  ;;  %v8026_v46 = vld [vmem:[#allocation3 + $0x250] sm:$0xff]  ;;  %v8068_v19 = vld [vmem:[#allocation3 + $0x3a0] sm:$0xff] }
  0x33   :  { %4639 = vmatpush.bf16.msrb.mxu2 %v8007_v43  ;;  %4605 = vmatmul.bf16.vlgmr.msra.gmra.mxu3 %v5595_v48  ;;  %v8035_v43 = vld [vmem:[#allocation3 + $0x298] sm:$0xff]  ;;  %v8034_v47 = vld [vmem:[#allocation3 + $0x290] sm:$0xff]  ;;  %v8077_v16 = vld [vmem:[#allocation3 + $0x3e8] sm:$0xff] }
  0x34   :  { %4653 = vmatpush.bf16.msrb.mxu3 %v8015_v44  ;;  %v8043_v44 = vld [vmem:[#allocation3 + $0x2d8] sm:$0xff]  ;;  %v8042_v48 = vld [vmem:[#allocation3 + $0x2d0] sm:$0xff]  ;;  %v8076_v20 = vld [vmem:[#allocation3 + $0x3e0] sm:$0xff] }
  0x35   :  { %4612 = vmatpush.bf16.msrb.mxu0 %v7990_v49  ;;  %v8017_v49 = vld [vmem:[#allocation3 + $0x208] sm:$0xff]  ;;  %v8051_v21 = vld [vmem:[#allocation3 + $0x318] sm:$0xff] }
  0x36   :  { %4626 = vmatpush.bf16.msrb.mxu1 %v7998_v50  ;;  %v8025_v50 = vld [vmem:[#allocation3 + $0x248] sm:$0xff]  ;;  %v8059_v22 = vld [vmem:[#allocation3 + $0x358] sm:$0xff] }
  0x37   :  { %4640 = vmatpush.bf16.msrb.mxu2 %v8006_v51  ;;  %v8033_v51 = vld [vmem:[#allocation3 + $0x288] sm:$0xff] }
  0x38   :  { %4654 = vmatpush.bf16.msrb.mxu3 %v8014_v52  ;;  %v8041_v52 = vld [vmem:[#allocation3 + $0x2c8] sm:$0xff] }
  0x39   :  { %4613 = vmatpush.bf16.msrb.mxu0 %v7989_v53  ;;  %v8016_v53 = vld [vmem:[#allocation3 + $0x200] sm:$0xff] }
  0x3a   :  { %4627 = vmatpush.bf16.msrb.mxu1 %v7997_v54  ;;  %v8024_v54 = vld [vmem:[#allocation3 + $0x240] sm:$0xff] }
  0x3b   :  { %4641 = vmatpush.bf16.msrb.mxu2 %v8005_v55  ;;  %v8032_v55 = vld [vmem:[#allocation3 + $0x280] sm:$0xff] }
  0x3c   :  { %4655 = vmatpush.bf16.msrb.mxu3 %v8013_v56  ;;  %v8040_v56 = vld [vmem:[#allocation3 + $0x2c0] sm:$0xff] }
  0x3d   :  { %4614 = vmatpush.bf16.msrb.mxu0 %v7988_v57  ;;  %v8055_v57 = vld [vmem:[#allocation3 + $0x338] sm:$0xff] }
  0x3e   :  { %4628 = vmatpush.bf16.msrb.mxu1 %v7996_v58  ;;  %v8063_v58 = vld [vmem:[#allocation3 + $0x378] sm:$0xff] }
  0x3f   :  { %4642 = vmatpush.bf16.msrb.mxu2 %v8004_v59  ;;  %v5614_v59 = vld [vmem:[%s9155_s0 + $0x20] sm:$0xf] }
  0x40   :  { %4656 = vmatpush.bf16.msrb.mxu3 %v8012_v60  ;;  %v7924_v60 = vld [vmem:[%s9155_s0 + $0x11c] sm:$0xf0] }
  0x41   :  { %4615 = vmatpush.bf16.msrb.mxu0 %v7987_v61  ;;  %v5622_v61 = vld [vmem:[%s9155_s0 + $0x28] sm:$0xf] }
  0x42   :  { %4629 = vmatpush.bf16.msrb.mxu1 %v7995_v62  ;;  %v7925_v62 = vld [vmem:[%s9155_s0 + $0x124] sm:$0xf0] }
  0x43   :  { %4643 = vmatpush.bf16.msrb.mxu2 %v8003_v63  ;;  %v7892_v63 = vld [vmem:[%s9155_s0 + $0x24] sm:$0xf] }
  0x44   :  { %4657 = vmatpush.bf16.msrb.mxu3 %v8011_v0  ;;  %v5616_v0 = vld [vmem:[%s9155_s0 + $0x120] sm:$0xf0] }
  0x45   :  { %4616 = vmatpush.bf16.msrb.mxu0 %v7986_v1  ;;  %v7893_v1 = vld [vmem:[%s9155_s0 + $0x2c] sm:$0xf] }
  0x46   :  { %4630 = vmatpush.bf16.msrb.mxu1 %v7994_v2  ;;  %v5624_v2 = vld [vmem:[%s9155_s0 + $0x128] sm:$0xf0] }
  0x47   :  { %4644 = vmatpush.bf16.msrb.mxu2 %v8002_v3  ;;  %v8071_v3 = vld [vmem:[#allocation3 + $0x3b8] sm:$0xff] }
  0x48   :  { %4658 = vmatpush.bf16.msrb.mxu3 %v8010_v4  ;;  %v8079_v4 = vld [vmem:[#allocation3 + $0x3f8] sm:$0xff] }
  0x49   :  { %4617 = vmatpush.bf16.msrb.mxu0 %v7985_v5  ;;  %v5615_v5 = vor.u32 %v7924_v60, %v5614_v59  ;;  %v8101_v59 = vld [vmem:[#allocation3 + $0x4a8] sm:$0xff] }
  0x4a   :  { %4631 = vmatpush.bf16.msrb.mxu1 %v7993_v6  ;;  %v5623_v6 = vor.u32 %v7925_v62, %v5622_v61  ;;  %v8109_v60 = vld [vmem:[#allocation3 + $0x4e8] sm:$0xff]  ;;  %v8084_v61 = vld [vmem:[#allocation3 + $0x420] sm:$0xff] }
  0x4b   :  { %4645 = vmatpush.bf16.msrb.mxu2 %v8001_v7  ;;  %v5619_v7 = vor.u32 %v7892_v63, %v5616_v0  ;;  %v8092_v62 = vld [vmem:[#allocation3 + $0x460] sm:$0xff] }
  0x4c   :  { %4659 = vmatpush.bf16.msrb.mxu3 %v8009_v8  ;;  %v5627_v8 = vor.u32 %v7893_v1, %v5624_v2  ;;  %v8100_v63 = vld [vmem:[#allocation3 + $0x4a0] sm:$0xff]  ;;  %v8083_v1 = vld [vmem:[#allocation3 + $0x418] sm:$0xff] }
  0x4d   :  { %4618 = vmatpush.bf16.msrb.mxu0 %v7984_v9  ;;  %v8054_v9 = vld [vmem:[#allocation3 + $0x330] sm:$0xff]  ;;  %v8108_v0 = vld [vmem:[#allocation3 + $0x4e0] sm:$0xff]  ;;  %v8091_v2 = vld [vmem:[#allocation3 + $0x458] sm:$0xff] }
  0x4e   :  { %4632 = vmatpush.bf16.msrb.mxu1 %v7992_v10  ;;  %v8062_v10 = vld [vmem:[#allocation3 + $0x370] sm:$0xff] }
  0x4f   :  { %4646 = vmatpush.bf16.msrb.mxu2 %v8000_v11  ;;  %v8070_v11 = vld [vmem:[#allocation3 + $0x3b0] sm:$0xff] }
  0x50   :  { %4660 = vmatpush.bf16.msrb.mxu3 %v8008_v12  ;;  %4619 = vmatmul.bf16.vlgmr.msrb.gmra.mxu0 %v5599_v25  ;;  %v8078_v12 = vld [vmem:[#allocation3 + $0x3f0] sm:$0xff] }
  0x51   :  { %4667 = vmatpush.bf16.msra.mxu0 %v8023_v13  ;;  %4633 = vmatmul.bf16.vlgmr.msrb.gmra.mxu1 %v5603_v27  ;;  %v8053_v13 = vld [vmem:[#allocation3 + $0x328] sm:$0xff]  ;;  %v8050_v25 = vld [vmem:[#allocation3 + $0x310] sm:$0xff] }
  0x52   :  { %4681 = vmatpush.bf16.msra.mxu1 %v8031_v14  ;;  %4647 = vmatmul.bf16.vlgmr.msrb.gmra.mxu2 %v5607_v26  ;;  %v8061_v14 = vld [vmem:[#allocation3 + $0x368] sm:$0xff]  ;;  %v8058_v26 = vld [vmem:[#allocation3 + $0x350] sm:$0xff] }
  0x53   :  { %4695 = vmatpush.bf16.msra.mxu2 %v8039_v23  ;;  %4661 = vmatmul.bf16.vlgmr.msrb.gmra.mxu3 %v5611_v28  ;;  %v8067_v23 = vld [vmem:[#allocation3 + $0x398] sm:$0xff]  ;;  %v8066_v27 = vld [vmem:[#allocation3 + $0x390] sm:$0xff] }
  0x54   :  { %4709 = vmatpush.bf16.msra.mxu3 %v8047_v24  ;;  %v8075_v24 = vld [vmem:[#allocation3 + $0x3d8] sm:$0xff]  ;;  %v8074_v28 = vld [vmem:[#allocation3 + $0x3d0] sm:$0xff] }
  0x55   :  { %4668 = vmatpush.bf16.msra.mxu0 %v8022_v29  ;;  %v8049_v29 = vld [vmem:[#allocation3 + $0x308] sm:$0xff] }
  0x56   :  { %4682 = vmatpush.bf16.msra.mxu1 %v8030_v30  ;;  %v8057_v30 = vld [vmem:[#allocation3 + $0x348] sm:$0xff] }
  0x57   :  { %4696 = vmatpush.bf16.msra.mxu2 %v8038_v31  ;;  %v8065_v31 = vld [vmem:[#allocation3 + $0x388] sm:$0xff] }
  0x58   :  { %4710 = vmatpush.bf16.msra.mxu3 %v8046_v32  ;;  %v8073_v32 = vld [vmem:[#allocation3 + $0x3c8] sm:$0xff] }
  0x59   :  { %4669 = vmatpush.bf16.msra.mxu0 %v8021_v33  ;;  %v8048_v33 = vld [vmem:[#allocation3 + $0x300] sm:$0xff] }
  0x5a   :  { %4683 = vmatpush.bf16.msra.mxu1 %v8029_v34  ;;  %v8056_v34 = vld [vmem:[#allocation3 + $0x340] sm:$0xff] }
  0x5b   :  { %4697 = vmatpush.bf16.msra.mxu2 %v8037_v35  ;;  %v8064_v35 = vld [vmem:[#allocation3 + $0x380] sm:$0xff] }
  0x5c   :  { %4711 = vmatpush.bf16.msra.mxu3 %v8045_v36  ;;  %v8072_v36 = vld [vmem:[#allocation3 + $0x3c0] sm:$0xff] }
  0x5d   :  { %4670 = vmatpush.bf16.msra.mxu0 %v8020_v37  ;;  %v8087_v37 = vld [vmem:[#allocation3 + $0x438] sm:$0xff] }
  0x5e   :  { %4684 = vmatpush.bf16.msra.mxu1 %v8028_v38  ;;  %v8095_v38 = vld [vmem:[#allocation3 + $0x478] sm:$0xff] }
  0x5f   :  { %4698 = vmatpush.bf16.msra.mxu2 %v8036_v39  ;;  %v5630_v39 = vld [vmem:[%s9155_s0 + $0x30] sm:$0xf] }
  0x60   :  { %4712 = vmatpush.bf16.msra.mxu3 %v8044_v40  ;;  %v7926_v40 = vld [vmem:[%s9155_s0 + $0x12c] sm:$0xf0] }
  0x61   :  { %4671 = vmatpush.bf16.msra.mxu0 %v8019_v41  ;;  %v5638_v41 = vld [vmem:[%s9155_s0 + $0x38] sm:$0xf] }
  0x62   :  { %4685 = vmatpush.bf16.msra.mxu1 %v8027_v42  ;;  %v7927_v42 = vld [vmem:[%s9155_s0 + $0x134] sm:$0xf0] }
  0x63   :  { %4699 = vmatpush.bf16.msra.mxu2 %v8035_v43  ;;  %v7894_v43 = vld [vmem:[%s9155_s0 + $0x34] sm:$0xf] }
  0x64   :  { %4713 = vmatpush.bf16.msra.mxu3 %v8043_v44  ;;  %v5632_v44 = vld [vmem:[%s9155_s0 + $0x130] sm:$0xf0] }
  0x65   :  { %4672 = vmatpush.bf16.msra.mxu0 %v8018_v45  ;;  %v7895_v45 = vld [vmem:[%s9155_s0 + $0x3c] sm:$0xf] }
  0x66   :  { %4686 = vmatpush.bf16.msra.mxu1 %v8026_v46  ;;  %v5640_v46 = vld [vmem:[%s9155_s0 + $0x138] sm:$0xf0] }
  0x67   :  { %4700 = vmatpush.bf16.msra.mxu2 %v8034_v47  ;;  %v8103_v47 = vld [vmem:[#allocation3 + $0x4b8] sm:$0xff] }
  0x68   :  { %4714 = vmatpush.bf16.msra.mxu3 %v8042_v48  ;;  %v8111_v48 = vld [vmem:[#allocation3 + $0x4f8] sm:$0xff] }
  0x69   :  { %4673 = vmatpush.bf16.msra.mxu0 %v8017_v49  ;;  %v5631_v49 = vor.u32 %v7926_v40, %v5630_v39  ;;  %v8753_v39 = vld [vmem:[#allocation5] ss:$0 sm:$0xff]  ;;  %v8133_v40 = vld [vmem:[#allocation3 + $0x5a8] sm:$0xff] }
  0x6a   :  { %4687 = vmatpush.bf16.msra.mxu1 %v8025_v50  ;;  %v5639_v50 = vor.u32 %v7927_v42, %v5638_v41  ;;  %v8141_v41 = vld [vmem:[#allocation3 + $0x5e8] sm:$0xff] }
  0x6b   :  { %4701 = vmatpush.bf16.msra.mxu2 %v8033_v51  ;;  %v5635_v51 = vor.u32 %v7894_v43, %v5632_v44  ;;  %v8116_v43 = vld [vmem:[#allocation3 + $0x520] sm:$0xff] }
  0x6c   :  { %4715 = vmatpush.bf16.msra.mxu3 %v8041_v52  ;;  %v5643_v52 = vor.u32 %v7895_v45, %v5640_v46  ;;  %v8124_v44 = vld [vmem:[#allocation3 + $0x560] sm:$0xff] }
  0x6d   :  { %4674 = vmatpush.bf16.msra.mxu0 %v8016_v53  ;;  %v8086_v53 = vld [vmem:[#allocation3 + $0x430] sm:$0xff]  ;;  %v8132_v46 = vld [vmem:[#allocation3 + $0x5a0] sm:$0xff] }
  0x6e   :  { %4688 = vmatpush.bf16.msra.mxu1 %v8024_v54  ;;  %v8094_v54 = vld [vmem:[#allocation3 + $0x470] sm:$0xff] }
  0x6f   :  { %4702 = vmatpush.bf16.msra.mxu2 %v8032_v55  ;;  %v8102_v55 = vld [vmem:[#allocation3 + $0x4b0] sm:$0xff] }
  0x70   :  { %4716 = vmatpush.bf16.msra.mxu3 %v8040_v56  ;;  %4675 = vmatmul.bf16.vlgmr.msra.gmra.mxu0 %v5615_v5  ;;  %v8110_v56 = vld [vmem:[#allocation3 + $0x4f0] sm:$0xff] }
  0x71   :  { %4723 = vmatpush.bf16.msrb.mxu0 %v8055_v57  ;;  %4689 = vmatmul.bf16.vlgmr.msra.gmra.mxu1 %v5619_v7  ;;  %v8085_v57 = vld [vmem:[#allocation3 + $0x428] sm:$0xff]  ;;  %v8082_v5 = vld [vmem:[#allocation3 + $0x410] sm:$0xff] }
  0x72   :  { %4737 = vmatpush.bf16.msrb.mxu1 %v8063_v58  ;;  %4703 = vmatmul.bf16.vlgmr.msra.gmra.mxu2 %v5623_v6  ;;  %v8093_v58 = vld [vmem:[#allocation3 + $0x468] sm:$0xff]  ;;  %v8090_v6 = vld [vmem:[#allocation3 + $0x450] sm:$0xff] }
  0x73   :  { %4751 = vmatpush.bf16.msrb.mxu2 %v8071_v3  ;;  %4717 = vmatmul.bf16.vlgmr.msra.gmra.mxu3 %v5627_v8  ;;  %v8099_v3 = vld [vmem:[#allocation3 + $0x498] sm:$0xff]  ;;  %v8098_v7 = vld [vmem:[#allocation3 + $0x490] sm:$0xff] }
  0x74   :  { %4765 = vmatpush.bf16.msrb.mxu3 %v8079_v4  ;;  %v8107_v4 = vld [vmem:[#allocation3 + $0x4d8] sm:$0xff]  ;;  %v8106_v8 = vld [vmem:[#allocation3 + $0x4d0] sm:$0xff] }
  0x75   :  { %4724 = vmatpush.bf16.msrb.mxu0 %v8054_v9  ;;  %v8081_v9 = vld [vmem:[#allocation3 + $0x408] sm:$0xff] }
  0x76   :  { %4738 = vmatpush.bf16.msrb.mxu1 %v8062_v10  ;;  %v8089_v10 = vld [vmem:[#allocation3 + $0x448] sm:$0xff] }
  0x77   :  { %4752 = vmatpush.bf16.msrb.mxu2 %v8070_v11  ;;  %v8097_v11 = vld [vmem:[#allocation3 + $0x488] sm:$0xff] }
  0x78   :  { %4766 = vmatpush.bf16.msrb.mxu3 %v8078_v12  ;;  %v8105_v12 = vld [vmem:[#allocation3 + $0x4c8] sm:$0xff] }
  0x79   :  { %4725 = vmatpush.bf16.msrb.mxu0 %v8053_v13  ;;  %v8080_v13 = vld [vmem:[#allocation3 + $0x400] sm:$0xff] }
  0x7a   :  { %4739 = vmatpush.bf16.msrb.mxu1 %v8061_v14  ;;  %v8088_v14 = vld [vmem:[#allocation3 + $0x440] sm:$0xff] }
  0x7b   :  { %4753 = vmatpush.bf16.msrb.mxu2 %v8069_v15  ;;  %v8096_v15 = vld [vmem:[#allocation3 + $0x480] sm:$0xff] }
  0x7c   :  { %4767 = vmatpush.bf16.msrb.mxu3 %v8077_v16  ;;  %v8104_v16 = vld [vmem:[#allocation3 + $0x4c0] sm:$0xff] }
  0x7d   :  { %4726 = vmatpush.bf16.msrb.mxu0 %v8052_v17  ;;  %v8119_v17 = vld [vmem:[#allocation3 + $0x538] sm:$0xff] }
  0x7e   :  { %4740 = vmatpush.bf16.msrb.mxu1 %v8060_v18  ;;  %v8127_v18 = vld [vmem:[#allocation3 + $0x578] sm:$0xff] }
  0x7f   :  { %4754 = vmatpush.bf16.msrb.mxu2 %v8068_v19  ;;  %v5646_v19 = vld [vmem:[%s9155_s0 + $0x40] sm:$0xf] }
  0x80   :  { %4768 = vmatpush.bf16.msrb.mxu3 %v8076_v20  ;;  %v7928_v20 = vld [vmem:[%s9155_s0 + $0x13c] sm:$0xf0] }
  0x81   :  { %4727 = vmatpush.bf16.msrb.mxu0 %v8051_v21  ;;  %v5654_v21 = vld [vmem:[%s9155_s0 + $0x48] sm:$0xf] }
  0x82   :  { %4741 = vmatpush.bf16.msrb.mxu1 %v8059_v22  ;;  %v7929_v22 = vld [vmem:[%s9155_s0 + $0x144] sm:$0xf0] }
  0x83   :  { %4755 = vmatpush.bf16.msrb.mxu2 %v8067_v23  ;;  %v7896_v23 = vld [vmem:[%s9155_s0 + $0x44] sm:$0xf] }
  0x84   :  { %4769 = vmatpush.bf16.msrb.mxu3 %v8075_v24  ;;  %v5648_v24 = vld [vmem:[%s9155_s0 + $0x140] sm:$0xf0] }
  0x85   :  { %4728 = vmatpush.bf16.msrb.mxu0 %v8050_v25  ;;  %v7897_v25 = vld [vmem:[%s9155_s0 + $0x4c] sm:$0xf] }
  0x86   :  { %4742 = vmatpush.bf16.msrb.mxu1 %v8058_v26  ;;  %v5656_v26 = vld [vmem:[%s9155_s0 + $0x148] sm:$0xf0] }
  0x87   :  { %4756 = vmatpush.bf16.msrb.mxu2 %v8066_v27  ;;  %v8135_v27 = vld [vmem:[#allocation3 + $0x5b8] sm:$0xff] }
  0x88   :  { %4770 = vmatpush.bf16.msrb.mxu3 %v8074_v28  ;;  %v8143_v28 = vld [vmem:[#allocation3 + $0x5f8] sm:$0xff] }
  0x89   :  { %4729 = vmatpush.bf16.msrb.mxu0 %v8049_v29  ;;  %v5647_v29 = vor.u32 %v7928_v20, %v5646_v19 }
  0x8a   :  { %4743 = vmatpush.bf16.msrb.mxu1 %v8057_v30  ;;  %v5655_v30 = vor.u32 %v7929_v22, %v5654_v21 }
  0x8b   :  { %4757 = vmatpush.bf16.msrb.mxu2 %v8065_v31  ;;  %v5651_v31 = vor.u32 %v7896_v23, %v5648_v24  ;;  %v8150_v24 = vld [vmem:[#allocation3 + $0x630] sm:$0xff] }
  0x8c   :  { %4771 = vmatpush.bf16.msrb.mxu3 %v8073_v32  ;;  %v5659_v32 = vor.u32 %v7897_v25, %v5656_v26  ;;  %v8158_v25 = vld [vmem:[#allocation3 + $0x670] sm:$0xff] }
  0x8d   :  { %4730 = vmatpush.bf16.msrb.mxu0 %v8048_v33  ;;  %v8118_v33 = vld [vmem:[#allocation3 + $0x530] sm:$0xff] }
  0x8e   :  { %4744 = vmatpush.bf16.msrb.mxu1 %v8056_v34  ;;  %v8126_v34 = vld [vmem:[#allocation3 + $0x570] sm:$0xff] }
  0x8f   :  { %4758 = vmatpush.bf16.msrb.mxu2 %v8064_v35  ;;  %v8134_v35 = vld [vmem:[#allocation3 + $0x5b0] sm:$0xff] }
  0x90   :  { %4772 = vmatpush.bf16.msrb.mxu3 %v8072_v36  ;;  %4731 = vmatmul.bf16.vlgmr.msrb.gmra.mxu0 %v5631_v49  ;;  %v8142_v36 = vld [vmem:[#allocation3 + $0x5f0] sm:$0xff] }
  0x91   :  { %4779 = vmatpush.bf16.msra.mxu0 %v8087_v37  ;;  %4745 = vmatmul.bf16.vlgmr.msrb.gmra.mxu1 %v5635_v51  ;;  %v8117_v37 = vld [vmem:[#allocation3 + $0x528] sm:$0xff]  ;;  %v8123_v51 = vld [vmem:[#allocation3 + $0x558] sm:$0xff]  ;;  %v8166_v26 = vld [vmem:[#allocation3 + $0x6b0] sm:$0xff] }
  0x92   :  { %4793 = vmatpush.bf16.msra.mxu1 %v8095_v38  ;;  %4759 = vmatmul.bf16.vlgmr.msrb.gmra.mxu2 %v5639_v50  ;;  %v8125_v38 = vld [vmem:[#allocation3 + $0x568] sm:$0xff]  ;;  %v8115_v50 = vld [vmem:[#allocation3 + $0x518] sm:$0xff] }
  0x93   :  { %4807 = vmatpush.bf16.msra.mxu2 %v8103_v47  ;;  %4773 = vmatmul.bf16.vlgmr.msrb.gmra.mxu3 %v5643_v52  ;;  %v8140_v47 = vld [vmem:[#allocation3 + $0x5e0] sm:$0xff]  ;;  %v8131_v52 = vld [vmem:[#allocation3 + $0x598] sm:$0xff] }
  0x94   :  { %4821 = vmatpush.bf16.msra.mxu3 %v8111_v48 }
  0x95   :  { %4780 = vmatpush.bf16.msra.mxu0 %v8086_v53  ;;  %v8139_v53 = vld [vmem:[#allocation3 + $0x5d8] sm:$0xff] }
  0x96   :  { %4794 = vmatpush.bf16.msra.mxu1 %v8094_v54 }
  0x97   :  { %4808 = vmatpush.bf16.msra.mxu2 %v8102_v55 }
  0x98   :  { %4822 = vmatpush.bf16.msra.mxu3 %v8110_v56 }
  0x99   :  { %4781 = vmatpush.bf16.msra.mxu0 %v8085_v57  ;;  %v8114_v57 = vld [vmem:[#allocation3 + $0x510] sm:$0xff] }
  0x9a   :  { %4795 = vmatpush.bf16.msra.mxu1 %v8093_v58  ;;  %v8122_v58 = vld [vmem:[#allocation3 + $0x550] sm:$0xff] }
  0x9b   :  { %4809 = vmatpush.bf16.msra.mxu2 %v8101_v59 }
  0x9c   :  { %4823 = vmatpush.bf16.msra.mxu3 %v8109_v60  ;;  %v8130_v60 = vld [vmem:[#allocation3 + $0x590] sm:$0xff] }
  0x9d   :  { %4782 = vmatpush.bf16.msra.mxu0 %v8084_v61  ;;  %v8138_v61 = vld [vmem:[#allocation3 + $0x5d0] sm:$0xff] }
  0x9e   :  { %4796 = vmatpush.bf16.msra.mxu1 %v8092_v62  ;;  %v8113_v62 = vld [vmem:[#allocation3 + $0x508] sm:$0xff] }
  0x9f   :  { %4810 = vmatpush.bf16.msra.mxu2 %v8100_v63  ;;  %v8121_v63 = vld [vmem:[#allocation3 + $0x548] sm:$0xff] }
  0xa0   :  { %4824 = vmatpush.bf16.msra.mxu3 %v8108_v0  ;;  %v8129_v0 = vld [vmem:[#allocation3 + $0x588] sm:$0xff] }
  0xa1   :  { %4783 = vmatpush.bf16.msra.mxu0 %v8083_v1  ;;  %v8137_v1 = vld [vmem:[#allocation3 + $0x5c8] sm:$0xff] }
  0xa2   :  { %4797 = vmatpush.bf16.msra.mxu1 %v8091_v2  ;;  %v8112_v2 = vld [vmem:[#allocation3 + $0x500] sm:$0xff] }
  0xa3   :  { %4811 = vmatpush.bf16.msra.mxu2 %v8099_v3  ;;  %v8120_v3 = vld [vmem:[#allocation3 + $0x540] sm:$0xff] }
  0xa4   :  { %4825 = vmatpush.bf16.msra.mxu3 %v8107_v4  ;;  %v8128_v4 = vld [vmem:[#allocation3 + $0x580] sm:$0xff] }
  0xa5   :  { %4784 = vmatpush.bf16.msra.mxu0 %v8082_v5  ;;  %v8136_v5 = vld [vmem:[#allocation3 + $0x5c0] sm:$0xff] }
  0xa6   :  { %4798 = vmatpush.bf16.msra.mxu1 %v8090_v6  ;;  %v8151_v6 = vld [vmem:[#allocation3 + $0x638] sm:$0xff] }
  0xa7   :  { %4812 = vmatpush.bf16.msra.mxu2 %v8098_v7  ;;  %v8159_v7 = vld [vmem:[#allocation3 + $0x678] sm:$0xff] }
  0xa8   :  { %4826 = vmatpush.bf16.msra.mxu3 %v8106_v8  ;;  %v5662_v8 = vld [vmem:[%s9155_s0 + $0x50] sm:$0xf] }
  0xa9   :  { %4785 = vmatpush.bf16.msra.mxu0 %v8081_v9  ;;  %v7930_v9 = vld [vmem:[%s9155_s0 + $0x14c] sm:$0xf0] }
  0xaa   :  { %4799 = vmatpush.bf16.msra.mxu1 %v8089_v10  ;;  %v5670_v10 = vld [vmem:[%s9155_s0 + $0x58] sm:$0xf]  ;;  %v5663_v19 = vor.u32 %v7930_v9, %v5662_v8  ;;  %v5688_v8 = vld [vmem:[%s9155_s0 + $0x168] sm:$0xf0] }
  0xab   :  { %4813 = vmatpush.bf16.msra.mxu2 %v8097_v11  ;;  %v7931_v11 = vld [vmem:[%s9155_s0 + $0x154] sm:$0xf0] }
  0xac   :  { %4827 = vmatpush.bf16.msra.mxu3 %v8105_v12  ;;  %v7898_v12 = vld [vmem:[%s9155_s0 + $0x54] sm:$0xf]  ;;  %v5671_v20 = vor.u32 %v7931_v11, %v5670_v10  ;;  %v8199_v9 = vld [vmem:[#allocation3 + $0x7b8] sm:$0xff] }
  0xad   :  { %4786 = vmatpush.bf16.msra.mxu0 %v8080_v13  ;;  %v4564_v42 = vpop.f32.mrf.mxu0  ;;  %v5664_v13 = vld [vmem:[%s9155_s0 + $0x150] sm:$0xf0]  ;;  %v8207_v10 = vld [vmem:[#allocation3 + $0x7f8] sm:$0xff] }
  0xae   :  { %4800 = vmatpush.bf16.msra.mxu1 %v8088_v14  ;;  %v4565_v45 = vadd.f32 %v8753_v39, %v4564_v42  ;;  %v4578_v48 = vpop.f32.mrf.mxu1  ;;  %v7899_v14 = vld [vmem:[%s9155_s0 + $0x5c] sm:$0xf]  ;;  %v5667_v21 = vor.u32 %v7898_v12, %v5664_v13 }
  0xaf   :  { %4814 = vmatpush.bf16.msra.mxu2 %v8096_v15  ;;  %v5672_v15 = vld [vmem:[%s9155_s0 + $0x158] sm:$0xf0] }
  0xb0   :  { %4828 = vmatpush.bf16.msra.mxu3 %v8104_v16  ;;  %4787 = vmatmul.bf16.vlgmr.msra.gmra.mxu0 %v5647_v29  ;;  %v4579_v49 = vadd.f32 %v4578_v48, %v4565_v45  ;;  %v8167_v16 = vld [vmem:[#allocation3 + $0x6b8] sm:$0xff]  ;;  %v5675_v22 = vor.u32 %v7899_v14, %v5672_v15  ;;  %v8149_v29 = vld [vmem:[#allocation3 + $0x628] sm:$0xff] }
  0xb1   :  { %4835 = vmatpush.bf16.msrb.mxu0 %v8119_v17  ;;  %4801 = vmatmul.bf16.vlgmr.msra.gmra.mxu1 %v5651_v31  ;;  %v8175_v17 = vld [vmem:[#allocation3 + $0x6f8] sm:$0xff]  ;;  %v8165_v31 = vld [vmem:[#allocation3 + $0x6a8] sm:$0xff] }
  0xb2   :  { %4849 = vmatpush.bf16.msrb.mxu1 %v8127_v18  ;;  %4815 = vmatmul.bf16.vlgmr.msra.gmra.mxu2 %v5655_v30  ;;  %v8157_v30 = vld [vmem:[#allocation3 + $0x668] sm:$0xff]  ;;  %v8163_v45 = vld [vmem:[#allocation3 + $0x698] sm:$0xff] }
  0xb3   :  { %4863 = vmatpush.bf16.msrb.mxu2 %v8135_v27  ;;  %4829 = vmatmul.bf16.vlgmr.msra.gmra.mxu3 %v5659_v32  ;;  %v8174_v27 = vld [vmem:[#allocation3 + $0x6f0] sm:$0xff]  ;;  %v8173_v32 = vld [vmem:[#allocation3 + $0x6e8] sm:$0xff] }
  0xb4   :  { %4877 = vmatpush.bf16.msrb.mxu3 %v8143_v28 }
  0xb5   :  { %4836 = vmatpush.bf16.msrb.mxu0 %v8118_v33  ;;  %v4592_v54 = vpop.f32.mrf.mxu2  ;;  %v8782_v18 = vpop.f32.mrf.mxu0 }
  0xb6   :  { %4850 = vmatpush.bf16.msrb.mxu1 %v8126_v34  ;;  %v4593_v55 = vadd.f32 %v4592_v54, %v4579_v49  ;;  %v4606_v56 = vpop.f32.mrf.mxu3  ;;  %v8784_v23 = vpop.f32.mrf.mxu1  ;;  %v8170_v54 = vld [vmem:[#allocation3 + $0x6d0] sm:$0xff] }
  0xb7   :  { %4864 = vmatpush.bf16.msrb.mxu2 %v8134_v35 }
  0xb8   :  { %4878 = vmatpush.bf16.msrb.mxu3 %v8142_v36  ;;  %v8756_v59 = vadd.f32 %v4606_v56, %v4593_v55  ;;  %v8148_v36 = vld [vmem:[#allocation3 + $0x620] sm:$0xff]  ;;  %v8145_v55 = vld [vmem:[#allocation3 + $0x608] sm:$0xff] }
  0xb9   :  { %4837 = vmatpush.bf16.msrb.mxu0 %v8117_v37  ;;  %v8156_v37 = vld [vmem:[#allocation3 + $0x660] sm:$0xff]  ;;  %v8153_v56 = vld [vmem:[#allocation3 + $0x648] sm:$0xff] }
  0xba   :  { %4851 = vmatpush.bf16.msrb.mxu1 %v8125_v38  ;;  %v8164_v38 = vld [vmem:[#allocation3 + $0x6a0] sm:$0xff] }
  0xbb   :  { %4865 = vmatpush.bf16.msrb.mxu2 %v8133_v40  ;;  %v8172_v40 = vld [vmem:[#allocation3 + $0x6e0] sm:$0xff] }
  0xbc   :  { %4879 = vmatpush.bf16.msrb.mxu3 %v8141_v41 }
  0xbd   :  { %4838 = vmatpush.bf16.msrb.mxu0 %v8116_v43  ;;  %v8786_v28 = vpop.f32.mrf.mxu2  ;;  %v8147_v43 = vld [vmem:[#allocation3 + $0x618] sm:$0xff] }
  0xbe   :  { %4852 = vmatpush.bf16.msrb.mxu1 %v8124_v44  ;;  %v8788_v33 = vpop.f32.mrf.mxu3  ;;  %v8155_v44 = vld [vmem:[#allocation3 + $0x658] sm:$0xff] }
  0xbf   :  { %4866 = vmatpush.bf16.msrb.mxu2 %v8132_v46  ;;  %v8171_v46 = vld [vmem:[#allocation3 + $0x6d8] sm:$0xff] }
  0xc0   :  { %4880 = vmatpush.bf16.msrb.mxu3 %v8140_v47 }
  0xc1   :  { %4839 = vmatpush.bf16.msrb.mxu0 %v8115_v50 }
  0xc2   :  { %4853 = vmatpush.bf16.msrb.mxu1 %v8123_v51  ;;  %v8146_v51 = vld [vmem:[#allocation3 + $0x610] sm:$0xff] }
  0xc3   :  { %4867 = vmatpush.bf16.msrb.mxu2 %v8131_v52  ;;  %v8154_v52 = vld [vmem:[#allocation3 + $0x650] sm:$0xff] }
  0xc4   :  { %4881 = vmatpush.bf16.msrb.mxu3 %v8139_v53  ;;  %v8162_v53 = vld [vmem:[#allocation3 + $0x690] sm:$0xff] }
  0xc5   :  { %4840 = vmatpush.bf16.msrb.mxu0 %v8114_v57  ;;  %v8161_v57 = vld [vmem:[#allocation3 + $0x688] sm:$0xff] }
  0xc6   :  { %4854 = vmatpush.bf16.msrb.mxu1 %v8122_v58  ;;  %v8169_v58 = vld [vmem:[#allocation3 + $0x6c8] sm:$0xff] }
  0xc7   :  { %4868 = vmatpush.bf16.msrb.mxu2 %v8130_v60  ;;  %v8152_v60 = vld [vmem:[#allocation3 + $0x640] sm:$0xff] }
  0xc8   :  { %4882 = vmatpush.bf16.msrb.mxu3 %v8138_v61  ;;  %v8160_v61 = vld [vmem:[#allocation3 + $0x680] sm:$0xff] }
  0xc9   :  { %4841 = vmatpush.bf16.msrb.mxu0 %v8113_v62  ;;  %v8168_v62 = vld [vmem:[#allocation3 + $0x6c0] sm:$0xff] }
  0xca   :  { %4855 = vmatpush.bf16.msrb.mxu1 %v8121_v63  ;;  %v8183_v63 = vld [vmem:[#allocation3 + $0x738] sm:$0xff] }
  0xcb   :  { %4869 = vmatpush.bf16.msrb.mxu2 %v8129_v0  ;;  %v8191_v0 = vld [vmem:[#allocation3 + $0x778] sm:$0xff] }
  0xcc   :  { %4883 = vmatpush.bf16.msrb.mxu3 %v8137_v1  ;;  %v5678_v1 = vld [vmem:[%s9155_s0 + $0x60] sm:$0xf] }
  0xcd   :  { %4842 = vmatpush.bf16.msrb.mxu0 %v8112_v2  ;;  %v4620_v34 = vpop.f32.mrf.mxu0  ;;  %v7932_v2 = vld [vmem:[%s9155_s0 + $0x15c] sm:$0xf0] }
  0xce   :  { %4856 = vmatpush.bf16.msrb.mxu1 %v8120_v3  ;;  %v4621_v35 = vadd.f32 %v4620_v34, %v8756_v59  ;;  %v4634_v41 = vpop.f32.mrf.mxu1  ;;  %v8144_v59 = vld [vmem:[#allocation3 + $0x600] sm:$0xff]  ;;  %v5679_v11 = vor.u32 %v7932_v2, %v5678_v1  ;;  %v5702_v1 = vld [vmem:[%s9155_s0 + $0x78] sm:$0xf]  ;;  %v5696_v2 = vld [vmem:[%s9155_s0 + $0x170] sm:$0xf0] }
  0xcf   :  { %4870 = vmatpush.bf16.msrb.mxu2 %v8128_v4  ;;  %v5686_v3 = vld [vmem:[%s9155_s0 + $0x68] sm:$0xf] }
  0xd0   :  { %4884 = vmatpush.bf16.msrb.mxu3 %v8136_v5  ;;  %4843 = vmatmul.bf16.vlgmr.msrb.gmra.mxu0 %v5663_v19  ;;  %v4635_v42 = vadd.f32 %v4634_v41, %v4621_v35  ;;  %v7933_v4 = vld [vmem:[%s9155_s0 + $0x164] sm:$0xf0]  ;;  %v7900_v5 = vld [vmem:[%s9155_s0 + $0x64] sm:$0xf]  ;;  %v8190_v19 = vld [vmem:[#allocation3 + $0x770] sm:$0xff] }
  0xd1   :  { %4891 = vmatpush.bf16.msra.mxu0 %v8151_v6  ;;  %4857 = vmatmul.bf16.vlgmr.msrb.gmra.mxu1 %v5667_v21  ;;  %v5680_v6 = vld [vmem:[%s9155_s0 + $0x160] sm:$0xf0]  ;;  %v5687_v12 = vor.u32 %v7933_v4, %v5686_v3  ;;  %v8206_v21 = vld [vmem:[#allocation3 + $0x7f0] sm:$0xff]  ;;  %v8187_v41 = vld [vmem:[#allocation3 + $0x758] sm:$0xff] }
  0xd2   :  { %4905 = vmatpush.bf16.msra.mxu1 %v8159_v7  ;;  %4871 = vmatmul.bf16.vlgmr.msrb.gmra.mxu2 %v5671_v20  ;;  %v7901_v7 = vld [vmem:[%s9155_s0 + $0x6c] sm:$0xf]  ;;  %v5683_v14 = vor.u32 %v7900_v5, %v5680_v6  ;;  %v8198_v20 = vld [vmem:[#allocation3 + $0x7b0] sm:$0xff]  ;;  %v8188_v34 = vld [vmem:[#allocation3 + $0x760] sm:$0xff] }
  0xd3   :  { %4919 = vmatpush.bf16.msra.mxu2 %v8167_v16  ;;  %4885 = vmatmul.bf16.vlgmr.msrb.gmra.mxu3 %v5675_v22  ;;  %v5691_v15 = vor.u32 %v7901_v7, %v5688_v8  ;;  %v8181_v22 = vld [vmem:[#allocation3 + $0x728] sm:$0xff]  ;;  %v7903_v3 = vld [vmem:[%s9155_s0 + $0x7c] sm:$0xf] }
  0xd4   :  { %4933 = vmatpush.bf16.msra.mxu3 %v8175_v17  ;;  %v8182_v17 = vld [vmem:[#allocation3 + $0x730] sm:$0xff]  ;;  %v5704_v4 = vld [vmem:[%s9155_s0 + $0x178] sm:$0xf0] }
  0xd5   :  { %4892 = vmatpush.bf16.msra.mxu0 %v8150_v24  ;;  %v4648_v47 = vpop.f32.mrf.mxu2  ;;  %v8817_v13 = vpop.f32.mrf.mxu0  ;;  %v8189_v24 = vld [vmem:[#allocation3 + $0x768] sm:$0xff]  ;;  %v8231_v5 = vld [vmem:[#allocation3 + $0x8b8] sm:$0xff] }
  0xd6   :  { %4906 = vmatpush.bf16.msra.mxu1 %v8158_v25  ;;  %v4649_v48 = vadd.f32 %v4648_v47, %v4635_v42  ;;  %v4662_v49 = vpop.f32.mrf.mxu3  ;;  %v8819_v16 = vpop.f32.mrf.mxu1  ;;  %v8195_v42 = vld [vmem:[#allocation3 + $0x798] sm:$0xff] }
  0xd7   :  { %4920 = vmatpush.bf16.msra.mxu2 %v8166_v26  ;;  %v8197_v26 = vld [vmem:[#allocation3 + $0x7a8] sm:$0xff]  ;;  %v8239_v6 = vld [vmem:[#allocation3 + $0x8f8] sm:$0xff] }
  0xd8   :  { %4934 = vmatpush.bf16.msra.mxu3 %v8174_v27  ;;  %v8791_v50 = vadd.f32 %v4662_v49, %v4649_v48  ;;  %v8205_v27 = vld [vmem:[#allocation3 + $0x7e8] sm:$0xff]  ;;  %v8178_v48 = vld [vmem:[#allocation3 + $0x710] sm:$0xff] }
  0xd9   :  { %4893 = vmatpush.bf16.msra.mxu0 %v8149_v29  ;;  %v8186_v49 = vld [vmem:[#allocation3 + $0x750] sm:$0xff] }
  0xda   :  { %4907 = vmatpush.bf16.msra.mxu1 %v8157_v30 }
  0xdb   :  { %4921 = vmatpush.bf16.msra.mxu2 %v8165_v31 }
  0xdc   :  { %4935 = vmatpush.bf16.msra.mxu3 %v8173_v32  ;;  %v8180_v32 = vld [vmem:[#allocation3 + $0x720] sm:$0xff] }
  0xdd   :  { %4894 = vmatpush.bf16.msra.mxu0 %v8148_v36  ;;  %v8821_v25 = vpop.f32.mrf.mxu2  ;;  %v8196_v36 = vld [vmem:[#allocation3 + $0x7a0] sm:$0xff] }
  0xde   :  { %4908 = vmatpush.bf16.msra.mxu1 %v8156_v37  ;;  %v8823_v29 = vpop.f32.mrf.mxu3  ;;  %v8204_v37 = vld [vmem:[#allocation3 + $0x7e0] sm:$0xff] }
  0xdf   :  { %4922 = vmatpush.bf16.msra.mxu2 %v8164_v38 }
  0xe0   :  { %4936 = vmatpush.bf16.msra.mxu3 %v8172_v40  ;;  %v8179_v40 = vld [vmem:[#allocation3 + $0x718] sm:$0xff] }
  0xe1   :  { %4895 = vmatpush.bf16.msra.mxu0 %v8147_v43  ;;  %v8203_v43 = vld [vmem:[#allocation3 + $0x7d8] sm:$0xff] }
  0xe2   :  { %4909 = vmatpush.bf16.msra.mxu1 %v8155_v44 }
  0xe3   :  { %4923 = vmatpush.bf16.msra.mxu2 %v8163_v45 }
  0xe4   :  { %4937 = vmatpush.bf16.msra.mxu3 %v8171_v46 }
  0xe5   :  { %4896 = vmatpush.bf16.msra.mxu0 %v8146_v51  ;;  %v8202_v51 = vld [vmem:[#allocation3 + $0x7d0] sm:$0xff] }
  0xe6   :  { %4910 = vmatpush.bf16.msra.mxu1 %v8154_v52  ;;  %v8177_v52 = vld [vmem:[#allocation3 + $0x708] sm:$0xff] }
  0xe7   :  { %4924 = vmatpush.bf16.msra.mxu2 %v8162_v53  ;;  %v8185_v53 = vld [vmem:[#allocation3 + $0x748] sm:$0xff] }
  0xe8   :  { %4938 = vmatpush.bf16.msra.mxu3 %v8170_v54  ;;  %v8193_v54 = vld [vmem:[#allocation3 + $0x788] sm:$0xff] }
  0xe9   :  { %4897 = vmatpush.bf16.msra.mxu0 %v8145_v55  ;;  %v8201_v55 = vld [vmem:[#allocation3 + $0x7c8] sm:$0xff] }
  0xea   :  { %4911 = vmatpush.bf16.msra.mxu1 %v8153_v56  ;;  %v8176_v56 = vld [vmem:[#allocation3 + $0x700] sm:$0xff] }
  0xeb   :  { %4925 = vmatpush.bf16.msra.mxu2 %v8161_v57  ;;  %v8184_v57 = vld [vmem:[#allocation3 + $0x740] sm:$0xff] }
  0xec   :  { %4939 = vmatpush.bf16.msra.mxu3 %v8169_v58  ;;  %v8192_v58 = vld [vmem:[#allocation3 + $0x780] sm:$0xff] }
  0xed   :  { %4898 = vmatpush.bf16.msra.mxu0 %v8144_v59  ;;  %v4676_v30 = vpop.f32.mrf.mxu0  ;;  %v8200_v59 = vld [vmem:[#allocation3 + $0x7c0] sm:$0xff] }
  0xee   :  { %4912 = vmatpush.bf16.msra.mxu1 %v8152_v60  ;;  %v4677_v31 = vadd.f32 %v4676_v30, %v8791_v50  ;;  %v4690_v35 = vpop.f32.mrf.mxu1  ;;  %v8194_v50 = vld [vmem:[#allocation3 + $0x790] sm:$0xff]  ;;  %v4567_v60 = vadd.f32 %v8753_v39, %v8782_v18 }
  0xef   :  { %4926 = vmatpush.bf16.msra.mxu2 %v8160_v61  ;;  %v8215_v61 = vld [vmem:[#allocation3 + $0x838] sm:$0xff]  ;;  %v7902_v18 = vld [vmem:[%s9155_s0 + $0x74] sm:$0xf] }
  0xf0   :  { %4940 = vmatpush.bf16.msra.mxu3 %v8168_v62  ;;  %4899 = vmatmul.bf16.vlgmr.msra.gmra.mxu0 %v5679_v11  ;;  %v4691_v38 = vadd.f32 %v4690_v35, %v4677_v31  ;;  %v8223_v62 = vld [vmem:[#allocation3 + $0x878] sm:$0xff]  ;;  %v4581_v7 = vadd.f32 %v8784_v23, %v4567_v60  ;;  %v5699_v11 = vor.u32 %v7902_v18, %v5696_v2  ;;  %v8238_v23 = vld [vmem:[#allocation3 + $0x8f0] sm:$0xff]  ;;  %v8220_v35 = vld [vmem:[#allocation3 + $0x860] sm:$0xff] }
  0xf1   :  { %4947 = vmatpush.bf16.msrb.mxu0 %v8183_v63  ;;  %4913 = vmatmul.bf16.vlgmr.msra.gmra.mxu1 %v5683_v14  ;;  %v5694_v63 = vld [vmem:[%s9155_s0 + $0x70] sm:$0xf]  ;;  %v7935_v39 = vld [vmem:[%s9155_s0 + $0x174] sm:$0xf0]  ;;  %v8224_v60 = vld [vmem:[#allocation3 + $0x880] sm:$0xff] }
  0xf2   :  { %4961 = vmatpush.bf16.msrb.mxu1 %v8191_v0  ;;  %4927 = vmatmul.bf16.vlgmr.msra.gmra.mxu2 %v5687_v12  ;;  %v7934_v0 = vld [vmem:[%s9155_s0 + $0x16c] sm:$0xf0]  ;;  %v5707_v12 = vor.u32 %v7903_v3, %v5704_v4  ;;  %v7904_v18 = vld [vmem:[%s9155_s0 + $0x84] sm:$0xf]  ;;  %v7905_v4 = vld [vmem:[%s9155_s0 + $0x8c] sm:$0xf] }
  0xf3   :  { %4975 = vmatpush.bf16.msrb.mxu2 %v8199_v9  ;;  %4941 = vmatmul.bf16.vlgmr.msra.gmra.mxu3 %v5691_v15  ;;  %v5695_v8 = vor.u32 %v7934_v0, %v5694_v63  ;;  %v5703_v9 = vor.u32 %v7935_v39, %v5702_v1  ;;  %v8214_v15 = vld [vmem:[#allocation3 + $0x830] sm:$0xff]  ;;  %v8255_v63 = vld [vmem:[#allocation3 + $0x978] sm:$0xff]  ;;  %v5718_v1 = vld [vmem:[%s9155_s0 + $0x88] sm:$0xf] }
  0xf4   :  { %4989 = vmatpush.bf16.msrb.mxu3 %v8207_v10  ;;  %v7936_v0 = vld [vmem:[%s9155_s0 + $0x17c] sm:$0xf0]  ;;  %v7937_v39 = vld [vmem:[%s9155_s0 + $0x184] sm:$0xf0]  ;;  %v5712_v3 = vld [vmem:[%s9155_s0 + $0x180] sm:$0xf0] }
  0xf5   :  { %4948 = vmatpush.bf16.msrb.mxu0 %v8182_v17  ;;  %v4704_v44 = vpop.f32.mrf.mxu2  ;;  %v8855_v10 = vpop.f32.mrf.mxu0  ;;  %v8222_v17 = vld [vmem:[#allocation3 + $0x870] sm:$0xff] }
  0xf6   :  { %4962 = vmatpush.bf16.msrb.mxu1 %v8190_v19  ;;  %v4705_v45 = vadd.f32 %v4704_v44, %v4691_v38  ;;  %v4718_v46 = vpop.f32.mrf.mxu3  ;;  %v8857_v14 = vpop.f32.mrf.mxu1  ;;  %v8230_v19 = vld [vmem:[#allocation3 + $0x8b0] sm:$0xff]  ;;  %v8236_v38 = vld [vmem:[#allocation3 + $0x8e0] sm:$0xff]  ;;  %v8235_v44 = vld [vmem:[#allocation3 + $0x8d8] sm:$0xff] }
  0xf7   :  { %4976 = vmatpush.bf16.msrb.mxu2 %v8198_v20  ;;  %v4595_v20 = vadd.f32 %v8786_v28, %v4581_v7  ;;  %v8271_v7 = vld [vmem:[#allocation3 + $0x9f8] sm:$0xff] }
  0xf8   :  { %4990 = vmatpush.bf16.msrb.mxu3 %v8206_v21  ;;  %v8826_v47 = vadd.f32 %v4718_v46, %v4705_v45  ;;  %v8213_v21 = vld [vmem:[#allocation3 + $0x828] sm:$0xff] }
  0xf9   :  { %4949 = vmatpush.bf16.msrb.mxu0 %v8181_v22  ;;  %v8221_v22 = vld [vmem:[#allocation3 + $0x868] sm:$0xff]  ;;  %v4609_v30 = vadd.f32 %v8788_v33, %v4595_v20  ;;  %v8211_v33 = vld [vmem:[#allocation3 + $0x818] sm:$0xff]  ;;  %v8270_v20 = vld [vmem:[#allocation3 + $0x9f0] sm:$0xff] }
  0xfa   :  { %4963 = vmatpush.bf16.msrb.mxu1 %v8189_v24 }
  0xfb   :  { %4977 = vmatpush.bf16.msrb.mxu2 %v8197_v26  ;;  %v8229_v26 = vld [vmem:[#allocation3 + $0x8a8] sm:$0xff] }
  0xfc   :  { %4991 = vmatpush.bf16.msrb.mxu3 %v8205_v27  ;;  %v8237_v27 = vld [vmem:[#allocation3 + $0x8e8] sm:$0xff] }
  0xfd   :  { %4950 = vmatpush.bf16.msrb.mxu0 %v8180_v32  ;;  %v8860_v24 = vpop.f32.mrf.mxu2 }
  0xfe   :  { %4964 = vmatpush.bf16.msrb.mxu1 %v8188_v34  ;;  %v8863_v31 = vpop.f32.mrf.mxu3  ;;  %v8212_v34 = vld [vmem:[#allocation3 + $0x820] sm:$0xff] }
  0xff   :  { %4978 = vmatpush.bf16.msrb.mxu2 %v8196_v36 }
 0x100   :  { %4992 = vmatpush.bf16.msrb.mxu3 %v8204_v37  ;;  %v8228_v37 = vld [vmem:[#allocation3 + $0x8a0] sm:$0xff] }
 0x101   :  { %4951 = vmatpush.bf16.msrb.mxu0 %v8179_v40  ;;  %v4623_v40 = vadd.f32 %v8817_v13, %v4609_v30  ;;  %v8210_v13 = vld [vmem:[#allocation3 + $0x810] sm:$0xff]  ;;  %v8261_v30 = vld [vmem:[#allocation3 + $0x9a8] sm:$0xff] }
 0x102   :  { %4965 = vmatpush.bf16.msrb.mxu1 %v8187_v41 }
 0x103   :  { %4979 = vmatpush.bf16.msrb.mxu2 %v8195_v42  ;;  %v8219_v42 = vld [vmem:[#allocation3 + $0x858] sm:$0xff]  ;;  %v4637_v46 = vadd.f32 %v8819_v16, %v4623_v40  ;;  %v8217_v16 = vld [vmem:[#allocation3 + $0x848] sm:$0xff]  ;;  %v8260_v40 = vld [vmem:[#allocation3 + $0x9a0] sm:$0xff] }
 0x104   :  { %4993 = vmatpush.bf16.msrb.mxu3 %v8203_v43  ;;  %v8227_v43 = vld [vmem:[#allocation3 + $0x898] sm:$0xff] }
 0x105   :  { %4952 = vmatpush.bf16.msrb.mxu0 %v8178_v48 }
 0x106   :  { %4966 = vmatpush.bf16.msrb.mxu1 %v8186_v49  ;;  %v4651_v49 = vadd.f32 %v8821_v25, %v4637_v46  ;;  %v8233_v25 = vld [vmem:[#allocation3 + $0x8c8] sm:$0xff]  ;;  %v8267_v46 = vld [vmem:[#allocation3 + $0x9d8] sm:$0xff] }
 0x107   :  { %4980 = vmatpush.bf16.msrb.mxu2 %v8194_v50 }
 0x108   :  { %4994 = vmatpush.bf16.msrb.mxu3 %v8202_v51  ;;  %v8218_v51 = vld [vmem:[#allocation3 + $0x850] sm:$0xff] }
 0x109   :  { %4953 = vmatpush.bf16.msrb.mxu0 %v8177_v52  ;;  %v8226_v52 = vld [vmem:[#allocation3 + $0x890] sm:$0xff] }
 0x10a   :  { %4967 = vmatpush.bf16.msrb.mxu1 %v8185_v53  ;;  %v8234_v53 = vld [vmem:[#allocation3 + $0x8d0] sm:$0xff] }
 0x10b   :  { %4981 = vmatpush.bf16.msrb.mxu2 %v8193_v54  ;;  %v4665_v54 = vadd.f32 %v8823_v29, %v4651_v49  ;;  %v5710_v29 = vld [vmem:[%s9155_s0 + $0x80] sm:$0xf] }
 0x10c   :  { %4995 = vmatpush.bf16.msrb.mxu3 %v8201_v55  ;;  %v8209_v55 = vld [vmem:[#allocation3 + $0x808] sm:$0xff] }
 0x10d   :  { %4954 = vmatpush.bf16.msrb.mxu0 %v8176_v56  ;;  %v4732_v32 = vpop.f32.mrf.mxu0  ;;  %v8225_v56 = vld [vmem:[#allocation3 + $0x888] sm:$0xff] }
 0x10e   :  { %4968 = vmatpush.bf16.msrb.mxu1 %v8184_v57  ;;  %v4733_v28 = vadd.f32 %v4732_v32, %v8826_v47  ;;  %v4746_v36 = vpop.f32.mrf.mxu1  ;;  %v4679_v57 = vadd.f32 %v8855_v10, %v4665_v54  ;;  %v5719_v10 = vor.u32 %v7937_v39, %v5718_v1  ;;  %v8269_v32 = vld [vmem:[#allocation3 + $0x9e8] sm:$0xff]  ;;  %v8250_v54 = vld [vmem:[#allocation3 + $0x950] sm:$0xff]  ;;  %v8256_v1 = vld [vmem:[#allocation3 + $0x980] sm:$0xff] }
 0x10f   :  { %4982 = vmatpush.bf16.msrb.mxu2 %v8192_v58  ;;  %v8208_v58 = vld [vmem:[#allocation3 + $0x800] sm:$0xff] }
 0x110   :  { %4996 = vmatpush.bf16.msrb.mxu3 %v8200_v59  ;;  %4955 = vmatmul.bf16.vlgmr.msrb.gmra.mxu0 %v5695_v8  ;;  %v4747_v41 = vadd.f32 %v4746_v36, %v4733_v28  ;;  %v8216_v59 = vld [vmem:[#allocation3 + $0x840] sm:$0xff]  ;;  %v4693_v2 = vadd.f32 %v8857_v14, %v4679_v57  ;;  %v8241_v57 = vld [vmem:[#allocation3 + $0x908] sm:$0xff] }
 0x111   :  { %5003 = vmatpush.bf16.msra.mxu0 %v8215_v61  ;;  %4969 = vmatmul.bf16.vlgmr.msrb.gmra.mxu1 %v5699_v11  ;;  %v8232_v61 = vld [vmem:[#allocation3 + $0x8c0] sm:$0xff] }
 0x112   :  { %5017 = vmatpush.bf16.msra.mxu1 %v8223_v62  ;;  %4983 = vmatmul.bf16.vlgmr.msrb.gmra.mxu2 %v5703_v9  ;;  %v8247_v62 = vld [vmem:[#allocation3 + $0x938] sm:$0xff]  ;;  %v4707_v8 = vadd.f32 %v8860_v24, %v4693_v2  ;;  %v5711_v9 = vor.u32 %v7936_v0, %v5710_v29  ;;  %v8245_v24 = vld [vmem:[#allocation3 + $0x928] sm:$0xff]  ;;  %v8244_v36 = vld [vmem:[#allocation3 + $0x920] sm:$0xff] }
 0x113   :  { %5031 = vmatpush.bf16.msra.mxu2 %v8231_v5  ;;  %4997 = vmatmul.bf16.vlgmr.msrb.gmra.mxu3 %v5707_v12  ;;  %v5720_v5 = vld [vmem:[%s9155_s0 + $0x188] sm:$0xf0]  ;;  %v5715_v12 = vor.u32 %v7904_v18, %v5712_v3  ;;  %v8240_v29 = vld [vmem:[#allocation3 + $0x900] sm:$0xff]  ;;  %v8279_v2 = vld [vmem:[#allocation3 + $0xa38] sm:$0xff] }
 0x114   :  { %5045 = vmatpush.bf16.msra.mxu3 %v8239_v6  ;;  %v8263_v6 = vld [vmem:[#allocation3 + $0x9b8] sm:$0xff]  ;;  %v5723_v14 = vor.u32 %v7905_v4, %v5720_v5  ;;  %v8248_v0 = vld [vmem:[#allocation3 + $0x940] sm:$0xff]  ;;  %v5726_v4 = vld [vmem:[%s9155_s0 + $0x90] sm:$0xf] }
 0x115   :  { %5004 = vmatpush.bf16.msra.mxu0 %v8214_v15  ;;  %v4760_v45 = vpop.f32.mrf.mxu2  ;;  %v4734_v11 = vpop.f32.mrf.mxu0  ;;  %v8264_v39 = vld [vmem:[#allocation3 + $0x9c0] sm:$0xff]  ;;  %v8287_v3 = vld [vmem:[#allocation3 + $0xa78] sm:$0xff]  ;;  %v7938_v5 = vld [vmem:[%s9155_s0 + $0x18c] sm:$0xf0] }
 0x116   :  { %5018 = vmatpush.bf16.msra.mxu1 %v8222_v17  ;;  %v4761_v47 = vadd.f32 %v4760_v45, %v4747_v41  ;;  %v4774_v48 = vpop.f32.mrf.mxu3  ;;  %v4748_v15 = vpop.f32.mrf.mxu1  ;;  %v8246_v17 = vld [vmem:[#allocation3 + $0x930] sm:$0xff]  ;;  %v8268_v41 = vld [vmem:[#allocation3 + $0x9e0] sm:$0xff]  ;;  %v8259_v45 = vld [vmem:[#allocation3 + $0x998] sm:$0xff] }
 0x117   :  { %5032 = vmatpush.bf16.msra.mxu2 %v8230_v19  ;;  %v8254_v19 = vld [vmem:[#allocation3 + $0x970] sm:$0xff] }
 0x118   :  { %5046 = vmatpush.bf16.msra.mxu3 %v8238_v23  ;;  %v8869_v50 = vadd.f32 %v4774_v48, %v4761_v47  ;;  %v8262_v23 = vld [vmem:[#allocation3 + $0x9b0] sm:$0xff] }
 0x119   :  { %5005 = vmatpush.bf16.msra.mxu0 %v8213_v21  ;;  %v4721_v21 = vadd.f32 %v8863_v31, %v4707_v8  ;;  %v7906_v8 = vld [vmem:[%s9155_s0 + $0x94] sm:$0xf] }
 0x11a   :  { %5019 = vmatpush.bf16.msra.mxu1 %v8221_v22 }
 0x11b   :  { %5033 = vmatpush.bf16.msra.mxu2 %v8229_v26  ;;  %v4735_v22 = vadd.f32 %v4734_v11, %v4721_v21  ;;  %v8253_v26 = vld [vmem:[#allocation3 + $0x968] sm:$0xff]  ;;  %v5736_v11 = vld [vmem:[%s9155_s0 + $0x198] sm:$0xf0]  ;;  %v8286_v21 = vld [vmem:[#allocation3 + $0xa70] sm:$0xff] }
 0x11c   :  { %5047 = vmatpush.bf16.msra.mxu3 %v8237_v27 }
 0x11d   :  { %5006 = vmatpush.bf16.msra.mxu0 %v8212_v34  ;;  %v4762_v27 = vpop.f32.mrf.mxu2 }
 0x11e   :  { %5020 = vmatpush.bf16.msra.mxu1 %v8220_v35  ;;  %v4776_v28 = vpop.f32.mrf.mxu3  ;;  %v4749_v35 = vadd.f32 %v4748_v15, %v4735_v22  ;;  %v5727_v15 = vor.u32 %v7938_v5, %v5726_v4  ;;  %v8294_v22 = vld [vmem:[#allocation3 + $0xab0] sm:$0xff]  ;;  %v7908_v4 = vld [vmem:[%s9155_s0 + $0xa4] sm:$0xf] }
 0x11f   :  { %5034 = vmatpush.bf16.msra.mxu2 %v8228_v37  ;;  %v8252_v37 = vld [vmem:[#allocation3 + $0x960] sm:$0xff] }
 0x120   :  { %5048 = vmatpush.bf16.msra.mxu3 %v8236_v38  ;;  %v5744_v5 = vld [vmem:[%s9155_s0 + $0x1a0] sm:$0xf0] }
 0x121   :  { %5007 = vmatpush.bf16.msra.mxu0 %v8211_v33  ;;  %v4763_v33 = vadd.f32 %v4762_v27, %v4749_v35  ;;  %v8285_v27 = vld [vmem:[#allocation3 + $0xa68] sm:$0xff]  ;;  %v8276_v35 = vld [vmem:[#allocation3 + $0xa20] sm:$0xff] }
 0x122   :  { %5021 = vmatpush.bf16.msra.mxu1 %v8219_v42 }
 0x123   :  { %5035 = vmatpush.bf16.msra.mxu2 %v8227_v43  ;;  %v8243_v43 = vld [vmem:[#allocation3 + $0x918] sm:$0xff]  ;;  %v4777_v48 = vadd.f32 %v4776_v28, %v4763_v33 }
 0x124   :  { %5049 = vmatpush.bf16.msra.mxu3 %v8235_v44  ;;  %v8251_v44 = vld [vmem:[#allocation3 + $0x958] sm:$0xff] }
 0x125   :  { %5008 = vmatpush.bf16.msra.mxu0 %v8210_v13  ;;  %v8283_v33 = vld [vmem:[#allocation3 + $0xa58] sm:$0xff] }
 0x126   :  { %5022 = vmatpush.bf16.msra.mxu1 %v8218_v51 }
 0x127   :  { %5036 = vmatpush.bf16.msra.mxu2 %v8226_v52 }
 0x128   :  { %5050 = vmatpush.bf16.msra.mxu3 %v8234_v53  ;;  %v8242_v53 = vld [vmem:[#allocation3 + $0x910] sm:$0xff] }
 0x129   :  { %5009 = vmatpush.bf16.msra.mxu0 %v8209_v55  ;;  %v8258_v55 = vld [vmem:[#allocation3 + $0x990] sm:$0xff] }
 0x12a   :  { %5023 = vmatpush.bf16.msra.mxu1 %v8217_v16  ;;  %v8266_v16 = vld [vmem:[#allocation3 + $0x9d0] sm:$0xff] }
 0x12b   :  { %5037 = vmatpush.bf16.msra.mxu2 %v8225_v56 }
 0x12c   :  { %5051 = vmatpush.bf16.msra.mxu3 %v8233_v25 }
 0x12d   :  { %5010 = vmatpush.bf16.msra.mxu0 %v8208_v58  ;;  %v4788_v34 = vpop.f32.mrf.mxu0  ;;  %v8249_v58 = vld [vmem:[#allocation3 + $0x948] sm:$0xff] }
 0x12e   :  { %5024 = vmatpush.bf16.msra.mxu1 %v8216_v59  ;;  %v4789_v31 = vadd.f32 %v4788_v34, %v8869_v50  ;;  %v4802_v38 = vpop.f32.mrf.mxu1  ;;  %v8257_v59 = vld [vmem:[#allocation3 + $0x988] sm:$0xff] }
 0x12f   :  { %5038 = vmatpush.bf16.msra.mxu2 %v8224_v60  ;;  %v8265_v60 = vld [vmem:[#allocation3 + $0x9c8] sm:$0xff] }
 0x130   :  { %5052 = vmatpush.bf16.msra.mxu3 %v8232_v61  ;;  %5011 = vmatmul.bf16.vlgmr.msra.gmra.mxu0 %v5711_v9  ;;  %v4803_v42 = vadd.f32 %v4802_v38, %v4789_v31  ;;  %v5728_v9 = vld [vmem:[%s9155_s0 + $0x190] sm:$0xf0]  ;;  %v8284_v31 = vld [vmem:[#allocation3 + $0xa60] sm:$0xff] }
 0x131   :  { %5059 = vmatpush.bf16.msrb.mxu0 %v8247_v62  ;;  %5025 = vmatmul.bf16.vlgmr.msra.gmra.mxu1 %v5715_v12  ;;  %v8295_v12 = vld [vmem:[#allocation3 + $0xab8] sm:$0xff]  ;;  %v8300_v38 = vld [vmem:[#allocation3 + $0xae0] sm:$0xff] }
 0x132   :  { %5073 = vmatpush.bf16.msrb.mxu1 %v8255_v63  ;;  %5039 = vmatmul.bf16.vlgmr.msra.gmra.mxu2 %v5719_v10  ;;  %v7907_v10 = vld [vmem:[%s9155_s0 + $0x9c] sm:$0xf] }
 0x133   :  { %5087 = vmatpush.bf16.msrb.mxu2 %v8263_v6  ;;  %5053 = vmatmul.bf16.vlgmr.msra.gmra.mxu3 %v5723_v14  ;;  %v5734_v6 = vld [vmem:[%s9155_s0 + $0x98] sm:$0xf] }
 0x134   :  { %5101 = vmatpush.bf16.msrb.mxu3 %v8271_v7  ;;  %v7939_v7 = vld [vmem:[%s9155_s0 + $0x194] sm:$0xf0] }
 0x135   :  { %5060 = vmatpush.bf16.msrb.mxu0 %v8246_v17  ;;  %v4816_v47 = vpop.f32.mrf.mxu2  ;;  %v4790_v13 = vpop.f32.mrf.mxu0  ;;  %v8303_v14 = vld [vmem:[#allocation3 + $0xaf8] sm:$0xff]  ;;  %v5735_v17 = vor.u32 %v7939_v7, %v5734_v6  ;;  %v7909_v6 = vld [vmem:[%s9155_s0 + $0xac] sm:$0xf] }
 0x136   :  { %5074 = vmatpush.bf16.msrb.mxu1 %v8254_v19  ;;  %v4817_v49 = vadd.f32 %v4816_v47, %v4803_v42  ;;  %v4830_v50 = vpop.f32.mrf.mxu3  ;;  %v4791_v51 = vadd.f32 %v4790_v13, %v4777_v48  ;;  %v4804_v56 = vpop.f32.mrf.mxu1  ;;  %v5731_v19 = vor.u32 %v7906_v8, %v5728_v9  ;;  %v8291_v42 = vld [vmem:[#allocation3 + $0xa98] sm:$0xff]  ;;  %v8282_v13 = vld [vmem:[#allocation3 + $0xa50] sm:$0xff]  ;;  %v5752_v7 = vld [vmem:[%s9155_s0 + $0x1a8] sm:$0xf0] }
 0x137   :  { %5088 = vmatpush.bf16.msrb.mxu2 %v8262_v23  ;;  %v5739_v23 = vor.u32 %v7907_v10, %v5736_v11  ;;  %v8327_v8 = vld [vmem:[#allocation3 + $0xbb8] sm:$0xff] }
 0x138   :  { %5102 = vmatpush.bf16.msrb.mxu3 %v8270_v20  ;;  %v8901_v52 = vadd.f32 %v4830_v50, %v4817_v49  ;;  %v4805_v25 = vadd.f32 %v4804_v56, %v4791_v51  ;;  %v8278_v20 = vld [vmem:[#allocation3 + $0xa30] sm:$0xff]  ;;  %v8289_v56 = vld [vmem:[#allocation3 + $0xa88] sm:$0xff]  ;;  %v8335_v9 = vld [vmem:[#allocation3 + $0xbf8] sm:$0xff] }
 0x139   :  { %5061 = vmatpush.bf16.msrb.mxu0 %v8245_v24  ;;  %v8302_v24 = vld [vmem:[#allocation3 + $0xaf0] sm:$0xff] }
 0x13a   :  { %5075 = vmatpush.bf16.msrb.mxu1 %v8253_v26  ;;  %v8277_v26 = vld [vmem:[#allocation3 + $0xa28] sm:$0xff]  ;;  %v8274_v50 = vld [vmem:[#allocation3 + $0xa10] sm:$0xff] }
 0x13b   :  { %5089 = vmatpush.bf16.msrb.mxu2 %v8261_v30  ;;  %v8293_v30 = vld [vmem:[#allocation3 + $0xaa8] sm:$0xff] }
 0x13c   :  { %5103 = vmatpush.bf16.msrb.mxu3 %v8269_v32  ;;  %v8301_v32 = vld [vmem:[#allocation3 + $0xae8] sm:$0xff] }
 0x13d   :  { %5062 = vmatpush.bf16.msrb.mxu0 %v8244_v36  ;;  %v4818_v61 = vpop.f32.mrf.mxu2 }
 0x13e   :  { %5076 = vmatpush.bf16.msrb.mxu1 %v8252_v37  ;;  %v4819_v62 = vadd.f32 %v4818_v61, %v4805_v25  ;;  %v4832_v63 = vpop.f32.mrf.mxu3  ;;  %v8292_v37 = vld [vmem:[#allocation3 + $0xaa0] sm:$0xff]  ;;  %v8297_v25 = vld [vmem:[#allocation3 + $0xac8] sm:$0xff] }
 0x13f   :  { %5090 = vmatpush.bf16.msrb.mxu2 %v8260_v40  ;;  %v8280_v61 = vld [vmem:[#allocation3 + $0xa40] sm:$0xff] }
 0x140   :  { %5104 = vmatpush.bf16.msrb.mxu3 %v8268_v41  ;;  %v8903_v18 = vadd.f32 %v4832_v63, %v4819_v62  ;;  %v8275_v41 = vld [vmem:[#allocation3 + $0xa18] sm:$0xff]  ;;  %v8288_v62 = vld [vmem:[#allocation3 + $0xa80] sm:$0xff] }
 0x141   :  { %5063 = vmatpush.bf16.msrb.mxu0 %v8243_v43  ;;  %v8299_v43 = vld [vmem:[#allocation3 + $0xad8] sm:$0xff]  ;;  %v8296_v63 = vld [vmem:[#allocation3 + $0xac0] sm:$0xff] }
 0x142   :  { %5077 = vmatpush.bf16.msrb.mxu1 %v8251_v44 }
 0x143   :  { %5091 = vmatpush.bf16.msrb.mxu2 %v8259_v45 }
 0x144   :  { %5105 = vmatpush.bf16.msrb.mxu3 %v8267_v46 }
 0x145   :  { %5064 = vmatpush.bf16.msrb.mxu0 %v8242_v53  ;;  %v8298_v53 = vld [vmem:[#allocation3 + $0xad0] sm:$0xff] }
 0x146   :  { %5078 = vmatpush.bf16.msrb.mxu1 %v8250_v54 }
 0x147   :  { %5092 = vmatpush.bf16.msrb.mxu2 %v8258_v55  ;;  %v8273_v55 = vld [vmem:[#allocation3 + $0xa08] sm:$0xff] }
 0x148   :  { %5106 = vmatpush.bf16.msrb.mxu3 %v8266_v16  ;;  %v8281_v16 = vld [vmem:[#allocation3 + $0xa48] sm:$0xff] }
 0x149   :  { %5065 = vmatpush.bf16.msrb.mxu0 %v8241_v57 }
 0x14a   :  { %5079 = vmatpush.bf16.msrb.mxu1 %v8249_v58 }
 0x14b   :  { %5093 = vmatpush.bf16.msrb.mxu2 %v8257_v59 }
 0x14c   :  { %5107 = vmatpush.bf16.msrb.mxu3 %v8265_v60  ;;  %v8272_v60 = vld [vmem:[#allocation3 + $0xa00] sm:$0xff] }
 0x14d   :  { %5066 = vmatpush.bf16.msrb.mxu0 %v8240_v29  ;;  %v4844_v28 = vpop.f32.mrf.mxu0 }
 0x14e   :  { %5080 = vmatpush.bf16.msrb.mxu1 %v8248_v0  ;;  %v4845_v34 = vadd.f32 %v4844_v28, %v8901_v52  ;;  %v4858_v36 = vpop.f32.mrf.mxu1  ;;  %v8290_v52 = vld [vmem:[#allocation3 + $0xa90] sm:$0xff]  ;;  %v8311_v0 = vld [vmem:[#allocation3 + $0xb38] sm:$0xff] }
 0x14f   :  { %5094 = vmatpush.bf16.msrb.mxu2 %v8256_v1  ;;  %v8319_v1 = vld [vmem:[#allocation3 + $0xb78] sm:$0xff] }
 0x150   :  { %5108 = vmatpush.bf16.msrb.mxu3 %v8264_v39  ;;  %5067 = vmatmul.bf16.vlgmr.msrb.gmra.mxu0 %v5727_v15  ;;  %v4859_v40 = vadd.f32 %v4858_v36, %v4845_v34  ;;  %v5742_v39 = vld [vmem:[%s9155_s0 + $0xa0] sm:$0xf]  ;;  %v8310_v15 = vld [vmem:[#allocation3 + $0xb30] sm:$0xff] }
 0x151   :  { %5115 = vmatpush.bf16.msra.mxu0 %v8279_v2  ;;  %5081 = vmatmul.bf16.vlgmr.msrb.gmra.mxu1 %v5731_v19  ;;  %v5750_v2 = vld [vmem:[%s9155_s0 + $0xa8] sm:$0xf]  ;;  %v8326_v19 = vld [vmem:[#allocation3 + $0xbb0] sm:$0xff]  ;;  %v8307_v36 = vld [vmem:[#allocation3 + $0xb18] sm:$0xff] }
 0x152   :  { %5129 = vmatpush.bf16.msra.mxu1 %v8287_v3  ;;  %5095 = vmatmul.bf16.vlgmr.msrb.gmra.mxu2 %v5735_v17  ;;  %v7941_v3 = vld [vmem:[%s9155_s0 + $0x1a4] sm:$0xf0]  ;;  %v8318_v17 = vld [vmem:[#allocation3 + $0xb70] sm:$0xff] }
 0x153   :  { %5143 = vmatpush.bf16.msra.mxu2 %v8295_v12  ;;  %5109 = vmatmul.bf16.vlgmr.msrb.gmra.mxu3 %v5739_v23  ;;  %v5751_v11 = vor.u32 %v7941_v3, %v5750_v2  ;;  %v5747_v12 = vor.u32 %v7908_v4, %v5744_v5  ;;  %v8334_v23 = vld [vmem:[#allocation3 + $0xbf0] sm:$0xff]  ;;  %v8324_v34 = vld [vmem:[#allocation3 + $0xba0] sm:$0xff]  ;;  %v7911_v2 = vld [vmem:[%s9155_s0 + $0xbc] sm:$0xf] }
 0x154   :  { %5157 = vmatpush.bf16.msra.mxu3 %v8303_v14  ;;  %v5755_v14 = vor.u32 %v7909_v6, %v5752_v7  ;;  %v5768_v3 = vld [vmem:[%s9155_s0 + $0x1b8] sm:$0xf0] }
 0x155   :  { %5116 = vmatpush.bf16.msra.mxu0 %v8278_v20  ;;  %v4872_v44 = vpop.f32.mrf.mxu2  ;;  %v4846_v47 = vpop.f32.mrf.mxu0  ;;  %v8309_v20 = vld [vmem:[#allocation3 + $0xb28] sm:$0xff]  ;;  %v8359_v4 = vld [vmem:[#allocation3 + $0xcb8] sm:$0xff] }
 0x156   :  { %5130 = vmatpush.bf16.msra.mxu1 %v8286_v21  ;;  %v4873_v45 = vadd.f32 %v4872_v44, %v4859_v40  ;;  %v4886_v46 = vpop.f32.mrf.mxu3  ;;  %v4847_v48 = vadd.f32 %v4846_v47, %v8903_v18  ;;  %v4860_v51 = vpop.f32.mrf.mxu1  ;;  %v7940_v18 = vld [vmem:[%s9155_s0 + $0x19c] sm:$0xf0]  ;;  %v8317_v21 = vld [vmem:[#allocation3 + $0xb68] sm:$0xff]  ;;  %v8314_v47 = vld [vmem:[#allocation3 + $0xb50] sm:$0xff] }
 0x157   :  { %5144 = vmatpush.bf16.msra.mxu2 %v8294_v22  ;;  %v5743_v10 = vor.u32 %v7940_v18, %v5742_v39  ;;  %v8325_v22 = vld [vmem:[#allocation3 + $0xba8] sm:$0xff]  ;;  %v8331_v40 = vld [vmem:[#allocation3 + $0xbd8] sm:$0xff]  ;;  %v7910_v39 = vld [vmem:[%s9155_s0 + $0xb4] sm:$0xf] }
 0x158   :  { %5158 = vmatpush.bf16.msra.mxu3 %v8302_v24  ;;  %v8931_v49 = vadd.f32 %v4886_v46, %v4873_v45  ;;  %v4861_v54 = vadd.f32 %v4860_v51, %v4847_v48  ;;  %v8333_v24 = vld [vmem:[#allocation3 + $0xbe8] sm:$0xff]  ;;  %v8306_v46 = vld [vmem:[#allocation3 + $0xb10] sm:$0xff]  ;;  %v8367_v5 = vld [vmem:[#allocation3 + $0xcf8] sm:$0xff] }
 0x159   :  { %5117 = vmatpush.bf16.msra.mxu0 %v8277_v26  ;;  %v8305_v51 = vld [vmem:[#allocation3 + $0xb08] sm:$0xff]  ;;  %v5760_v18 = vld [vmem:[%s9155_s0 + $0x1b0] sm:$0xf0] }
 0x15a   :  { %5131 = vmatpush.bf16.msra.mxu1 %v8285_v27 }
 0x15b   :  { %5145 = vmatpush.bf16.msra.mxu2 %v8293_v30  ;;  %v8308_v30 = vld [vmem:[#allocation3 + $0xb20] sm:$0xff] }
 0x15c   :  { %5159 = vmatpush.bf16.msra.mxu3 %v8301_v32  ;;  %v8316_v32 = vld [vmem:[#allocation3 + $0xb60] sm:$0xff] }
 0x15d   :  { %5118 = vmatpush.bf16.msra.mxu0 %v8276_v35  ;;  %v4874_v57 = vpop.f32.mrf.mxu2  ;;  %v8332_v35 = vld [vmem:[#allocation3 + $0xbe0] sm:$0xff] }
 0x15e   :  { %5132 = vmatpush.bf16.msra.mxu1 %v8284_v31  ;;  %v4875_v58 = vadd.f32 %v4874_v57, %v4861_v54  ;;  %v4888_v59 = vpop.f32.mrf.mxu3  ;;  %v8329_v54 = vld [vmem:[#allocation3 + $0xbc8] sm:$0xff]  ;;  %v8312_v57 = vld [vmem:[#allocation3 + $0xb40] sm:$0xff] }
 0x15f   :  { %5146 = vmatpush.bf16.msra.mxu2 %v8292_v37  ;;  %v8315_v37 = vld [vmem:[#allocation3 + $0xb58] sm:$0xff] }
 0x160   :  { %5160 = vmatpush.bf16.msra.mxu3 %v8300_v38  ;;  %v8933_v29 = vadd.f32 %v4888_v59, %v4875_v58  ;;  %v8323_v38 = vld [vmem:[#allocation3 + $0xb98] sm:$0xff]  ;;  %v8320_v58 = vld [vmem:[#allocation3 + $0xb80] sm:$0xff] }
 0x161   :  { %5119 = vmatpush.bf16.msra.mxu0 %v8275_v41  ;;  %v8328_v59 = vld [vmem:[#allocation3 + $0xbc0] sm:$0xff] }
 0x162   :  { %5133 = vmatpush.bf16.msra.mxu1 %v8283_v33 }
 0x163   :  { %5147 = vmatpush.bf16.msra.mxu2 %v8291_v42 }
 0x164   :  { %5161 = vmatpush.bf16.msra.mxu3 %v8299_v43 }
 0x165   :  { %5120 = vmatpush.bf16.msra.mxu0 %v8274_v50  ;;  %v8330_v50 = vld [vmem:[#allocation3 + $0xbd0] sm:$0xff] }
 0x166   :  { %5134 = vmatpush.bf16.msra.mxu1 %v8282_v13 }
 0x167   :  { %5148 = vmatpush.bf16.msra.mxu2 %v8290_v52  ;;  %v8313_v52 = vld [vmem:[#allocation3 + $0xb48] sm:$0xff] }
 0x168   :  { %5162 = vmatpush.bf16.msra.mxu3 %v8298_v53  ;;  %v8321_v53 = vld [vmem:[#allocation3 + $0xb88] sm:$0xff] }
 0x169   :  { %5121 = vmatpush.bf16.msra.mxu0 %v8273_v55 }
 0x16a   :  { %5135 = vmatpush.bf16.msra.mxu1 %v8281_v16 }
 0x16b   :  { %5149 = vmatpush.bf16.msra.mxu2 %v8289_v56 }
 0x16c   :  { %5163 = vmatpush.bf16.msra.mxu3 %v8297_v25  ;;  %v8304_v25 = vld [vmem:[#allocation3 + $0xb00] sm:$0xff] }
 0x16d   :  { %5122 = vmatpush.bf16.msra.mxu0 %v8272_v60  ;;  %v4900_v26 = vpop.f32.mrf.mxu0 }
 0x16e   :  { %5136 = vmatpush.bf16.msra.mxu1 %v8280_v61  ;;  %v4901_v27 = vadd.f32 %v4900_v26, %v8931_v49  ;;  %v4914_v28 = vpop.f32.mrf.mxu1  ;;  %v8322_v49 = vld [vmem:[#allocation3 + $0xb90] sm:$0xff]  ;;  %v8343_v61 = vld [vmem:[#allocation3 + $0xc38] sm:$0xff] }
 0x16f   :  { %5150 = vmatpush.bf16.msra.mxu2 %v8288_v62  ;;  %v8351_v62 = vld [vmem:[#allocation3 + $0xc78] sm:$0xff] }
 0x170   :  { %5164 = vmatpush.bf16.msra.mxu3 %v8296_v63  ;;  %5123 = vmatmul.bf16.vlgmr.msra.gmra.mxu0 %v5743_v10  ;;  %v4915_v31 = vadd.f32 %v4914_v28, %v4901_v27  ;;  %v5758_v63 = vld [vmem:[%s9155_s0 + $0xb0] sm:$0xf]  ;;  %v8356_v27 = vld [vmem:[#allocation3 + $0xca0] sm:$0xff]  ;;  %v8339_v28 = vld [vmem:[#allocation3 + $0xc18] sm:$0xff] }
 0x171   :  { %5171 = vmatpush.bf16.msrb.mxu0 %v8311_v0  ;;  %5137 = vmatmul.bf16.vlgmr.msra.gmra.mxu1 %v5747_v12  ;;  %v5766_v0 = vld [vmem:[%s9155_s0 + $0xb8] sm:$0xf] }
 0x172   :  { %5185 = vmatpush.bf16.msrb.mxu1 %v8319_v1  ;;  %5151 = vmatmul.bf16.vlgmr.msra.gmra.mxu2 %v5751_v11  ;;  %v7943_v1 = vld [vmem:[%s9155_s0 + $0x1b4] sm:$0xf0] }
 0x173   :  { %5199 = vmatpush.bf16.msrb.mxu2 %v8327_v8  ;;  %5165 = vmatmul.bf16.vlgmr.msra.gmra.mxu3 %v5755_v14  ;;  %v5767_v7 = vor.u32 %v7943_v1, %v5766_v0  ;;  %v5763_v8 = vor.u32 %v7910_v39, %v5760_v18  ;;  %v8342_v10 = vld [vmem:[#allocation3 + $0xc30] sm:$0xff]  ;;  %v7913_v0 = vld [vmem:[%s9155_s0 + $0xcc] sm:$0xf]  ;;  %v8391_v39 = vld [vmem:[#allocation3 + $0xdb8] sm:$0xff] }
 0x174   :  { %5213 = vmatpush.bf16.msrb.mxu3 %v8335_v9  ;;  %v5771_v9 = vor.u32 %v7911_v2, %v5768_v3  ;;  %v8350_v11 = vld [vmem:[#allocation3 + $0xc70] sm:$0xff]  ;;  %v5784_v1 = vld [vmem:[%s9155_s0 + $0x1c8] sm:$0xf0]  ;;  %v8399_v18 = vld [vmem:[#allocation3 + $0xdf8] sm:$0xff] }
 0x175   :  { %5172 = vmatpush.bf16.msrb.mxu0 %v8310_v15  ;;  %v4928_v41 = vpop.f32.mrf.mxu2  ;;  %v4902_v43 = vpop.f32.mrf.mxu0  ;;  %v8358_v12 = vld [vmem:[#allocation3 + $0xcb0] sm:$0xff]  ;;  %v8341_v15 = vld [vmem:[#allocation3 + $0xc28] sm:$0xff] }
 0x176   :  { %5186 = vmatpush.bf16.msrb.mxu1 %v8318_v17  ;;  %v4929_v33 = vadd.f32 %v4928_v41, %v4915_v31  ;;  %v4942_v42 = vpop.f32.mrf.mxu3  ;;  %v4903_v44 = vadd.f32 %v4902_v43, %v8933_v29  ;;  %v4916_v48 = vpop.f32.mrf.mxu1  ;;  %v7942_v29 = vld [vmem:[%s9155_s0 + $0x1ac] sm:$0xf0]  ;;  %v8363_v31 = vld [vmem:[#allocation3 + $0xcd8] sm:$0xff] }
 0x177   :  { %5200 = vmatpush.bf16.msrb.mxu2 %v8326_v19  ;;  %v5759_v6 = vor.u32 %v7942_v29, %v5758_v63  ;;  %v8366_v14 = vld [vmem:[#allocation3 + $0xcf0] sm:$0xff]  ;;  %v8349_v17 = vld [vmem:[#allocation3 + $0xc68] sm:$0xff]  ;;  %v7912_v63 = vld [vmem:[%s9155_s0 + $0xc4] sm:$0xf] }
 0x178   :  { %5214 = vmatpush.bf16.msrb.mxu3 %v8334_v23  ;;  %v8961_v45 = vadd.f32 %v4942_v42, %v4929_v33  ;;  %v4917_v13 = vadd.f32 %v4916_v48, %v4903_v44  ;;  %v8357_v19 = vld [vmem:[#allocation3 + $0xca8] sm:$0xff]  ;;  %v8338_v42 = vld [vmem:[#allocation3 + $0xc10] sm:$0xff]  ;;  %v5776_v29 = vld [vmem:[%s9155_s0 + $0x1c0] sm:$0xf0] }
 0x179   :  { %5173 = vmatpush.bf16.msrb.mxu0 %v8309_v20  ;;  %v8365_v23 = vld [vmem:[#allocation3 + $0xce8] sm:$0xff]  ;;  %v8346_v43 = vld [vmem:[#allocation3 + $0xc50] sm:$0xff] }
 0x17a   :  { %5187 = vmatpush.bf16.msrb.mxu1 %v8317_v21  ;;  %v8337_v48 = vld [vmem:[#allocation3 + $0xc08] sm:$0xff] }
 0x17b   :  { %5201 = vmatpush.bf16.msrb.mxu2 %v8325_v22  ;;  %v8340_v22 = vld [vmem:[#allocation3 + $0xc20] sm:$0xff] }
 0x17c   :  { %5215 = vmatpush.bf16.msrb.mxu3 %v8333_v24  ;;  %v8348_v24 = vld [vmem:[#allocation3 + $0xc60] sm:$0xff] }
 0x17d   :  { %5174 = vmatpush.bf16.msrb.mxu0 %v8308_v30  ;;  %v4930_v55 = vpop.f32.mrf.mxu2  ;;  %v8364_v30 = vld [vmem:[#allocation3 + $0xce0] sm:$0xff] }
 0x17e   :  { %5188 = vmatpush.bf16.msrb.mxu1 %v8316_v32  ;;  %v4931_v16 = vadd.f32 %v4930_v55, %v4917_v13  ;;  %v4944_v56 = vpop.f32.mrf.mxu3  ;;  %v8361_v13 = vld [vmem:[#allocation3 + $0xcc8] sm:$0xff]  ;;  %v8344_v55 = vld [vmem:[#allocation3 + $0xc40] sm:$0xff] }
 0x17f   :  { %5202 = vmatpush.bf16.msrb.mxu2 %v8324_v34  ;;  %v8347_v34 = vld [vmem:[#allocation3 + $0xc58] sm:$0xff] }
 0x180   :  { %5216 = vmatpush.bf16.msrb.mxu3 %v8332_v35  ;;  %v8963_v60 = vadd.f32 %v4944_v56, %v4931_v16  ;;  %v8355_v35 = vld [vmem:[#allocation3 + $0xc98] sm:$0xff]  ;;  %v8352_v16 = vld [vmem:[#allocation3 + $0xc80] sm:$0xff] }
 0x181   :  { %5175 = vmatpush.bf16.msrb.mxu0 %v8307_v36  ;;  %v8360_v56 = vld [vmem:[#allocation3 + $0xcc0] sm:$0xff] }
 0x182   :  { %5189 = vmatpush.bf16.msrb.mxu1 %v8315_v37 }
 0x183   :  { %5203 = vmatpush.bf16.msrb.mxu2 %v8323_v38 }
 0x184   :  { %5217 = vmatpush.bf16.msrb.mxu3 %v8331_v40 }
 0x185   :  { %5176 = vmatpush.bf16.msrb.mxu0 %v8306_v46  ;;  %v8362_v46 = vld [vmem:[#allocation3 + $0xcd0] sm:$0xff] }
 0x186   :  { %5190 = vmatpush.bf16.msrb.mxu1 %v8314_v47 }
 0x187   :  { %5204 = vmatpush.bf16.msrb.mxu2 %v8322_v49  ;;  %v8345_v49 = vld [vmem:[#allocation3 + $0xc48] sm:$0xff] }
 0x188   :  { %5218 = vmatpush.bf16.msrb.mxu3 %v8330_v50  ;;  %v8353_v50 = vld [vmem:[#allocation3 + $0xc88] sm:$0xff] }
 0x189   :  { %5177 = vmatpush.bf16.msrb.mxu0 %v8305_v51 }
 0x18a   :  { %5191 = vmatpush.bf16.msrb.mxu1 %v8313_v52 }
 0x18b   :  { %5205 = vmatpush.bf16.msrb.mxu2 %v8321_v53 }
 0x18c   :  { %5219 = vmatpush.bf16.msrb.mxu3 %v8329_v54  ;;  %v8336_v54 = vld [vmem:[#allocation3 + $0xc00] sm:$0xff] }
 0x18d   :  { %5178 = vmatpush.bf16.msrb.mxu0 %v8304_v25  ;;  %v4956_v20 = vpop.f32.mrf.mxu0 }
 0x18e   :  { %5192 = vmatpush.bf16.msrb.mxu1 %v8312_v57  ;;  %v4957_v21 = vadd.f32 %v4956_v20, %v8961_v45  ;;  %v4970_v26 = vpop.f32.mrf.mxu1  ;;  %v8354_v45 = vld [vmem:[#allocation3 + $0xc90] sm:$0xff]  ;;  %v8375_v57 = vld [vmem:[#allocation3 + $0xd38] sm:$0xff] }
 0x18f   :  { %5206 = vmatpush.bf16.msrb.mxu2 %v8320_v58  ;;  %v8383_v58 = vld [vmem:[#allocation3 + $0xd78] sm:$0xff] }
 0x190   :  { %5220 = vmatpush.bf16.msrb.mxu3 %v8328_v59  ;;  %5179 = vmatmul.bf16.vlgmr.msrb.gmra.mxu0 %v5759_v6  ;;  %v4971_v32 = vadd.f32 %v4970_v26, %v4957_v21  ;;  %v5774_v59 = vld [vmem:[%s9155_s0 + $0xc0] sm:$0xf]  ;;  %v8374_v6 = vld [vmem:[#allocation3 + $0xd30] sm:$0xff] }
 0x191   :  { %5227 = vmatpush.bf16.msra.mxu0 %v8343_v61  ;;  %5193 = vmatmul.bf16.vlgmr.msrb.gmra.mxu1 %v5763_v8  ;;  %v5782_v61 = vld [vmem:[%s9155_s0 + $0xc8] sm:$0xf]  ;;  %v8390_v8 = vld [vmem:[#allocation3 + $0xdb0] sm:$0xff]  ;;  %v8371_v20 = vld [vmem:[#allocation3 + $0xd18] sm:$0xff] }
 0x192   :  { %5241 = vmatpush.bf16.msra.mxu1 %v8351_v62  ;;  %5207 = vmatmul.bf16.vlgmr.msrb.gmra.mxu2 %v5767_v7  ;;  %v7945_v62 = vld [vmem:[%s9155_s0 + $0x1c4] sm:$0xf0]  ;;  %v8382_v7 = vld [vmem:[#allocation3 + $0xd70] sm:$0xff]  ;;  %v8379_v21 = vld [vmem:[#allocation3 + $0xd58] sm:$0xff] }
 0x193   :  { %5255 = vmatpush.bf16.msra.mxu2 %v8359_v4  ;;  %5221 = vmatmul.bf16.vlgmr.msrb.gmra.mxu3 %v5771_v9  ;;  %v5783_v3 = vor.u32 %v7945_v62, %v5782_v61  ;;  %v5779_v4 = vor.u32 %v7912_v63, %v5776_v29  ;;  %v8398_v9 = vld [vmem:[#allocation3 + $0xdf0] sm:$0xff]  ;;  %v8421_v61 = vld [vmem:[#allocation3 + $0xea8] sm:$0xff]  ;;  %v8404_v63 = vld [vmem:[#allocation3 + $0xe20] sm:$0xff] }
 0x194   :  { %5269 = vmatpush.bf16.msra.mxu3 %v8367_v5  ;;  %v5787_v5 = vor.u32 %v7913_v0, %v5784_v1  ;;  %v8370_v26 = vld [vmem:[#allocation3 + $0xd10] sm:$0xff]  ;;  %v8429_v62 = vld [vmem:[#allocation3 + $0xee8] sm:$0xff]  ;;  %v8412_v29 = vld [vmem:[#allocation3 + $0xe60] sm:$0xff] }
 0x195   :  { %5228 = vmatpush.bf16.msra.mxu0 %v8342_v10  ;;  %v4984_v36 = vpop.f32.mrf.mxu2  ;;  %v4958_v40 = vpop.f32.mrf.mxu0  ;;  %v8373_v10 = vld [vmem:[#allocation3 + $0xd28] sm:$0xff]  ;;  %v8420_v0 = vld [vmem:[#allocation3 + $0xea0] sm:$0xff] }
 0x196   :  { %5242 = vmatpush.bf16.msra.mxu1 %v8350_v11  ;;  %v4985_v37 = vadd.f32 %v4984_v36, %v4971_v32  ;;  %v4998_v38 = vpop.f32.mrf.mxu3  ;;  %v4959_v41 = vadd.f32 %v4958_v40, %v8963_v60  ;;  %v4972_v44 = vpop.f32.mrf.mxu1  ;;  %v7944_v60 = vld [vmem:[%s9155_s0 + $0x1bc] sm:$0xf0]  ;;  %v8381_v11 = vld [vmem:[#allocation3 + $0xd68] sm:$0xff]  ;;  %v8394_v32 = vld [vmem:[#allocation3 + $0xdd0] sm:$0xff] }
 0x197   :  { %5256 = vmatpush.bf16.msra.mxu2 %v8358_v12  ;;  %v5775_v2 = vor.u32 %v7944_v60, %v5774_v59  ;;  %v8389_v12 = vld [vmem:[#allocation3 + $0xda8] sm:$0xff]  ;;  %v8368_v36 = vld [vmem:[#allocation3 + $0xd00] sm:$0xff] }
 0x198   :  { %5270 = vmatpush.bf16.msra.mxu3 %v8366_v14  ;;  %v8991_v33 = vadd.f32 %v4998_v38, %v4985_v37  ;;  %v4973_v47 = vadd.f32 %v4972_v44, %v4959_v41  ;;  %v8397_v14 = vld [vmem:[#allocation3 + $0xde8] sm:$0xff]  ;;  %v8376_v37 = vld [vmem:[#allocation3 + $0xd40] sm:$0xff]  ;;  %v8407_v41 = vld [vmem:[#allocation3 + $0xe38] sm:$0xff] }
 0x199   :  { %5229 = vmatpush.bf16.msra.mxu0 %v8341_v15  ;;  %v8372_v15 = vld [vmem:[#allocation3 + $0xd20] sm:$0xff]  ;;  %v7946_v44 = vld [vmem:[%s9155_s0 + $0x1cc] sm:$0xf0] }
 0x19a   :  { %5243 = vmatpush.bf16.msra.mxu1 %v8349_v17  ;;  %v8380_v17 = vld [vmem:[#allocation3 + $0xd60] sm:$0xff]  ;;  %v8405_v59 = vld [vmem:[#allocation3 + $0xe28] sm:$0xff] }
 0x19b   :  { %5257 = vmatpush.bf16.msra.mxu2 %v8357_v19  ;;  %v8388_v19 = vld [vmem:[#allocation3 + $0xda0] sm:$0xff]  ;;  %v8413_v60 = vld [vmem:[#allocation3 + $0xe68] sm:$0xff] }
 0x19c   :  { %5271 = vmatpush.bf16.msra.mxu3 %v8365_v23  ;;  %v8396_v23 = vld [vmem:[#allocation3 + $0xde0] sm:$0xff] }
 0x19d   :  { %5230 = vmatpush.bf16.msra.mxu0 %v8340_v22  ;;  %v4986_v51 = vpop.f32.mrf.mxu2  ;;  %v8387_v22 = vld [vmem:[#allocation3 + $0xd98] sm:$0xff]  ;;  %v8384_v38 = vld [vmem:[#allocation3 + $0xd80] sm:$0xff] }
 0x19e   :  { %5244 = vmatpush.bf16.msra.mxu1 %v8348_v24  ;;  %v4987_v52 = vadd.f32 %v4986_v51, %v4973_v47  ;;  %v5000_v53 = vpop.f32.mrf.mxu3  ;;  %v8395_v24 = vld [vmem:[#allocation3 + $0xdd8] sm:$0xff]  ;;  %v8392_v40 = vld [vmem:[#allocation3 + $0xdc0] sm:$0xff]  ;;  %v7914_v47 = vld [vmem:[%s9155_s0 + $0xd4] sm:$0xf] }
 0x19f   :  { %5258 = vmatpush.bf16.msra.mxu2 %v8356_v27  ;;  %v8378_v27 = vld [vmem:[#allocation3 + $0xd50] sm:$0xff]  ;;  %v8431_v51 = vld [vmem:[#allocation3 + $0xef8] sm:$0xff]  ;;  %v8428_v1 = vld [vmem:[#allocation3 + $0xee0] sm:$0xff] }
 0x1a0   :  { %5272 = vmatpush.bf16.msra.mxu3 %v8364_v30  ;;  %v8993_v25 = vadd.f32 %v5000_v53, %v4987_v52  ;;  %v8386_v30 = vld [vmem:[#allocation3 + $0xd90] sm:$0xff] }
 0x1a1   :  { %5231 = vmatpush.bf16.msra.mxu0 %v8339_v28  ;;  %v8369_v28 = vld [vmem:[#allocation3 + $0xd08] sm:$0xff] }
 0x1a2   :  { %5245 = vmatpush.bf16.msra.mxu1 %v8347_v34  ;;  %v8377_v34 = vld [vmem:[#allocation3 + $0xd48] sm:$0xff] }
 0x1a3   :  { %5259 = vmatpush.bf16.msra.mxu2 %v8355_v35  ;;  %v8385_v35 = vld [vmem:[#allocation3 + $0xd88] sm:$0xff] }
 0x1a4   :  { %5273 = vmatpush.bf16.msra.mxu3 %v8363_v31  ;;  %v8393_v31 = vld [vmem:[#allocation3 + $0xdc8] sm:$0xff] }
 0x1a5   :  { %5232 = vmatpush.bf16.msra.mxu0 %v8338_v42  ;;  %v8415_v42 = vld [vmem:[#allocation3 + $0xe78] sm:$0xff] }
 0x1a6   :  { %5246 = vmatpush.bf16.msra.mxu1 %v8346_v43  ;;  %v5790_v43 = vld [vmem:[%s9155_s0 + $0xd0] sm:$0xf] }
 0x1a7   :  { %5260 = vmatpush.bf16.msra.mxu2 %v8354_v45  ;;  %v5798_v45 = vld [vmem:[%s9155_s0 + $0xd8] sm:$0xf]  ;;  %v5791_v52 = vor.u32 %v7946_v44, %v5790_v43  ;;  %v8437_v43 = vld [vmem:[#allocation3 + $0xf28] sm:$0xff] }
 0x1a8   :  { %5274 = vmatpush.bf16.msra.mxu3 %v8362_v46  ;;  %v7947_v46 = vld [vmem:[%s9155_s0 + $0x1d4] sm:$0xf0]  ;;  %v8445_v44 = vld [vmem:[#allocation3 + $0xf68] sm:$0xff] }
 0x1a9   :  { %5233 = vmatpush.bf16.msra.mxu0 %v8337_v48  ;;  %v5792_v48 = vld [vmem:[%s9155_s0 + $0x1d0] sm:$0xf0]  ;;  %v5799_v53 = vor.u32 %v7947_v46, %v5798_v45  ;;  %v8453_v45 = vld [vmem:[#allocation3 + $0xfa8] sm:$0xff] }
 0x1aa   :  { %5247 = vmatpush.bf16.msra.mxu1 %v8345_v49  ;;  %v7915_v49 = vld [vmem:[%s9155_s0 + $0xdc] sm:$0xf]  ;;  %v8461_v46 = vld [vmem:[#allocation3 + $0xfe8] sm:$0xff] }
 0x1ab   :  { %5261 = vmatpush.bf16.msra.mxu2 %v8353_v50  ;;  %v5800_v50 = vld [vmem:[%s9155_s0 + $0x1d8] sm:$0xf0] }
 0x1ac   :  { %5275 = vmatpush.bf16.msra.mxu3 %v8361_v13  ;;  %v8423_v13 = vld [vmem:[#allocation3 + $0xeb8] sm:$0xff] }
 0x1ad   :  { %5234 = vmatpush.bf16.msra.mxu0 %v8336_v54  ;;  %v5795_v54 = vor.u32 %v7914_v47, %v5792_v48  ;;  %v8436_v47 = vld [vmem:[#allocation3 + $0xf20] sm:$0xff] }
 0x1ae   :  { %5248 = vmatpush.bf16.msra.mxu1 %v8344_v55  ;;  %v5803_v55 = vor.u32 %v7915_v49, %v5800_v50  ;;  %v8444_v48 = vld [vmem:[#allocation3 + $0xf60] sm:$0xff] }
 0x1af   :  { %5262 = vmatpush.bf16.msra.mxu2 %v8352_v16  ;;  %v8406_v16 = vld [vmem:[#allocation3 + $0xe30] sm:$0xff]  ;;  %v8452_v49 = vld [vmem:[#allocation3 + $0xfa0] sm:$0xff] }
 0x1b0   :  { %5276 = vmatpush.bf16.msra.mxu3 %v8360_v56  ;;  %5235 = vmatmul.bf16.vlgmr.msra.gmra.mxu0 %v5775_v2  ;;  %v8414_v56 = vld [vmem:[#allocation3 + $0xe70] sm:$0xff]  ;;  %v8419_v2 = vld [vmem:[#allocation3 + $0xe98] sm:$0xff]  ;;  %v8460_v50 = vld [vmem:[#allocation3 + $0xfe0] sm:$0xff] }
 0x1b1   :  { %5283 = vmatpush.bf16.msrb.mxu0 %v8375_v57  ;;  %5249 = vmatmul.bf16.vlgmr.msra.gmra.mxu1 %v5779_v4  ;;  %v8422_v57 = vld [vmem:[#allocation3 + $0xeb0] sm:$0xff] }
 0x1b2   :  { %5297 = vmatpush.bf16.msrb.mxu1 %v8383_v58  ;;  %5263 = vmatmul.bf16.vlgmr.msra.gmra.mxu2 %v5783_v3  ;;  %v8430_v58 = vld [vmem:[#allocation3 + $0xef0] sm:$0xff]  ;;  %v8427_v3 = vld [vmem:[#allocation3 + $0xed8] sm:$0xff] }
 0x1b3   :  { %5311 = vmatpush.bf16.msrb.mxu2 %v8391_v39  ;;  %5277 = vmatmul.bf16.vlgmr.msra.gmra.mxu3 %v5787_v5  ;;  %v8403_v39 = vld [vmem:[#allocation3 + $0xe18] sm:$0xff]  ;;  %v8402_v4 = vld [vmem:[#allocation3 + $0xe10] sm:$0xff] }
 0x1b4   :  { %5325 = vmatpush.bf16.msrb.mxu3 %v8399_v18  ;;  %v8411_v18 = vld [vmem:[#allocation3 + $0xe58] sm:$0xff]  ;;  %v8410_v5 = vld [vmem:[#allocation3 + $0xe50] sm:$0xff] }
 0x1b5   :  { %5284 = vmatpush.bf16.msrb.mxu0 %v8374_v6  ;;  %v8418_v6 = vld [vmem:[#allocation3 + $0xe90] sm:$0xff] }
 0x1b6   :  { %5298 = vmatpush.bf16.msrb.mxu1 %v8382_v7  ;;  %v8426_v7 = vld [vmem:[#allocation3 + $0xed0] sm:$0xff] }
 0x1b7   :  { %5312 = vmatpush.bf16.msrb.mxu2 %v8390_v8  ;;  %v8401_v8 = vld [vmem:[#allocation3 + $0xe08] sm:$0xff] }
 0x1b8   :  { %5326 = vmatpush.bf16.msrb.mxu3 %v8398_v9  ;;  %v8409_v9 = vld [vmem:[#allocation3 + $0xe48] sm:$0xff] }
 0x1b9   :  { %5285 = vmatpush.bf16.msrb.mxu0 %v8373_v10  ;;  %v8417_v10 = vld [vmem:[#allocation3 + $0xe88] sm:$0xff] }
 0x1ba   :  { %5299 = vmatpush.bf16.msrb.mxu1 %v8381_v11  ;;  %v8425_v11 = vld [vmem:[#allocation3 + $0xec8] sm:$0xff] }
 0x1bb   :  { %5313 = vmatpush.bf16.msrb.mxu2 %v8389_v12  ;;  %v8400_v12 = vld [vmem:[#allocation3 + $0xe00] sm:$0xff] }
 0x1bc   :  { %5327 = vmatpush.bf16.msrb.mxu3 %v8397_v14  ;;  %v8408_v14 = vld [vmem:[#allocation3 + $0xe40] sm:$0xff] }
 0x1bd   :  { %5286 = vmatpush.bf16.msrb.mxu0 %v8372_v15  ;;  %v8416_v15 = vld [vmem:[#allocation3 + $0xe80] sm:$0xff] }
 0x1be   :  { %5300 = vmatpush.bf16.msrb.mxu1 %v8380_v17  ;;  %v8424_v17 = vld [vmem:[#allocation3 + $0xec0] sm:$0xff] }
 0x1bf   :  { %5314 = vmatpush.bf16.msrb.mxu2 %v8388_v19  ;;  %v8439_v19 = vld [vmem:[#allocation3 + $0xf38] sm:$0xff] }
 0x1c0   :  { %5328 = vmatpush.bf16.msrb.mxu3 %v8396_v23  ;;  %v8447_v23 = vld [vmem:[#allocation3 + $0xf78] sm:$0xff] }
 0x1c1   :  { %5287 = vmatpush.bf16.msrb.mxu0 %v8371_v20  ;;  %v5806_v20 = vld [vmem:[%s9155_s0 + $0xe0] sm:$0xf] }
 0x1c2   :  { %5301 = vmatpush.bf16.msrb.mxu1 %v8379_v21  ;;  %v7948_v21 = vld [vmem:[%s9155_s0 + $0x1dc] sm:$0xf0] }
 0x1c3   :  { %5315 = vmatpush.bf16.msrb.mxu2 %v8387_v22  ;;  %v5814_v22 = vld [vmem:[%s9155_s0 + $0xe8] sm:$0xf] }
 0x1c4   :  { %5329 = vmatpush.bf16.msrb.mxu3 %v8395_v24  ;;  %v7949_v24 = vld [vmem:[%s9155_s0 + $0x1e4] sm:$0xf0] }
 0x1c5   :  { %5288 = vmatpush.bf16.msrb.mxu0 %v8370_v26  ;;  %v7916_v26 = vld [vmem:[%s9155_s0 + $0xe4] sm:$0xf] }
 0x1c6   :  { %5302 = vmatpush.bf16.msrb.mxu1 %v8378_v27  ;;  %v5808_v27 = vld [vmem:[%s9155_s0 + $0x1e0] sm:$0xf0] }
 0x1c7   :  { %5316 = vmatpush.bf16.msrb.mxu2 %v8386_v30  ;;  %v7917_v30 = vld [vmem:[%s9155_s0 + $0xec] sm:$0xf] }
 0x1c8   :  { %5330 = vmatpush.bf16.msrb.mxu3 %v8394_v32  ;;  %v5816_v32 = vld [vmem:[%s9155_s0 + $0x1e8] sm:$0xf0] }
 0x1c9   :  { %5289 = vmatpush.bf16.msrb.mxu0 %v8369_v28  ;;  %v8455_v28 = vld [vmem:[#allocation3 + $0xfb8] sm:$0xff] }
 0x1ca   :  { %5303 = vmatpush.bf16.msrb.mxu1 %v8377_v34  ;;  %v8463_v34 = vld [vmem:[#allocation3 + $0xff8] sm:$0xff] }
 0x1cb   :  { %5317 = vmatpush.bf16.msrb.mxu2 %v8385_v35  ;;  %v5807_v35 = vor.u32 %v7948_v21, %v5806_v20 }
 0x1cc   :  { %5331 = vmatpush.bf16.msrb.mxu3 %v8393_v31  ;;  %v5815_v31 = vor.u32 %v7949_v24, %v5814_v22 }
 0x1cd   :  { %5290 = vmatpush.bf16.msrb.mxu0 %v8368_v36  ;;  %v5811_v36 = vor.u32 %v7916_v26, %v5808_v27 }
 0x1ce   :  { %5304 = vmatpush.bf16.msrb.mxu1 %v8376_v37  ;;  %v5819_v37 = vor.u32 %v7917_v30, %v5816_v32 }
 0x1cf   :  { %5318 = vmatpush.bf16.msrb.mxu2 %v8384_v38  ;;  %v8438_v38 = vld [vmem:[#allocation3 + $0xf30] sm:$0xff] }
 0x1d0   :  { %5332 = vmatpush.bf16.msrb.mxu3 %v8392_v40  ;;  %5291 = vmatmul.bf16.vlgmr.msrb.gmra.mxu0 %v5791_v52  ;;  %v8446_v40 = vld [vmem:[#allocation3 + $0xf70] sm:$0xff]  ;;  %v8451_v52 = vld [vmem:[#allocation3 + $0xf98] sm:$0xff] }
 0x1d1   :  { %5339 = vmatpush.bf16.msra.mxu0 %v8407_v41  ;;  %5305 = vmatmul.bf16.vlgmr.msrb.gmra.mxu1 %v5795_v54  ;;  %v8454_v41 = vld [vmem:[#allocation3 + $0xfb0] sm:$0xff] }
 0x1d2   :  { %5353 = vmatpush.bf16.msra.mxu1 %v8415_v42  ;;  %5319 = vmatmul.bf16.vlgmr.msrb.gmra.mxu2 %v5799_v53  ;;  %v8462_v42 = vld [vmem:[#allocation3 + $0xff0] sm:$0xff]  ;;  %v8459_v53 = vld [vmem:[#allocation3 + $0xfd8] sm:$0xff] }
 0x1d3   :  { %5367 = vmatpush.bf16.msra.mxu2 %v8423_v13  ;;  %5333 = vmatmul.bf16.vlgmr.msrb.gmra.mxu3 %v5803_v55  ;;  %v8435_v13 = vld [vmem:[#allocation3 + $0xf18] sm:$0xff]  ;;  %v8434_v54 = vld [vmem:[#allocation3 + $0xf10] sm:$0xff] }
 0x1d4   :  { %5381 = vmatpush.bf16.msra.mxu3 %v8431_v51  ;;  %v8443_v51 = vld [vmem:[#allocation3 + $0xf58] sm:$0xff]  ;;  %v8442_v55 = vld [vmem:[#allocation3 + $0xf50] sm:$0xff] }
 0x1d5   :  { %5340 = vmatpush.bf16.msra.mxu0 %v8406_v16  ;;  %v8450_v16 = vld [vmem:[#allocation3 + $0xf90] sm:$0xff] }
 0x1d6   :  { %5354 = vmatpush.bf16.msra.mxu1 %v8414_v56  ;;  %v8458_v56 = vld [vmem:[#allocation3 + $0xfd0] sm:$0xff] }
 0x1d7   :  { %5368 = vmatpush.bf16.msra.mxu2 %v8422_v57  ;;  %v8433_v57 = vld [vmem:[#allocation3 + $0xf08] sm:$0xff] }
 0x1d8   :  { %5382 = vmatpush.bf16.msra.mxu3 %v8430_v58  ;;  %v8441_v58 = vld [vmem:[#allocation3 + $0xf48] sm:$0xff] }
 0x1d9   :  { %5341 = vmatpush.bf16.msra.mxu0 %v8405_v59  ;;  %v8449_v59 = vld [vmem:[#allocation3 + $0xf88] sm:$0xff] }
 0x1da   :  { %5355 = vmatpush.bf16.msra.mxu1 %v8413_v60  ;;  %v8457_v60 = vld [vmem:[#allocation3 + $0xfc8] sm:$0xff] }
 0x1db   :  { %5369 = vmatpush.bf16.msra.mxu2 %v8421_v61  ;;  %v8432_v61 = vld [vmem:[#allocation3 + $0xf00] sm:$0xff] }
 0x1dc   :  { %5383 = vmatpush.bf16.msra.mxu3 %v8429_v62  ;;  %v8440_v62 = vld [vmem:[#allocation3 + $0xf40] sm:$0xff] }
 0x1dd   :  { %5342 = vmatpush.bf16.msra.mxu0 %v8404_v63  ;;  %v8448_v63 = vld [vmem:[#allocation3 + $0xf80] sm:$0xff] }
 0x1de   :  { %5356 = vmatpush.bf16.msra.mxu1 %v8412_v29  ;;  %v8456_v29 = vld [vmem:[#allocation3 + $0xfc0] sm:$0xff] }
 0x1df   :  { %5370 = vmatpush.bf16.msra.mxu2 %v8420_v0  ;;  %v5822_v0 = vld [vmem:[%s9155_s0 + $0xf0] sm:$0xf] }
 0x1e0   :  { %5384 = vmatpush.bf16.msra.mxu3 %v8428_v1  ;;  %v7950_v1 = vld [vmem:[%s9155_s0 + $0x1ec] sm:$0xf0] }
 0x1e1   :  { %5343 = vmatpush.bf16.msra.mxu0 %v8403_v39  ;;  %v7918_v39 = vld [vmem:[%s9155_s0 + $0xf4] sm:$0xf] }
 0x1e2   :  { %5357 = vmatpush.bf16.msra.mxu1 %v8411_v18  ;;  %v5824_v18 = vld [vmem:[%s9155_s0 + $0x1f0] sm:$0xf0] }
 0x1e3   :  { %5371 = vmatpush.bf16.msra.mxu2 %v8419_v2  ;;  %v5830_v2 = vld [vmem:[%s9155_s0 + $0xf8] sm:$0xf] }
 0x1e4   :  { %5385 = vmatpush.bf16.msra.mxu3 %v8427_v3  ;;  %v7951_v3 = vld [vmem:[%s9155_s0 + $0x1f4] sm:$0xf0] }
 0x1e5   :  { %5344 = vmatpush.bf16.msra.mxu0 %v8402_v4  ;;  %v7919_v4 = vld [vmem:[%s9155_s0 + $0xfc] sm:$0xf] }
 0x1e6   :  { %5358 = vmatpush.bf16.msra.mxu1 %v8410_v5  ;;  %v5832_v5 = vld [vmem:[%s9155_s0 + $0x1f8] sm:$0xf0] }
 0x1e7   :  { %5372 = vmatpush.bf16.msra.mxu2 %v8418_v6  ;;  %v5823_v6 = vor.u32 %v7950_v1, %v5822_v0 }
 0x1e8   :  { %5386 = vmatpush.bf16.msra.mxu3 %v8426_v7  ;;  %v5827_v7 = vor.u32 %v7918_v39, %v5824_v18  ;;  %v5468_v39 = vld [vmem:[%s9158_s3 + $0x78] sm:$0xff]  ;;  %v5467_v18 = vld [vmem:[%s9158_s3 + $0x70] sm:$0xff] }
 0x1e9   :  { %5345 = vmatpush.bf16.msra.mxu0 %v8401_v8  ;;  %v5831_v8 = vor.u32 %v7951_v3, %v5830_v2 }
 0x1ea   :  { %5359 = vmatpush.bf16.msra.mxu1 %v8409_v9  ;;  %v5835_v9 = vor.u32 %v7919_v4, %v5832_v5 }
 0x1eb   :  { %5373 = vmatpush.bf16.msra.mxu2 %v8417_v10  ;;  %v5012_v10 = vpop.f32.mrf.mxu0 }
 0x1ec   :  { %5387 = vmatpush.bf16.msra.mxu3 %v8425_v11  ;;  %v5026_v11 = vpop.f32.mrf.mxu1 }
 0x1ed   :  { %5346 = vmatpush.bf16.msra.mxu0 %v8400_v12  ;;  %v5040_v12 = vpop.f32.mrf.mxu2 }
 0x1ee   :  { %5360 = vmatpush.bf16.msra.mxu1 %v8408_v14  ;;  %v5054_v14 = vpop.f32.mrf.mxu3 }
 0x1ef   :  { %5374 = vmatpush.bf16.msra.mxu2 %v8416_v15 }
 0x1f0   :  { %5388 = vmatpush.bf16.msra.mxu3 %v8424_v17  ;;  %5347 = vmatmul.bf16.vlgmr.msra.gmra.mxu0 %v5807_v35 }
 0x1f1   :  { %5395 = vmatpush.bf16.msrb.mxu0 %v8439_v19  ;;  %5361 = vmatmul.bf16.vlgmr.msra.gmra.mxu1 %v5811_v36  ;;  %v5013_v36 = vadd.f32 %v5012_v10, %v8991_v33  ;;  %v5465_v10 = vld [vmem:[%s9158_s3 + $0x60] sm:$0xff] }
 0x1f2   :  { %5409 = vmatpush.bf16.msrb.mxu1 %v8447_v23  ;;  %5375 = vmatmul.bf16.vlgmr.msra.gmra.mxu2 %v5815_v31 }
 0x1f3   :  { %5423 = vmatpush.bf16.msrb.mxu2 %v8455_v28  ;;  %5389 = vmatmul.bf16.vlgmr.msra.gmra.mxu3 %v5819_v37  ;;  %v5014_v15 = vpop.f32.mrf.mxu0 }
 0x1f4   :  { %5437 = vmatpush.bf16.msrb.mxu3 %v8463_v34  ;;  %v5028_v17 = vpop.f32.mrf.mxu1 }
 0x1f5   :  { %5396 = vmatpush.bf16.msrb.mxu0 %v8438_v38  ;;  %v5042_v19 = vpop.f32.mrf.mxu2  ;;  %v5027_v38 = vadd.f32 %v5026_v11, %v5013_v36  ;;  %v5464_v11 = vld [vmem:[%s9158_s3 + $0x58] sm:$0xff] }
 0x1f6   :  { %5410 = vmatpush.bf16.msrb.mxu1 %v8446_v40  ;;  %v5056_v23 = vpop.f32.mrf.mxu3 }
 0x1f7   :  { %5424 = vmatpush.bf16.msrb.mxu2 %v8454_v41  ;;  %v5041_v41 = vadd.f32 %v5040_v12, %v5027_v38 }
 0x1f8   :  { %5438 = vmatpush.bf16.msrb.mxu3 %v8462_v42  ;;  %v5015_v42 = vadd.f32 %v5014_v15, %v8993_v25 }
 0x1f9   :  { %5397 = vmatpush.bf16.msrb.mxu0 %v8437_v43 }
 0x1fa   :  { %5411 = vmatpush.bf16.msrb.mxu1 %v8445_v44 }
 0x1fb   :  { %5425 = vmatpush.bf16.msrb.mxu2 %v8453_v45  ;;  %v5068_v20 = vpop.f32.mrf.mxu0  ;;  %v5055_v45 = vadd.f32 %v5054_v14, %v5041_v41  ;;  %v5463_v14 = vld [vmem:[%s9158_s3 + $0x50] sm:$0xff]  ;;  %v5457_v41 = vld [vmem:[%s9158_s3 + $0x20] sm:$0xff] }
 0x1fc   :  { %5439 = vmatpush.bf16.msrb.mxu3 %v8461_v46  ;;  %v5082_v21 = vpop.f32.mrf.mxu1 }
 0x1fd   :  { %5398 = vmatpush.bf16.msrb.mxu0 %v8436_v47  ;;  %v5096_v22 = vpop.f32.mrf.mxu2  ;;  %v5029_v47 = vadd.f32 %v5028_v17, %v5015_v42 }
 0x1fe   :  { %5412 = vmatpush.bf16.msrb.mxu1 %v8444_v48  ;;  %v5110_v24 = vpop.f32.mrf.mxu3  ;;  %v5069_v48 = vadd.f32 %v5068_v20, %v5055_v45 }
 0x1ff   :  { %5426 = vmatpush.bf16.msrb.mxu2 %v8452_v49 }
 0x200   :  { %5440 = vmatpush.bf16.msrb.mxu3 %v8460_v50  ;;  %v5043_v50 = vadd.f32 %v5042_v19, %v5029_v47 }
 0x201   :  { %5399 = vmatpush.bf16.msrb.mxu0 %v8435_v13  ;;  %v5083_v13 = vadd.f32 %v5082_v21, %v5069_v48  ;;  %v5461_v21 = vld [vmem:[%s9158_s3 + $0x40] sm:$0xff]  ;;  %v5455_v48 = vld [vmem:[%s9158_s3 + $0x10] sm:$0xff] }
 0x202   :  { %5413 = vmatpush.bf16.msrb.mxu1 %v8443_v51 }
 0x203   :  { %5427 = vmatpush.bf16.msrb.mxu2 %v8451_v52  ;;  %v5070_v26 = vpop.f32.mrf.mxu0 }
 0x204   :  { %5441 = vmatpush.bf16.msrb.mxu3 %v8459_v53  ;;  %v5084_v27 = vpop.f32.mrf.mxu1  ;;  %v5057_v53 = vadd.f32 %v5056_v23, %v5043_v50  ;;  %v5462_v23 = vld [vmem:[%s9158_s3 + $0x48] sm:$0xff] }
 0x205   :  { %5400 = vmatpush.bf16.msrb.mxu0 %v8434_v54  ;;  %v5098_v30 = vpop.f32.mrf.mxu2  ;;  %v5097_v54 = vadd.f32 %v5096_v22, %v5083_v13 }
 0x206   :  { %5414 = vmatpush.bf16.msrb.mxu1 %v8442_v55  ;;  %v5112_v32 = vpop.f32.mrf.mxu3  ;;  %v5071_v33 = vadd.f32 %v5070_v26, %v5057_v53  ;;  %v5453_v53 = vld [vmem:[%s9158_s3] sm:$0xff] }
 0x207   :  { %5428 = vmatpush.bf16.msrb.mxu2 %v8450_v16  ;;  %v5111_v16 = vadd.f32 %v5110_v24, %v5097_v54 }
 0x208   :  { %5442 = vmatpush.bf16.msrb.mxu3 %v8458_v56 }
 0x209   :  { %5401 = vmatpush.bf16.msrb.mxu0 %v8433_v57  ;;  %v5085_v57 = vadd.f32 %v5084_v27, %v5071_v33 }
 0x20a   :  { %5415 = vmatpush.bf16.msrb.mxu1 %v8441_v58 }
 0x20b   :  { %5429 = vmatpush.bf16.msrb.mxu2 %v8449_v59  ;;  %v5124_v28 = vpop.f32.mrf.mxu0  ;;  %v5099_v25 = vadd.f32 %v5098_v30, %v5085_v57  ;;  %v5460_v30 = vld [vmem:[%s9158_s3 + $0x38] sm:$0xff] }
 0x20c   :  { %5443 = vmatpush.bf16.msrb.mxu3 %v8457_v60  ;;  %v5138_v34 = vpop.f32.mrf.mxu1  ;;  %v5125_v58 = vadd.f32 %v5124_v28, %v5111_v16 }
 0x20d   :  { %5402 = vmatpush.bf16.msrb.mxu0 %v8432_v61  ;;  %v5152_v35 = vpop.f32.mrf.mxu2 }
 0x20e   :  { %5416 = vmatpush.bf16.msrb.mxu1 %v8440_v62  ;;  %v5166_v31 = vpop.f32.mrf.mxu3  ;;  %v5139_v61 = vadd.f32 %v5138_v34, %v5125_v58 }
 0x20f   :  { %5430 = vmatpush.bf16.msrb.mxu2 %v8448_v63  ;;  %v5113_v63 = vadd.f32 %v5112_v32, %v5099_v25 }
 0x210   :  { %5444 = vmatpush.bf16.msrb.mxu3 %v8456_v29  ;;  %5403 = vmatmul.bf16.vlgmr.msrb.gmra.mxu0 %v5823_v6  ;;  %v5153_v29 = vadd.f32 %v5152_v35, %v5139_v61 }
 0x211   :  { %5417 = vmatmul.bf16.vlgmr.msrb.gmra.mxu1 %v5827_v7  ;;  %5473 = vmatpush.msra.mxu0 %v5468_v39  ;;  %v5466_v7 = vld [vmem:[%s9158_s3 + $0x68] sm:$0xff] }
 0x212   :  { %5431 = vmatmul.bf16.vlgmr.msrb.gmra.mxu2 %v5831_v8  ;;  %v5167_v2 = vadd.f32 %v5166_v31, %v5153_v29  ;;  %v5459_v31 = vld [vmem:[%s9158_s3 + $0x30] sm:$0xff] }
 0x213   :  { %5445 = vmatmul.bf16.vlgmr.msrb.gmra.mxu3 %v5835_v9  ;;  %v5126_v37 = vpop.f32.mrf.mxu0  ;;  %8464 = vmatpush.msra.mxu2 %v5468_v39 }
 0x214   :  { %v5140_v40 = vpop.f32.mrf.mxu1  ;;  %v5127_v1 = vadd.f32 %v5126_v37, %v5113_v63  ;;  %5474 = vmatpush.msra.mxu0 %v5467_v18  ;;  %v5458_v37 = vld [vmem:[%s9158_s3 + $0x28] sm:$0xff] }
 0x215   :  { %v5154_v43 = vpop.f32.mrf.mxu2  ;;  %8465 = vmatpush.msra.mxu2 %v5467_v18 }
 0x216   :  { %v5168_v44 = vpop.f32.mrf.mxu3  ;;  %v5141_v5 = vadd.f32 %v5140_v40, %v5127_v1  ;;  %5475 = vmatpush.msra.mxu0 %v5466_v7 }
 0x217   :  { %8466 = vmatpush.msra.mxu2 %v5466_v7 }
 0x218   :  { %v5155_v8 = vadd.f32 %v5154_v43, %v5141_v5  ;;  %5476 = vmatpush.msra.mxu0 %v5465_v10 }
 0x219   :  { %8467 = vmatpush.msra.mxu2 %v5465_v10 }
 0x21a   :  { %5477 = vmatpush.msra.mxu0 %v5464_v11  ;;  %v5169_v17 = vadd.f32 %v5168_v44, %v5155_v8 }
 0x21b   :  { %v5180_v46 = vpop.f32.mrf.mxu0  ;;  %8468 = vmatpush.msra.mxu2 %v5464_v11 }
 0x21c   :  { %v5194_v49 = vpop.f32.mrf.mxu1  ;;  %v5181_v6 = vadd.f32 %v5180_v46, %v5167_v2  ;;  %5478 = vmatpush.msra.mxu0 %v5463_v14  ;;  %v5456_v46 = vld [vmem:[%s9158_s3 + $0x18] sm:$0xff] }
 0x21d   :  { %v5208_v51 = vpop.f32.mrf.mxu2  ;;  %8469 = vmatpush.msra.mxu2 %v5463_v14 }
 0x21e   :  { %v5222_v52 = vpop.f32.mrf.mxu3  ;;  %v5195_v12 = vadd.f32 %v5194_v49, %v5181_v6  ;;  %5479 = vmatpush.msra.mxu0 %v5462_v23 }
 0x21f   :  { %8470 = vmatpush.msra.mxu2 %v5462_v23 }
 0x220   :  { %v5209_v19 = vadd.f32 %v5208_v51, %v5195_v12  ;;  %5480 = vmatpush.msra.mxu0 %v5461_v21  ;;  %v5454_v51 = vld [vmem:[%s9158_s3 + $0x8] sm:$0xff] }
 0x221   :  { %8471 = vmatpush.msra.mxu2 %v5461_v21 }
 0x222   :  { %v5223_v26 = vadd.f32 %v5222_v52, %v5209_v19  ;;  %5481 = vmatpush.msra.mxu0 %v5460_v30 }
 0x223   :  { %v5182_v55 = vpop.f32.mrf.mxu0  ;;  %8472 = vmatpush.msra.mxu2 %v5460_v30 }
 0x224   :  { %v5196_v56 = vpop.f32.mrf.mxu1  ;;  %v5183_v20 = vadd.f32 %v5182_v55, %v5169_v17  ;;  %5482 = vmatpush.msra.mxu0 %v5459_v31 }
 0x225   :  { %v5210_v59 = vpop.f32.mrf.mxu2  ;;  %8473 = vmatpush.msra.mxu2 %v5459_v31  ;;  %v8486_v31 = vld [vmem:[#allocation7] ss:$0 sm:$0xff] }
 0x226   :  { %v9093_v60 = vpop.f32.mrf.mxu3  ;;  %v5197_v32 = vadd.f32 %v5196_v56, %v5183_v20  ;;  %5483 = vmatpush.msra.mxu0 %v5458_v37 }
 0x227   :  { %8474 = vmatpush.msra.mxu2 %v5458_v37 }
 0x228   :  { %v5211_v35 = vadd.f32 %v5210_v59, %v5197_v32  ;;  %5484 = vmatpush.msra.mxu0 %v5457_v41 }
 0x229   :  { %8475 = vmatpush.msra.mxu2 %v5457_v41 }
 0x22a   :  { %v5225_v42 = vadd.f32 %v9093_v60, %v5211_v35  ;;  %5485 = vmatpush.msra.mxu0 %v5456_v46  ;;  %v5498_v35 = vld [vmem:[%s9160_s5] sm:$0xff] }
 0x22b   :  { %8476 = vmatpush.msra.mxu2 %v5456_v46  ;;  %5525 = vmatpush.msra.mxu1 %v5498_v35 }
 0x22c   :  { %5486 = vmatpush.msra.mxu0 %v5455_v48 }
 0x22d   :  { %v5236_v62 = vpop.f32.mrf.mxu0  ;;  %8477 = vmatpush.msra.mxu2 %v5455_v48 }
 0x22e   :  { %v5250_v0 = vpop.f32.mrf.mxu1  ;;  %v5237_v28 = vadd.f32 %v5236_v62, %v5223_v26  ;;  %5487 = vmatpush.msra.mxu0 %v5454_v51 }
 0x22f   :  { %8478 = vmatpush.msra.mxu2 %v5454_v51 }
 0x230   :  { %v5251_v36 = vadd.f32 %v5250_v0, %v5237_v28  ;;  %5488 = vmatpush.msra.mxu0 %v5453_v53 }
 0x231   :  { %8479 = vmatpush.msra.mxu2 %v5453_v53 }
 0x235   :  { %v5264_v3 = vpop.f32.mrf.mxu2  ;;  %v5238_v9 = vpop.f32.mrf.mxu0 }
 0x236   :  { %v5278_v4 = vpop.f32.mrf.mxu3  ;;  %v5252_v15 = vpop.f32.mrf.mxu1  ;;  %v5265_v43 = vadd.f32 %v5264_v3, %v5251_v36  ;;  %v5239_v44 = vadd.f32 %v5238_v9, %v5225_v42 }
 0x238   :  { %v5279_v47 = vadd.f32 %v5278_v4, %v5265_v43  ;;  %v5253_v50 = vadd.f32 %v5252_v15, %v5239_v44  ;;  %v8487_v43 = vld [vmem:[#allocation2] ss:$0 sm:$0xff] }
 0x23d   :  { %v5266_v22 = vpop.f32.mrf.mxu2 }
 0x23e   :  { %v5280_v24 = vpop.f32.mrf.mxu3  ;;  %v5267_v52 = vadd.f32 %v5266_v22, %v5253_v50 }
 0x240   :  { %v5281_v56 = vadd.f32 %v5280_v24, %v5267_v52 }
 0x24d   :  { %v5292_v27 = vpop.f32.mrf.mxu0 }
 0x24e   :  { %v5306_v34 = vpop.f32.mrf.mxu1  ;;  %v5293_v13 = vadd.f32 %v5292_v27, %v5279_v47 }
 0x250   :  { %v5307_v55 = vadd.f32 %v5306_v34, %v5293_v13 }
 0x255   :  { %v5320_v38 = vpop.f32.mrf.mxu2  ;;  %v5294_v45 = vpop.f32.mrf.mxu0 }
 0x256   :  { %v5334_v40 = vpop.f32.mrf.mxu3  ;;  %v5308_v49 = vpop.f32.mrf.mxu1  ;;  %v5321_v57 = vadd.f32 %v5320_v38, %v5307_v55  ;;  %v5295_v25 = vadd.f32 %v5294_v45, %v5281_v56 }
 0x258   :  { %v5335_v59 = vadd.f32 %v5334_v40, %v5321_v57  ;;  %v5309_v62 = vadd.f32 %v5308_v49, %v5295_v25 }
 0x25d   :  { %v5322_v54 = vpop.f32.mrf.mxu2 }
 0x25e   :  { %v5336_v33 = vpop.f32.mrf.mxu3  ;;  %v5323_v29 = vadd.f32 %v5322_v54, %v5309_v62 }
 0x260   :  { %v5337_v18 = vadd.f32 %v5336_v33, %v5323_v29 }
 0x26d   :  { %v5348_v16 = vpop.f32.mrf.mxu0 }
 0x26e   :  { %v5362_v58 = vpop.f32.mrf.mxu1  ;;  %v5349_v63 = vadd.f32 %v5348_v16, %v5335_v59 }
 0x270   :  { %v5363_v1 = vadd.f32 %v5362_v58, %v5349_v63 }
 0x275   :  { %v5376_v60 = vpop.f32.mrf.mxu2  ;;  %v5350_v0 = vpop.f32.mrf.mxu0 }
 0x276   :  { %v5390_v61 = vpop.f32.mrf.mxu3  ;;  %v5364_v39 = vpop.f32.mrf.mxu1  ;;  %v5377_v2 = vadd.f32 %v5376_v60, %v5363_v1  ;;  %v5351_v3 = vadd.f32 %v5350_v0, %v5337_v18 }
 0x278   :  { %v5391_v6 = vadd.f32 %v5390_v61, %v5377_v2  ;;  %v5365_v8 = vadd.f32 %v5364_v39, %v5351_v3 }
 0x27d   :  { %v5378_v4 = vpop.f32.mrf.mxu2 }
 0x27e   :  { %v5392_v5 = vpop.f32.mrf.mxu3  ;;  %v5379_v11 = vadd.f32 %v5378_v4, %v5365_v8 }
 0x280   :  { %v5393_v17 = vadd.f32 %v5392_v5, %v5379_v11 }
 0x28d   :  { %v5404_v7 = vpop.f32.mrf.mxu0 }
 0x28e   :  { %v5405_v9 = vadd.f32 %v5404_v7, %v5391_v6  ;;  %v5418_v10 = vpop.f32.mrf.mxu1 }
 0x290   :  { %v5419_v12 = vadd.f32 %v5418_v10, %v5405_v9 }
 0x295   :  { %v5432_v14 = vpop.f32.mrf.mxu2  ;;  %v5406_v23 = vpop.f32.mrf.mxu0 }
 0x296   :  { %v5446_v15 = vpop.f32.mrf.mxu3  ;;  %v5433_v19 = vadd.f32 %v5432_v14, %v5419_v12  ;;  %v5407_v21 = vadd.f32 %v5406_v23, %v5393_v17  ;;  %v5420_v24 = vpop.f32.mrf.mxu1 }
 0x298   :  { %v5447_v20 = vadd.f32 %v5446_v15, %v5433_v19  ;;  %v5421_v26 = vadd.f32 %v5420_v24, %v5407_v21 }
 0x29a   :  { %v5451_v22 = vmax.f32 %v5447_v20, 0.0 }
 0x29c   :  { %5489 = vmatmul.f32.vlgmr.msra.gmra.mxu0 %v5451_v22 }
 0x29d   :  { %v5434_v27 = vpop.f32.mrf.mxu2 }
 0x29e   :  { %v5435_v30 = vadd.f32 %v5434_v27, %v5421_v26  ;;  %v5448_v32 = vpop.f32.mrf.mxu3 }
 0x2a0   :  { %v5449_v28 = vadd.f32 %v5448_v32, %v5435_v30 }
 0x2a2   :  { %v5452_v34 = vmax.f32 %v5449_v28, 0.0 }
 0x2a4   :  { %5492 = vmatmul.f32.vlgmr.msra.gmra.mxu2 %v5452_v34 }
 0x319   :  { %v5490_v36 = vpop.f32.mrf.mxu0 }
 0x31a   :  { %v5491_v37 = vadd.f32 %v8486_v31, %v5490_v36 }
 0x31c   :  { %8488 = vtanh.f32 %v5491_v37 }
 0x322   :  { %v8489_v38 = vpop.eup %8488 }
 0x323   :  { %7884 = vmatmul.msk.f32.vlgmr.msra.gmra.mxu1 %vm5503_vm0, %v8489_v38 }
 0x327   :  { %v5493_v40 = vpop.f32.mrf.mxu2 }
 0x328   :  { %v5494_v41 = vadd.f32 %v8486_v31, %v5493_v40 }
 0x32a   :  { %8490 = vtanh.f32 %v5494_v41 }
 0x330   :  { %v8491_v42 = vpop.eup %8490 }
 0x331   :  { %7885 = vmatmul.msk.f32.gmra.mxu1 %vm5503_vm0, %v8491_v42 }
 0x3a0   :  { %v5527_v44 = vpop.f32.mrf.mxu1 }
 0x3a1   :  { %v5528_v45 = vadd.f32 %v8487_v43, %v5527_v44 }
 0x3a3   :  { %v7886_v46 = vmul.f32 -1.442695, %v5528_v45 }
 0x3a5   :  { %8492 = vpow2.f32 %v7886_v46 }
 0x3ab   :  { %v8493_v47 = vpop.eup %8492 }
 0x3ac   :  { %v5539_v48 = vadd.f32 1.0, %v8493_v47 }
 0x3ae   :  { %8494 = vrcp.f32 %v5539_v48  ;;  %v5530_v49 = vpop.f32.mrf.mxu1  ;;  %v5552_v54 = vand.u32 2147483648, %v5539_v48  ;;  %v5550_v16 = vand.u32 2147483647, %v5539_v48  ;;  %vm5546_vm2 = vweird.f32 %v5539_v48 }
 0x3af   :  { %v5531_v50 = vadd.f32 %v8487_v43, %v5530_v49 }
 0x3b0   :  { %v5553_v58 = vor.u32 1.1754944e-38, %v5552_v54  ;;  %vm5551_vm5 = vcmp.eq.f32.partialorder %v5550_v16, 8.507059e+37 }
 0x3b1   :  { %v7887_v13 = vmul.f32 -1.442695, %v5531_v50 }
 0x3b3   :  { %8496 = vpow2.f32 %v7887_v13 }
 0x3b4   :  { %v8495_v51 = vpop.eup %8494 }
 0x3b5   :  { %v5542_v52 = vmul.f32 %v8495_v51, %v5539_v48  ;;  %vm5547_vm1 = vweird.f32 %v8495_v51 }
 0x3b6   :  { %vm5548_vm3 = vmor %vm5546_vm2, %vm5547_vm1 }
 0x3b7   :  { %v5543_v53 = vsub.f32 1.0, %v5542_v52 }
 0x3b9   :  { %v8497_v33 = vpop.eup %8496  ;;  %v5544_v55 = vmul.f32 %v8495_v51, %v5543_v53 }
 0x3ba   :  { %v5540_v56 = vadd.f32 1.0, %v8497_v33 }
 0x3bb   :  { %v5545_v57 = vadd.f32 %v8495_v51, %v5544_v55 }
 0x3bc   :  { %8498 = vrcp.f32 %v5540_v56  ;;  %v5567_v63 = vand.u32 2147483648, %v5540_v56  ;;  %v5565_v0 = vand.u32 2147483647, %v5540_v56  ;;  %vm5561_vm7 = vweird.f32 %v5540_v56 }
 0x3bd   :  { %v5549_v25 = vsel %vm5548_vm3, %v8495_v51, %v5545_v57 }
 0x3be   :  { %v5554_v59 = vsel %vm5551_vm5, %v5553_v58, %v5549_v25  ;;  %v5568_v39 = vor.u32 1.1754944e-38, %v5567_v63  ;;  %vm5566_vm9 = vcmp.eq.f32.partialorder %v5565_v0, 8.507059e+37 }
 0x3bf   :  { %5572 = vst.msk [vmem:[%s9162_s7] sm:$0xff] %vm5571_vm4, %v5554_v59 }
 0x3c2   :  { %v8499_v60 = vpop.eup %8498 }
 0x3c3   :  { %v5557_v61 = vmul.f32 %v8499_v60, %v5540_v56  ;;  %vm5562_vm6 = vweird.f32 %v8499_v60 }
 0x3c4   :  { %vm5563_vm8 = vmor %vm5561_vm7, %vm5562_vm6 }
 0x3c5   :  { %v5558_v62 = vsub.f32 1.0, %v5557_v61 }
 0x3c7   :  { %v5559_v29 = vmul.f32 %v8499_v60, %v5558_v62 }
 0x3c9   :  { %v5560_v1 = vadd.f32 %v8499_v60, %v5559_v29 }
 0x3cb   :  { %v5564_v18 = vsel %vm5563_vm8, %v8499_v60, %v5560_v1 }
 0x3cc   :  { %v5569_v2 = vsel %vm5566_vm9, %v5568_v39, %v5564_v18 }
 0x3cd   :  { %5573 = vst.msk [vmem:[%s9162_s7 + $0x8] sm:$0xff] %vm5571_vm4, %v5569_v2 }
 0x3ce   :  { %5578 = vsyncpa [#allocation4], 1 }
 0x3cf   :  { %5579 = vsyncpa [#allocation6], 1 }

</bundles_post_ra>
